<compile_context>
chip_gen: v7x
topology: tpu7x:2x2x1
jax: 0.10.0
libtpu: 0.0.40
codegen_flags: <defaults>
</compile_context>

<pallas_src>
import jax
import jax.numpy as jnp
from jax.experimental import pallas as pl
from jax.experimental.pallas import tpu as pltpu

# ---- model sizes (match the PyTorch module defaults, small batch/seq) ----
VOCAB_SIZE = 50
EMBEDDING_DIM = 100
HIDDEN_DIM = 128
OUTPUT_DIM = 1
BATCH = 2
SEQ = 8

# padded sizes for clean (8, 128) tiling / MXU-aligned K dims
EMB_PAD = 128     # embedding dim 100 -> 128 (zero cols, exact)
VOCAB_PAD = 64    # vocab 50 -> 64 (zero rows, never indexed after clamping)


def sentiment_lstm_kernel(ids_ref,                     # SMEM (B, T) int32 ids
                          emb_ref,                     # (V_pad, E_pad)
                          wih0_ref,                    # (E_pad, 4H) reordered cols
                          b0_ref,                      # (1, 4H)  b_ih0+b_hh0
                          wblk_ref,                    # (2H, 8H) [[Whh0,Wih1],[0,Whh1]]
                          b1_ref,                      # (1, 4H)  b_ih1+b_hh1
                          fc1w_ref, fc1b_ref,          # (H, H//2), (1, H//2)
                          fc2w_ref, fc2b_ref,          # (1, H//2), (1, 1)
                          out_ref,                     # (B, 1)
                          pre_ref):                    # VMEM scratch (B*T, 4H)
    H = fc1w_ref.shape[0]
    B, T = ids_ref.shape

    # ---- one-time gather of all B*T embedding rows (outside the recurrence)
    rows = [emb_ref[pl.ds(ids_ref[b, t], 1), :]
            for t in range(T) for b in range(B)]        # each (1, E_pad)
    x_all = jnp.concatenate(rows, axis=0)               # (B*T, E_pad)

    # ---- single hoisted layer-0 input projection, bias b0 folded in
    pre_ref[...] = (
        jnp.dot(x_all, wih0_ref[...], preferred_element_type=jnp.float32)
        + b0_ref[...]
    )                                                    # (B*T, 4H)

    # hoist the layer-1 bias broadcast out of the (unrolled) wavefront loop
    b1_full = jnp.broadcast_to(b1_ref[...], (B, 4 * H))

    def cell(gates, c):
        # gate columns were reordered host-side to (i, f, o, g):
        # one contiguous sigmoid over 3H lanes + one tanh over H lanes.
        sig = jax.nn.sigmoid(gates[:, 0:3 * H])
        i_g = sig[:, 0 * H:1 * H]
        f_g = sig[:, 1 * H:2 * H]
        o_g = sig[:, 2 * H:3 * H]
        g_g = jnp.tanh(gates[:, 3 * H:4 * H])
        c_new = f_g * c + i_g * g_g
        h_new = o_g * jnp.tanh(c_new)
        return h_new, c_new

    zeros = jnp.zeros((B, H), jnp.float32)
    h0, c0 = zeros, zeros        # layer-0 state h0_{w-1}, c0_{w-1}
    h1, c1 = zeros, zeros        # layer-1 state h1_{w-2}, c1_{w-2}

    # ---- wavefront recurrence: wave w runs layer-0 step w and layer-1 step w-1
    for w in range(T + 1):
        if w == 0:
            # layer-0 step 0: recurrent term is identically zero (h0_{-1} = 0)
            gates0 = pre_ref[0:B, :]
            h0, c0 = cell(gates0, c0)
            continue

        h_cat = jnp.concatenate([h0, h1], axis=1)        # (B, 2H) lane-aligned

        if w < T:
            # single fused K=256 matmul covering both layers' gates
            mm = jnp.dot(h_cat, wblk_ref[...],
                         preferred_element_type=jnp.float32)      # (B, 8H)
            gates0 = pre_ref[w * B:(w + 1) * B, :] + mm[:, 0:4 * H]
            gates1 = mm[:, 4 * H:8 * H] + b1_full
            h0_new, c0_new = cell(gates0, c0)            # layer-0 step w
            h1, c1 = cell(gates1, c1)                    # layer-1 step w-1
            h0, c0 = h0_new, c0_new
        else:
            # last wave: only layer-1 step T-1 remains
            mm1 = jnp.dot(h_cat, wblk_ref[:, 4 * H:8 * H],
                          preferred_element_type=jnp.float32)     # (B, 4H)
            gates1 = mm1 + b1_full
            h1, c1 = cell(gates1, c1)

    # ---- MLP head on final hidden state of the top layer (hidden[-1])
    fc1_out = jnp.dot(h1, fc1w_ref[...],
                      preferred_element_type=jnp.float32) + fc1b_ref[...]
    fc1_out = jnp.maximum(fc1_out, 0.0)
    # fc2 has N=1 -> VPU multiply + lane reduce instead of an MXU pass
    logits = (jnp.sum(fc1_out * fc2w_ref[...], axis=-1, keepdims=True)
              + fc2b_ref[...])
    out_ref[...] = jax.nn.sigmoid(logits)


def _reorder_gate_cols(w):
    """PyTorch gate order (i, f, g, o) -> kernel order (i, f, o, g), last axis."""
    H = HIDDEN_DIM
    return jnp.concatenate(
        [w[..., 0 * H:1 * H], w[..., 1 * H:2 * H],
         w[..., 3 * H:4 * H], w[..., 2 * H:3 * H]], axis=-1)


def prepare_kernel_params(raw):
    """Pad / transpose / reorder / stack PyTorch-shaped params (exact, f32)."""
    E, H, V = EMBEDDING_DIM, HIDDEN_DIM, VOCAB_SIZE

    emb_p = jnp.zeros((VOCAB_PAD, EMB_PAD), jnp.float32).at[:V, :E].set(
        raw["embedding"])

    wih0 = jnp.zeros((EMB_PAD, 4 * H), jnp.float32).at[:E, :].set(
        _reorder_gate_cols(raw["w_ih0"].T))                       # (E_pad, 4H)
    whh0 = _reorder_gate_cols(raw["w_hh0"].T)                     # (H, 4H)
    wih1 = _reorder_gate_cols(raw["w_ih1"].T)                     # (H, 4H)
    whh1 = _reorder_gate_cols(raw["w_hh1"].T)                     # (H, 4H)
    b0 = _reorder_gate_cols(raw["b_ih0"] + raw["b_hh0"])[None, :]  # (1, 4H)
    b1 = _reorder_gate_cols(raw["b_ih1"] + raw["b_hh1"])[None, :]  # (1, 4H)

    # block weight for the wavefront-fused recurrent matmul:
    #   [h0, h1] @ [[Whh0, Wih1], [0, Whh1]]  ->  [layer-0 gates | layer-1 gates]
    top = jnp.concatenate([whh0, wih1], axis=1)                   # (H, 8H)
    bot = jnp.concatenate([jnp.zeros((H, 4 * H), jnp.float32), whh1], axis=1)
    wblk = jnp.concatenate([top, bot], axis=0)                    # (2H, 8H)

    fc1w = raw["fc1_w"].T                                         # (H, H//2)
    fc1b = raw["fc1_b"][None, :]                                  # (1, H//2)
    fc2w = raw["fc2_w"]                                           # (1, H//2)
    fc2b = raw["fc2_b"][None, :]                                  # (1, 1)

    return {
        "emb": emb_p, "wih0": wih0, "b0": b0, "wblk": wblk, "b1": b1,
        "fc1w": fc1w, "fc1b": fc1b, "fc2w": fc2w, "fc2b": fc2b,
    }


def sentiment_lstm_forward(x_tokens, kp):
    """x_tokens: (B, T) int32 token ids; kp: prepared kernel params."""
    B, T = x_tokens.shape
    H = HIDDEN_DIM

    vmem = pl.BlockSpec(memory_space=pltpu.MemorySpace.VMEM)
    smem = pl.BlockSpec(memory_space=pltpu.MemorySpace.SMEM)

    # clamp ids so in-kernel dynamic row loads are always in-bounds
    ids = jnp.clip(x_tokens.astype(jnp.int32), 0, VOCAB_SIZE - 1)

    return pl.pallas_call(
        sentiment_lstm_kernel,
        out_shape=jax.ShapeDtypeStruct((B, OUTPUT_DIM), jnp.float32),
        in_specs=[smem] + [vmem] * 9,
        out_specs=vmem,
        scratch_shapes=[
            pltpu.VMEM((B * T, 4 * H), jnp.float32),   # pre-projected inputs
        ],
    )(ids,
      kp["emb"], kp["wih0"], kp["b0"], kp["wblk"], kp["b1"],
      kp["fc1w"], kp["fc1b"], kp["fc2w"], kp["fc2b"])


def init_params(key):
    """Deterministic synthetic parameters with PyTorch-style shapes."""
    keys = jax.random.split(key, 16)
    E, H, V = EMBEDDING_DIM, HIDDEN_DIM, VOCAB_SIZE
    k_lstm = 1.0 / jnp.sqrt(H)

    def u(k, shape, bound):
        return jax.random.uniform(k, shape, jnp.float32, -bound, bound)

    w_ih0 = u(keys[0], (4 * H, E), k_lstm)
    w_hh0 = u(keys[1], (4 * H, H), k_lstm)
    b_ih0 = u(keys[2], (4 * H,), k_lstm)
    b_hh0 = u(keys[3], (4 * H,), k_lstm)
    w_ih1 = u(keys[4], (4 * H, H), k_lstm)
    w_hh1 = u(keys[5], (4 * H, H), k_lstm)
    b_ih1 = u(keys[6], (4 * H,), k_lstm)
    b_hh1 = u(keys[7], (4 * H,), k_lstm)

    k_fc1 = 1.0 / jnp.sqrt(H)
    fc1_w = u(keys[8], (H // 2, H), k_fc1)
    fc1_b = u(keys[9], (H // 2,), k_fc1)
    k_fc2 = 1.0 / jnp.sqrt(H // 2)
    fc2_w = u(keys[10], (OUTPUT_DIM, H // 2), k_fc2)
    fc2_b = u(keys[11], (OUTPUT_DIM,), k_fc2)

    embedding = jax.random.normal(keys[12], (V, E), jnp.float32)

    return {
        "embedding": embedding,
        "w_ih0": w_ih0, "w_hh0": w_hh0, "b_ih0": b_ih0, "b_hh0": b_hh0,
        "w_ih1": w_ih1, "w_hh1": w_hh1, "b_ih1": b_ih1, "b_hh1": b_hh1,
        "fc1_w": fc1_w, "fc1_b": fc1_b, "fc2_w": fc2_w, "fc2_b": fc2_b,
    }


def reference_forward(x_tokens, raw):
    """Pure-JAX reference of the PyTorch forward (eval mode)."""
    H = HIDDEN_DIM
    emb = raw["embedding"][x_tokens]  # (B, T, E)
    B, T, _ = emb.shape
    h0 = c0 = h1 = c1 = jnp.zeros((B, H), jnp.float32)

    def cell(x, h, c, wih, whh, b_ih, b_hh):
        gates = x @ wih.T + h @ whh.T + b_ih + b_hh
        i = jax.nn.sigmoid(gates[:, 0 * H:1 * H])
        f = jax.nn.sigmoid(gates[:, 1 * H:2 * H])
        g = jnp.tanh(gates[:, 2 * H:3 * H])
        o = jax.nn.sigmoid(gates[:, 3 * H:4 * H])
        c_new = f * c + i * g
        return o * jnp.tanh(c_new), c_new

    for t in range(T):
        h0, c0 = cell(emb[:, t, :], h0, c0,
                      raw["w_ih0"], raw["w_hh0"], raw["b_ih0"], raw["b_hh0"])
        h1, c1 = cell(h0, h1, c1,
                      raw["w_ih1"], raw["w_hh1"], raw["b_ih1"], raw["b_hh1"])

    fc1 = jnp.maximum(h1 @ raw["fc1_w"].T + raw["fc1_b"], 0.0)
    return jax.nn.sigmoid(fc1 @ raw["fc2_w"].T + raw["fc2_b"])


if __name__ == "__main__":
    key = jax.random.PRNGKey(0)
    pkey, xkey = jax.random.split(key)
    raw_params = init_params(pkey)
    kernel_params = prepare_kernel_params(raw_params)   # one-time host-side prep
    x = jax.random.randint(xkey, (BATCH, SEQ), 0, VOCAB_SIZE, dtype=jnp.int32)

    out = sentiment_lstm_forward(x, kernel_params)
    out = jax.block_until_ready(out)

    ref = jax.block_until_ready(reference_forward(x, raw_params))
    assert out.shape == (BATCH, OUTPUT_DIM)
    assert jnp.allclose(out, ref, rtol=1e-4, atol=1e-4), (out, ref)
    print("KERNEL_OK")
</pallas_src>

<mosaic_0001>
module attributes {stable_mosaic.version = 11 : i64} {
  func.func @sentiment_lstm_kernel(%arg0: memref<2x8xi32, #tpu.memory_space<smem>>, %arg1: memref<64x128xf32, #tpu.memory_space<vmem>>, %arg2: memref<128x512xf32, #tpu.memory_space<vmem>>, %arg3: memref<1x512xf32, #tpu.memory_space<vmem>>, %arg4: memref<256x1024xf32, #tpu.memory_space<vmem>>, %arg5: memref<1x512xf32, #tpu.memory_space<vmem>>, %arg6: memref<128x64xf32, #tpu.memory_space<vmem>>, %arg7: memref<1x64xf32, #tpu.memory_space<vmem>>, %arg8: memref<1x64xf32, #tpu.memory_space<vmem>>, %arg9: memref<1x1xf32, #tpu.memory_space<vmem>>, %arg10: memref<2x1xf32, #tpu.memory_space<vmem>>, %arg11: memref<16x512xf32, #tpu.memory_space<vmem>>) attributes {dimension_semantics = [], scalar_prefetch = 0 : i64, scratch_operands = 1 : i64, tpu.core_type = #tpu.core_type<tc>} {
    %c0 = arith.constant 0 : index
    %c0_0 = arith.constant 0 : index
    %0 = memref.load %arg0[%c0, %c0_0] : memref<2x8xi32, #tpu.memory_space<smem>>
    %1 = arith.index_cast %0 : i32 to index
    %c0_1 = arith.constant 0 : index
    %2 = vector.load %arg1[%1, %c0_1] : memref<64x128xf32, #tpu.memory_space<vmem>>, vector<1x128xf32>
    %c1 = arith.constant 1 : index
    %c0_2 = arith.constant 0 : index
    %3 = memref.load %arg0[%c1, %c0_2] : memref<2x8xi32, #tpu.memory_space<smem>>
    %4 = arith.index_cast %3 : i32 to index
    %c0_3 = arith.constant 0 : index
    %5 = vector.load %arg1[%4, %c0_3] : memref<64x128xf32, #tpu.memory_space<vmem>>, vector<1x128xf32>
    %c0_4 = arith.constant 0 : index
    %c1_5 = arith.constant 1 : index
    %6 = memref.load %arg0[%c0_4, %c1_5] : memref<2x8xi32, #tpu.memory_space<smem>>
    %7 = arith.index_cast %6 : i32 to index
    %c0_6 = arith.constant 0 : index
    %8 = vector.load %arg1[%7, %c0_6] : memref<64x128xf32, #tpu.memory_space<vmem>>, vector<1x128xf32>
    %c1_7 = arith.constant 1 : index
    %c1_8 = arith.constant 1 : index
    %9 = memref.load %arg0[%c1_7, %c1_8] : memref<2x8xi32, #tpu.memory_space<smem>>
    %10 = arith.index_cast %9 : i32 to index
    %c0_9 = arith.constant 0 : index
    %11 = vector.load %arg1[%10, %c0_9] : memref<64x128xf32, #tpu.memory_space<vmem>>, vector<1x128xf32>
    %c0_10 = arith.constant 0 : index
    %c2 = arith.constant 2 : index
    %12 = memref.load %arg0[%c0_10, %c2] : memref<2x8xi32, #tpu.memory_space<smem>>
    %13 = arith.index_cast %12 : i32 to index
    %c0_11 = arith.constant 0 : index
    %14 = vector.load %arg1[%13, %c0_11] : memref<64x128xf32, #tpu.memory_space<vmem>>, vector<1x128xf32>
    %c1_12 = arith.constant 1 : index
    %c2_13 = arith.constant 2 : index
    %15 = memref.load %arg0[%c1_12, %c2_13] : memref<2x8xi32, #tpu.memory_space<smem>>
    %16 = arith.index_cast %15 : i32 to index
    %c0_14 = arith.constant 0 : index
    %17 = vector.load %arg1[%16, %c0_14] : memref<64x128xf32, #tpu.memory_space<vmem>>, vector<1x128xf32>
    %c0_15 = arith.constant 0 : index
    %c3 = arith.constant 3 : index
    %18 = memref.load %arg0[%c0_15, %c3] : memref<2x8xi32, #tpu.memory_space<smem>>
    %19 = arith.index_cast %18 : i32 to index
    %c0_16 = arith.constant 0 : index
    %20 = vector.load %arg1[%19, %c0_16] : memref<64x128xf32, #tpu.memory_space<vmem>>, vector<1x128xf32>
    %c1_17 = arith.constant 1 : index
    %c3_18 = arith.constant 3 : index
    %21 = memref.load %arg0[%c1_17, %c3_18] : memref<2x8xi32, #tpu.memory_space<smem>>
    %22 = arith.index_cast %21 : i32 to index
    %c0_19 = arith.constant 0 : index
    %23 = vector.load %arg1[%22, %c0_19] : memref<64x128xf32, #tpu.memory_space<vmem>>, vector<1x128xf32>
    %c0_20 = arith.constant 0 : index
    %c4 = arith.constant 4 : index
    %24 = memref.load %arg0[%c0_20, %c4] : memref<2x8xi32, #tpu.memory_space<smem>>
    %25 = arith.index_cast %24 : i32 to index
    %c0_21 = arith.constant 0 : index
    %26 = vector.load %arg1[%25, %c0_21] : memref<64x128xf32, #tpu.memory_space<vmem>>, vector<1x128xf32>
    %c1_22 = arith.constant 1 : index
    %c4_23 = arith.constant 4 : index
    %27 = memref.load %arg0[%c1_22, %c4_23] : memref<2x8xi32, #tpu.memory_space<smem>>
    %28 = arith.index_cast %27 : i32 to index
    %c0_24 = arith.constant 0 : index
    %29 = vector.load %arg1[%28, %c0_24] : memref<64x128xf32, #tpu.memory_space<vmem>>, vector<1x128xf32>
    %c0_25 = arith.constant 0 : index
    %c5 = arith.constant 5 : index
    %30 = memref.load %arg0[%c0_25, %c5] : memref<2x8xi32, #tpu.memory_space<smem>>
    %31 = arith.index_cast %30 : i32 to index
    %c0_26 = arith.constant 0 : index
    %32 = vector.load %arg1[%31, %c0_26] : memref<64x128xf32, #tpu.memory_space<vmem>>, vector<1x128xf32>
    %c1_27 = arith.constant 1 : index
    %c5_28 = arith.constant 5 : index
    %33 = memref.load %arg0[%c1_27, %c5_28] : memref<2x8xi32, #tpu.memory_space<smem>>
    %34 = arith.index_cast %33 : i32 to index
    %c0_29 = arith.constant 0 : index
    %35 = vector.load %arg1[%34, %c0_29] : memref<64x128xf32, #tpu.memory_space<vmem>>, vector<1x128xf32>
    %c0_30 = arith.constant 0 : index
    %c6 = arith.constant 6 : index
    %36 = memref.load %arg0[%c0_30, %c6] : memref<2x8xi32, #tpu.memory_space<smem>>
    %37 = arith.index_cast %36 : i32 to index
    %c0_31 = arith.constant 0 : index
    %38 = vector.load %arg1[%37, %c0_31] : memref<64x128xf32, #tpu.memory_space<vmem>>, vector<1x128xf32>
    %c1_32 = arith.constant 1 : index
    %c6_33 = arith.constant 6 : index
    %39 = memref.load %arg0[%c1_32, %c6_33] : memref<2x8xi32, #tpu.memory_space<smem>>
    %40 = arith.index_cast %39 : i32 to index
    %c0_34 = arith.constant 0 : index
    %41 = vector.load %arg1[%40, %c0_34] : memref<64x128xf32, #tpu.memory_space<vmem>>, vector<1x128xf32>
    %c0_35 = arith.constant 0 : index
    %c7 = arith.constant 7 : index
    %42 = memref.load %arg0[%c0_35, %c7] : memref<2x8xi32, #tpu.memory_space<smem>>
    %43 = arith.index_cast %42 : i32 to index
    %c0_36 = arith.constant 0 : index
    %44 = vector.load %arg1[%43, %c0_36] : memref<64x128xf32, #tpu.memory_space<vmem>>, vector<1x128xf32>
    %c1_37 = arith.constant 1 : index
    %c7_38 = arith.constant 7 : index
    %45 = memref.load %arg0[%c1_37, %c7_38] : memref<2x8xi32, #tpu.memory_space<smem>>
    %46 = arith.index_cast %45 : i32 to index
    %c0_39 = arith.constant 0 : index
    %47 = vector.load %arg1[%46, %c0_39] : memref<64x128xf32, #tpu.memory_space<vmem>>, vector<1x128xf32>
    %48 = tpu.concatenate %2, %5, %8, %11, %14, %17, %20, %23, %26, %29, %32, %35, %38, %41, %44, %47 in 0 : vector<1x128xf32>, vector<1x128xf32>, vector<1x128xf32>, vector<1x128xf32>, vector<1x128xf32>, vector<1x128xf32>, vector<1x128xf32>, vector<1x128xf32>, vector<1x128xf32>, vector<1x128xf32>, vector<1x128xf32>, vector<1x128xf32>, vector<1x128xf32>, vector<1x128xf32>, vector<1x128xf32>, vector<1x128xf32> -> vector<16x128xf32>
    %c0_40 = arith.constant 0 : index
    %c0_41 = arith.constant 0 : index
    %49 = vector.load %arg2[%c0_40, %c0_41] : memref<128x512xf32, #tpu.memory_space<vmem>>, vector<128x512xf32>
    %cst = arith.constant dense<0.000000e+00> : vector<16x512xf32>
    %50 = tpu.matmul %48, %49, %cst {dimension_numbers = #tpu.dot_dimension_numbers<[1], [0], [0], [1], [0, 0, 1, 1], [], []>} : vector<16x128xf32>, vector<128x512xf32>, vector<16x512xf32> -> vector<16x512xf32>
    %c0_42 = arith.constant 0 : index
    %c0_43 = arith.constant 0 : index
    %51 = vector.load %arg3[%c0_42, %c0_43] : memref<1x512xf32, #tpu.memory_space<vmem>>, vector<1x512xf32>
    %52 = vector.broadcast %51 : vector<1x512xf32> to vector<16x512xf32>
    %53 = arith.addf %50, %52 : vector<16x512xf32>
    %c0_44 = arith.constant 0 : index
    %c0_45 = arith.constant 0 : index
    %54 = vector.load %arg11[%c0_44, %c0_45] : memref<16x512xf32, #tpu.memory_space<vmem>>, vector<16x512xf32>
    tpu.vector_store %arg11[%c0_44, %c0_45], %53 {strides = array<i32>} : memref<16x512xf32, #tpu.memory_space<vmem>>, vector<16x512xf32>,
    %c0_46 = arith.constant 0 : index
    %c0_47 = arith.constant 0 : index
    %55 = vector.load %arg5[%c0_46, %c0_47] : memref<1x512xf32, #tpu.memory_space<vmem>>, vector<1x512xf32>
    %56 = vector.shape_cast %55 : vector<1x512xf32> to vector<1x512xf32>
    %57 = vector.broadcast %56 : vector<1x512xf32> to vector<2x512xf32>
    %cst_48 = arith.constant 0.000000e+00 : f32
    %58 = vector.broadcast %cst_48 : f32 to vector<2x128xf32>
    %c0_49 = arith.constant 0 : index
    %c0_50 = arith.constant 0 : index
    %59 = vector.load %arg11[%c0_49, %c0_50] : memref<16x512xf32, #tpu.memory_space<vmem>>, vector<2x512xf32>
    %60 = vector.extract_strided_slice %59 {offsets = [0, 0], sizes = [2, 384], strides = [1, 1]} : vector<2x512xf32> to vector<2x384xf32>
    %61 = arith.negf %60 : vector<2x384xf32>
    %62 = math.exp %61 : vector<2x384xf32>
    %cst_51 = arith.constant 1.000000e+00 : f32
    %63 = vector.broadcast %cst_51 : f32 to vector<2x384xf32>
    %64 = arith.addf %63, %62 : vector<2x384xf32>
    %65 = arith.divf %63, %64 : vector<2x384xf32>
    %66 = vector.extract_strided_slice %65 {offsets = [0, 0], sizes = [2, 128], strides = [1, 1]} : vector<2x384xf32> to vector<2x128xf32>
    %67 = vector.extract_strided_slice %65 {offsets = [0, 128], sizes = [2, 128], strides = [1, 1]} : vector<2x384xf32> to vector<2x128xf32>
    %68 = vector.extract_strided_slice %65 {offsets = [0, 256], sizes = [2, 128], strides = [1, 1]} : vector<2x384xf32> to vector<2x128xf32>
    %69 = vector.extract_strided_slice %59 {offsets = [0, 384], sizes = [2, 128], strides = [1, 1]} : vector<2x512xf32> to vector<2x128xf32>
    %70 = math.tanh %69 : vector<2x128xf32>
    %71 = arith.mulf %67, %58 : vector<2x128xf32>
    %72 = arith.mulf %66, %70 : vector<2x128xf32>
    %73 = arith.addf %71, %72 : vector<2x128xf32>
    %74 = math.tanh %73 : vector<2x128xf32>
    %75 = arith.mulf %68, %74 : vector<2x128xf32>
    %76 = tpu.concatenate %75, %58 in 1 : vector<2x128xf32>, vector<2x128xf32> -> vector<2x256xf32>
    %c0_52 = arith.constant 0 : index
    %c0_53 = arith.constant 0 : index
    %77 = vector.load %arg4[%c0_52, %c0_53] : memref<256x1024xf32, #tpu.memory_space<vmem>>, vector<256x1024xf32>
    %cst_54 = arith.constant dense<0.000000e+00> : vector<2x1024xf32>
    %78 = tpu.matmul %76, %77, %cst_54 {dimension_numbers = #tpu.dot_dimension_numbers<[1], [0], [0], [1], [0, 0, 1, 1], [], []>} : vector<2x256xf32>, vector<256x1024xf32>, vector<2x1024xf32> -> vector<2x1024xf32>
    %c2_55 = arith.constant 2 : index
    %c0_56 = arith.constant 0 : index
    %79 = vector.load %arg11[%c2_55, %c0_56] : memref<16x512xf32, #tpu.memory_space<vmem>>, vector<2x512xf32>
    %80 = vector.extract_strided_slice %78 {offsets = [0, 0], sizes = [2, 512], strides = [1, 1]} : vector<2x1024xf32> to vector<2x512xf32>
    %81 = arith.addf %79, %80 : vector<2x512xf32>
    %82 = vector.extract_strided_slice %78 {offsets = [0, 512], sizes = [2, 512], strides = [1, 1]} : vector<2x1024xf32> to vector<2x512xf32>
    %83 = arith.addf %82, %57 : vector<2x512xf32>
    %84 = vector.extract_strided_slice %81 {offsets = [0, 0], sizes = [2, 384], strides = [1, 1]} : vector<2x512xf32> to vector<2x384xf32>
    %85 = arith.negf %84 : vector<2x384xf32>
    %86 = math.exp %85 : vector<2x384xf32>
    %cst_57 = arith.constant 1.000000e+00 : f32
    %87 = vector.broadcast %cst_57 : f32 to vector<2x384xf32>
    %88 = arith.addf %87, %86 : vector<2x384xf32>
    %89 = arith.divf %87, %88 : vector<2x384xf32>
    %90 = vector.extract_strided_slice %89 {offsets = [0, 0], sizes = [2, 128], strides = [1, 1]} : vector<2x384xf32> to vector<2x128xf32>
    %91 = vector.extract_strided_slice %89 {offsets = [0, 128], sizes = [2, 128], strides = [1, 1]} : vector<2x384xf32> to vector<2x128xf32>
    %92 = vector.extract_strided_slice %89 {offsets = [0, 256], sizes = [2, 128], strides = [1, 1]} : vector<2x384xf32> to vector<2x128xf32>
    %93 = vector.extract_strided_slice %81 {offsets = [0, 384], sizes = [2, 128], strides = [1, 1]} : vector<2x512xf32> to vector<2x128xf32>
    %94 = math.tanh %93 : vector<2x128xf32>
    %95 = arith.mulf %91, %73 : vector<2x128xf32>
    %96 = arith.mulf %90, %94 : vector<2x128xf32>
    %97 = arith.addf %95, %96 : vector<2x128xf32>
    %98 = math.tanh %97 : vector<2x128xf32>
    %99 = arith.mulf %92, %98 : vector<2x128xf32>
    %100 = vector.extract_strided_slice %83 {offsets = [0, 0], sizes = [2, 384], strides = [1, 1]} : vector<2x512xf32> to vector<2x384xf32>
    %101 = arith.negf %100 : vector<2x384xf32>
    %102 = math.exp %101 : vector<2x384xf32>
    %cst_58 = arith.constant 1.000000e+00 : f32
    %103 = vector.broadcast %cst_58 : f32 to vector<2x384xf32>
    %104 = arith.addf %103, %102 : vector<2x384xf32>
    %105 = arith.divf %103, %104 : vector<2x384xf32>
    %106 = vector.extract_strided_slice %105 {offsets = [0, 0], sizes = [2, 128], strides = [1, 1]} : vector<2x384xf32> to vector<2x128xf32>
    %107 = vector.extract_strided_slice %105 {offsets = [0, 128], sizes = [2, 128], strides = [1, 1]} : vector<2x384xf32> to vector<2x128xf32>
    %108 = vector.extract_strided_slice %105 {offsets = [0, 256], sizes = [2, 128], strides = [1, 1]} : vector<2x384xf32> to vector<2x128xf32>
    %109 = vector.extract_strided_slice %83 {offsets = [0, 384], sizes = [2, 128], strides = [1, 1]} : vector<2x512xf32> to vector<2x128xf32>
    %110 = math.tanh %109 : vector<2x128xf32>
    %111 = arith.mulf %107, %58 : vector<2x128xf32>
    %112 = arith.mulf %106, %110 : vector<2x128xf32>
    %113 = arith.addf %111, %112 : vector<2x128xf32>
    %114 = math.tanh %113 : vector<2x128xf32>
    %115 = arith.mulf %108, %114 : vector<2x128xf32>
    %116 = tpu.concatenate %99, %115 in 1 : vector<2x128xf32>, vector<2x128xf32> -> vector<2x256xf32>
    %c0_59 = arith.constant 0 : index
    %c0_60 = arith.constant 0 : index
    %117 = vector.load %arg4[%c0_59, %c0_60] : memref<256x1024xf32, #tpu.memory_space<vmem>>, vector<256x1024xf32>
    %cst_61 = arith.constant dense<0.000000e+00> : vector<2x1024xf32>
    %118 = tpu.matmul %116, %117, %cst_61 {dimension_numbers = #tpu.dot_dimension_numbers<[1], [0], [0], [1], [0, 0, 1, 1], [], []>} : vector<2x256xf32>, vector<256x1024xf32>, vector<2x1024xf32> -> vector<2x1024xf32>
    %c4_62 = arith.constant 4 : index
    %c0_63 = arith.constant 0 : index
    %119 = vector.load %arg11[%c4_62, %c0_63] : memref<16x512xf32, #tpu.memory_space<vmem>>, vector<2x512xf32>
    %120 = vector.extract_strided_slice %118 {offsets = [0, 0], sizes = [2, 512], strides = [1, 1]} : vector<2x1024xf32> to vector<2x512xf32>
    %121 = arith.addf %119, %120 : vector<2x512xf32>
    %122 = vector.extract_strided_slice %118 {offsets = [0, 512], sizes = [2, 512], strides = [1, 1]} : vector<2x1024xf32> to vector<2x512xf32>
    %123 = arith.addf %122, %57 : vector<2x512xf32>
    %124 = vector.extract_strided_slice %121 {offsets = [0, 0], sizes = [2, 384], strides = [1, 1]} : vector<2x512xf32> to vector<2x384xf32>
    %125 = arith.negf %124 : vector<2x384xf32>
    %126 = math.exp %125 : vector<2x384xf32>
    %cst_64 = arith.constant 1.000000e+00 : f32
    %127 = vector.broadcast %cst_64 : f32 to vector<2x384xf32>
    %128 = arith.addf %127, %126 : vector<2x384xf32>
    %129 = arith.divf %127, %128 : vector<2x384xf32>
    %130 = vector.extract_strided_slice %129 {offsets = [0, 0], sizes = [2, 128], strides = [1, 1]} : vector<2x384xf32> to vector<2x128xf32>
    %131 = vector.extract_strided_slice %129 {offsets = [0, 128], sizes = [2, 128], strides = [1, 1]} : vector<2x384xf32> to vector<2x128xf32>
    %132 = vector.extract_strided_slice %129 {offsets = [0, 256], sizes = [2, 128], strides = [1, 1]} : vector<2x384xf32> to vector<2x128xf32>
    %133 = vector.extract_strided_slice %121 {offsets = [0, 384], sizes = [2, 128], strides = [1, 1]} : vector<2x512xf32> to vector<2x128xf32>
    %134 = math.tanh %133 : vector<2x128xf32>
    %135 = arith.mulf %131, %97 : vector<2x128xf32>
    %136 = arith.mulf %130, %134 : vector<2x128xf32>
    %137 = arith.addf %135, %136 : vector<2x128xf32>
    %138 = math.tanh %137 : vector<2x128xf32>
    %139 = arith.mulf %132, %138 : vector<2x128xf32>
    %140 = vector.extract_strided_slice %123 {offsets = [0, 0], sizes = [2, 384], strides = [1, 1]} : vector<2x512xf32> to vector<2x384xf32>
    %141 = arith.negf %140 : vector<2x384xf32>
    %142 = math.exp %141 : vector<2x384xf32>
    %cst_65 = arith.constant 1.000000e+00 : f32
    %143 = vector.broadcast %cst_65 : f32 to vector<2x384xf32>
    %144 = arith.addf %143, %142 : vector<2x384xf32>
    %145 = arith.divf %143, %144 : vector<2x384xf32>
    %146 = vector.extract_strided_slice %145 {offsets = [0, 0], sizes = [2, 128], strides = [1, 1]} : vector<2x384xf32> to vector<2x128xf32>
    %147 = vector.extract_strided_slice %145 {offsets = [0, 128], sizes = [2, 128], strides = [1, 1]} : vector<2x384xf32> to vector<2x128xf32>
    %148 = vector.extract_strided_slice %145 {offsets = [0, 256], sizes = [2, 128], strides = [1, 1]} : vector<2x384xf32> to vector<2x128xf32>
    %149 = vector.extract_strided_slice %123 {offsets = [0, 384], sizes = [2, 128], strides = [1, 1]} : vector<2x512xf32> to vector<2x128xf32>
    %150 = math.tanh %149 : vector<2x128xf32>
    %151 = arith.mulf %147, %113 : vector<2x128xf32>
    %152 = arith.mulf %146, %150 : vector<2x128xf32>
    %153 = arith.addf %151, %152 : vector<2x128xf32>
    %154 = math.tanh %153 : vector<2x128xf32>
    %155 = arith.mulf %148, %154 : vector<2x128xf32>
    %156 = tpu.concatenate %139, %155 in 1 : vector<2x128xf32>, vector<2x128xf32> -> vector<2x256xf32>
    %c0_66 = arith.constant 0 : index
    %c0_67 = arith.constant 0 : index
    %157 = vector.load %arg4[%c0_66, %c0_67] : memref<256x1024xf32, #tpu.memory_space<vmem>>, vector<256x1024xf32>
    %cst_68 = arith.constant dense<0.000000e+00> : vector<2x1024xf32>
    %158 = tpu.matmul %156, %157, %cst_68 {dimension_numbers = #tpu.dot_dimension_numbers<[1], [0], [0], [1], [0, 0, 1, 1], [], []>} : vector<2x256xf32>, vector<256x1024xf32>, vector<2x1024xf32> -> vector<2x1024xf32>
    %c6_69 = arith.constant 6 : index
    %c0_70 = arith.constant 0 : index
    %159 = vector.load %arg11[%c6_69, %c0_70] : memref<16x512xf32, #tpu.memory_space<vmem>>, vector<2x512xf32>
    %160 = vector.extract_strided_slice %158 {offsets = [0, 0], sizes = [2, 512], strides = [1, 1]} : vector<2x1024xf32> to vector<2x512xf32>
    %161 = arith.addf %159, %160 : vector<2x512xf32>
    %162 = vector.extract_strided_slice %158 {offsets = [0, 512], sizes = [2, 512], strides = [1, 1]} : vector<2x1024xf32> to vector<2x512xf32>
    %163 = arith.addf %162, %57 : vector<2x512xf32>
    %164 = vector.extract_strided_slice %161 {offsets = [0, 0], sizes = [2, 384], strides = [1, 1]} : vector<2x512xf32> to vector<2x384xf32>
    %165 = arith.negf %164 : vector<2x384xf32>
    %166 = math.exp %165 : vector<2x384xf32>
    %cst_71 = arith.constant 1.000000e+00 : f32
    %167 = vector.broadcast %cst_71 : f32 to vector<2x384xf32>
    %168 = arith.addf %167, %166 : vector<2x384xf32>
    %169 = arith.divf %167, %168 : vector<2x384xf32>
    %170 = vector.extract_strided_slice %169 {offsets = [0, 0], sizes = [2, 128], strides = [1, 1]} : vector<2x384xf32> to vector<2x128xf32>
    %171 = vector.extract_strided_slice %169 {offsets = [0, 128], sizes = [2, 128], strides = [1, 1]} : vector<2x384xf32> to vector<2x128xf32>
    %172 = vector.extract_strided_slice %169 {offsets = [0, 256], sizes = [2, 128], strides = [1, 1]} : vector<2x384xf32> to vector<2x128xf32>
    %173 = vector.extract_strided_slice %161 {offsets = [0, 384], sizes = [2, 128], strides = [1, 1]} : vector<2x512xf32> to vector<2x128xf32>
    %174 = math.tanh %173 : vector<2x128xf32>
    %175 = arith.mulf %171, %137 : vector<2x128xf32>
    %176 = arith.mulf %170, %174 : vector<2x128xf32>
    %177 = arith.addf %175, %176 : vector<2x128xf32>
    %178 = math.tanh %177 : vector<2x128xf32>
    %179 = arith.mulf %172, %178 : vector<2x128xf32>
    %180 = vector.extract_strided_slice %163 {offsets = [0, 0], sizes = [2, 384], strides = [1, 1]} : vector<2x512xf32> to vector<2x384xf32>
    %181 = arith.negf %180 : vector<2x384xf32>
    %182 = math.exp %181 : vector<2x384xf32>
    %cst_72 = arith.constant 1.000000e+00 : f32
    %183 = vector.broadcast %cst_72 : f32 to vector<2x384xf32>
    %184 = arith.addf %183, %182 : vector<2x384xf32>
    %185 = arith.divf %183, %184 : vector<2x384xf32>
    %186 = vector.extract_strided_slice %185 {offsets = [0, 0], sizes = [2, 128], strides = [1, 1]} : vector<2x384xf32> to vector<2x128xf32>
    %187 = vector.extract_strided_slice %185 {offsets = [0, 128], sizes = [2, 128], strides = [1, 1]} : vector<2x384xf32> to vector<2x128xf32>
    %188 = vector.extract_strided_slice %185 {offsets = [0, 256], sizes = [2, 128], strides = [1, 1]} : vector<2x384xf32> to vector<2x128xf32>
    %189 = vector.extract_strided_slice %163 {offsets = [0, 384], sizes = [2, 128], strides = [1, 1]} : vector<2x512xf32> to vector<2x128xf32>
    %190 = math.tanh %189 : vector<2x128xf32>
    %191 = arith.mulf %187, %153 : vector<2x128xf32>
    %192 = arith.mulf %186, %190 : vector<2x128xf32>
    %193 = arith.addf %191, %192 : vector<2x128xf32>
    %194 = math.tanh %193 : vector<2x128xf32>
    %195 = arith.mulf %188, %194 : vector<2x128xf32>
    %196 = tpu.concatenate %179, %195 in 1 : vector<2x128xf32>, vector<2x128xf32> -> vector<2x256xf32>
    %c0_73 = arith.constant 0 : index
    %c0_74 = arith.constant 0 : index
    %197 = vector.load %arg4[%c0_73, %c0_74] : memref<256x1024xf32, #tpu.memory_space<vmem>>, vector<256x1024xf32>
    %cst_75 = arith.constant dense<0.000000e+00> : vector<2x1024xf32>
    %198 = tpu.matmul %196, %197, %cst_75 {dimension_numbers = #tpu.dot_dimension_numbers<[1], [0], [0], [1], [0, 0, 1, 1], [], []>} : vector<2x256xf32>, vector<256x1024xf32>, vector<2x1024xf32> -> vector<2x1024xf32>
    %c8 = arith.constant 8 : index
    %c0_76 = arith.constant 0 : index
    %199 = vector.load %arg11[%c8, %c0_76] : memref<16x512xf32, #tpu.memory_space<vmem>>, vector<2x512xf32>
    %200 = vector.extract_strided_slice %198 {offsets = [0, 0], sizes = [2, 512], strides = [1, 1]} : vector<2x1024xf32> to vector<2x512xf32>
    %201 = arith.addf %199, %200 : vector<2x512xf32>
    %202 = vector.extract_strided_slice %198 {offsets = [0, 512], sizes = [2, 512], strides = [1, 1]} : vector<2x1024xf32> to vector<2x512xf32>
    %203 = arith.addf %202, %57 : vector<2x512xf32>
    %204 = vector.extract_strided_slice %201 {offsets = [0, 0], sizes = [2, 384], strides = [1, 1]} : vector<2x512xf32> to vector<2x384xf32>
    %205 = arith.negf %204 : vector<2x384xf32>
    %206 = math.exp %205 : vector<2x384xf32>
    %cst_77 = arith.constant 1.000000e+00 : f32
    %207 = vector.broadcast %cst_77 : f32 to vector<2x384xf32>
    %208 = arith.addf %207, %206 : vector<2x384xf32>
    %209 = arith.divf %207, %208 : vector<2x384xf32>
    %210 = vector.extract_strided_slice %209 {offsets = [0, 0], sizes = [2, 128], strides = [1, 1]} : vector<2x384xf32> to vector<2x128xf32>
    %211 = vector.extract_strided_slice %209 {offsets = [0, 128], sizes = [2, 128], strides = [1, 1]} : vector<2x384xf32> to vector<2x128xf32>
    %212 = vector.extract_strided_slice %209 {offsets = [0, 256], sizes = [2, 128], strides = [1, 1]} : vector<2x384xf32> to vector<2x128xf32>
    %213 = vector.extract_strided_slice %201 {offsets = [0, 384], sizes = [2, 128], strides = [1, 1]} : vector<2x512xf32> to vector<2x128xf32>
    %214 = math.tanh %213 : vector<2x128xf32>
    %215 = arith.mulf %211, %177 : vector<2x128xf32>
    %216 = arith.mulf %210, %214 : vector<2x128xf32>
    %217 = arith.addf %215, %216 : vector<2x128xf32>
    %218 = math.tanh %217 : vector<2x128xf32>
    %219 = arith.mulf %212, %218 : vector<2x128xf32>
    %220 = vector.extract_strided_slice %203 {offsets = [0, 0], sizes = [2, 384], strides = [1, 1]} : vector<2x512xf32> to vector<2x384xf32>
    %221 = arith.negf %220 : vector<2x384xf32>
    %222 = math.exp %221 : vector<2x384xf32>
    %cst_78 = arith.constant 1.000000e+00 : f32
    %223 = vector.broadcast %cst_78 : f32 to vector<2x384xf32>
    %224 = arith.addf %223, %222 : vector<2x384xf32>
    %225 = arith.divf %223, %224 : vector<2x384xf32>
    %226 = vector.extract_strided_slice %225 {offsets = [0, 0], sizes = [2, 128], strides = [1, 1]} : vector<2x384xf32> to vector<2x128xf32>
    %227 = vector.extract_strided_slice %225 {offsets = [0, 128], sizes = [2, 128], strides = [1, 1]} : vector<2x384xf32> to vector<2x128xf32>
    %228 = vector.extract_strided_slice %225 {offsets = [0, 256], sizes = [2, 128], strides = [1, 1]} : vector<2x384xf32> to vector<2x128xf32>
    %229 = vector.extract_strided_slice %203 {offsets = [0, 384], sizes = [2, 128], strides = [1, 1]} : vector<2x512xf32> to vector<2x128xf32>
    %230 = math.tanh %229 : vector<2x128xf32>
    %231 = arith.mulf %227, %193 : vector<2x128xf32>
    %232 = arith.mulf %226, %230 : vector<2x128xf32>
    %233 = arith.addf %231, %232 : vector<2x128xf32>
    %234 = math.tanh %233 : vector<2x128xf32>
    %235 = arith.mulf %228, %234 : vector<2x128xf32>
    %236 = tpu.concatenate %219, %235 in 1 : vector<2x128xf32>, vector<2x128xf32> -> vector<2x256xf32>
    %c0_79 = arith.constant 0 : index
    %c0_80 = arith.constant 0 : index
    %237 = vector.load %arg4[%c0_79, %c0_80] : memref<256x1024xf32, #tpu.memory_space<vmem>>, vector<256x1024xf32>
    %cst_81 = arith.constant dense<0.000000e+00> : vector<2x1024xf32>
    %238 = tpu.matmul %236, %237, %cst_81 {dimension_numbers = #tpu.dot_dimension_numbers<[1], [0], [0], [1], [0, 0, 1, 1], [], []>} : vector<2x256xf32>, vector<256x1024xf32>, vector<2x1024xf32> -> vector<2x1024xf32>
    %c10 = arith.constant 10 : index
    %c0_82 = arith.constant 0 : index
    %239 = vector.load %arg11[%c10, %c0_82] : memref<16x512xf32, #tpu.memory_space<vmem>>, vector<2x512xf32>
    %240 = vector.extract_strided_slice %238 {offsets = [0, 0], sizes = [2, 512], strides = [1, 1]} : vector<2x1024xf32> to vector<2x512xf32>
    %241 = arith.addf %239, %240 : vector<2x512xf32>
    %242 = vector.extract_strided_slice %238 {offsets = [0, 512], sizes = [2, 512], strides = [1, 1]} : vector<2x1024xf32> to vector<2x512xf32>
    %243 = arith.addf %242, %57 : vector<2x512xf32>
    %244 = vector.extract_strided_slice %241 {offsets = [0, 0], sizes = [2, 384], strides = [1, 1]} : vector<2x512xf32> to vector<2x384xf32>
    %245 = arith.negf %244 : vector<2x384xf32>
    %246 = math.exp %245 : vector<2x384xf32>
    %cst_83 = arith.constant 1.000000e+00 : f32
    %247 = vector.broadcast %cst_83 : f32 to vector<2x384xf32>
    %248 = arith.addf %247, %246 : vector<2x384xf32>
    %249 = arith.divf %247, %248 : vector<2x384xf32>
    %250 = vector.extract_strided_slice %249 {offsets = [0, 0], sizes = [2, 128], strides = [1, 1]} : vector<2x384xf32> to vector<2x128xf32>
    %251 = vector.extract_strided_slice %249 {offsets = [0, 128], sizes = [2, 128], strides = [1, 1]} : vector<2x384xf32> to vector<2x128xf32>
    %252 = vector.extract_strided_slice %249 {offsets = [0, 256], sizes = [2, 128], strides = [1, 1]} : vector<2x384xf32> to vector<2x128xf32>
    %253 = vector.extract_strided_slice %241 {offsets = [0, 384], sizes = [2, 128], strides = [1, 1]} : vector<2x512xf32> to vector<2x128xf32>
    %254 = math.tanh %253 : vector<2x128xf32>
    %255 = arith.mulf %251, %217 : vector<2x128xf32>
    %256 = arith.mulf %250, %254 : vector<2x128xf32>
    %257 = arith.addf %255, %256 : vector<2x128xf32>
    %258 = math.tanh %257 : vector<2x128xf32>
    %259 = arith.mulf %252, %258 : vector<2x128xf32>
    %260 = vector.extract_strided_slice %243 {offsets = [0, 0], sizes = [2, 384], strides = [1, 1]} : vector<2x512xf32> to vector<2x384xf32>
    %261 = arith.negf %260 : vector<2x384xf32>
    %262 = math.exp %261 : vector<2x384xf32>
    %cst_84 = arith.constant 1.000000e+00 : f32
    %263 = vector.broadcast %cst_84 : f32 to vector<2x384xf32>
    %264 = arith.addf %263, %262 : vector<2x384xf32>
    %265 = arith.divf %263, %264 : vector<2x384xf32>
    %266 = vector.extract_strided_slice %265 {offsets = [0, 0], sizes = [2, 128], strides = [1, 1]} : vector<2x384xf32> to vector<2x128xf32>
    %267 = vector.extract_strided_slice %265 {offsets = [0, 128], sizes = [2, 128], strides = [1, 1]} : vector<2x384xf32> to vector<2x128xf32>
    %268 = vector.extract_strided_slice %265 {offsets = [0, 256], sizes = [2, 128], strides = [1, 1]} : vector<2x384xf32> to vector<2x128xf32>
    %269 = vector.extract_strided_slice %243 {offsets = [0, 384], sizes = [2, 128], strides = [1, 1]} : vector<2x512xf32> to vector<2x128xf32>
    %270 = math.tanh %269 : vector<2x128xf32>
    %271 = arith.mulf %267, %233 : vector<2x128xf32>
    %272 = arith.mulf %266, %270 : vector<2x128xf32>
    %273 = arith.addf %271, %272 : vector<2x128xf32>
    %274 = math.tanh %273 : vector<2x128xf32>
    %275 = arith.mulf %268, %274 : vector<2x128xf32>
    %276 = tpu.concatenate %259, %275 in 1 : vector<2x128xf32>, vector<2x128xf32> -> vector<2x256xf32>
    %c0_85 = arith.constant 0 : index
    %c0_86 = arith.constant 0 : index
    %277 = vector.load %arg4[%c0_85, %c0_86] : memref<256x1024xf32, #tpu.memory_space<vmem>>, vector<256x1024xf32>
    %cst_87 = arith.constant dense<0.000000e+00> : vector<2x1024xf32>
    %278 = tpu.matmul %276, %277, %cst_87 {dimension_numbers = #tpu.dot_dimension_numbers<[1], [0], [0], [1], [0, 0, 1, 1], [], []>} : vector<2x256xf32>, vector<256x1024xf32>, vector<2x1024xf32> -> vector<2x1024xf32>
    %c12 = arith.constant 12 : index
    %c0_88 = arith.constant 0 : index
    %279 = vector.load %arg11[%c12, %c0_88] : memref<16x512xf32, #tpu.memory_space<vmem>>, vector<2x512xf32>
    %280 = vector.extract_strided_slice %278 {offsets = [0, 0], sizes = [2, 512], strides = [1, 1]} : vector<2x1024xf32> to vector<2x512xf32>
    %281 = arith.addf %279, %280 : vector<2x512xf32>
    %282 = vector.extract_strided_slice %278 {offsets = [0, 512], sizes = [2, 512], strides = [1, 1]} : vector<2x1024xf32> to vector<2x512xf32>
    %283 = arith.addf %282, %57 : vector<2x512xf32>
    %284 = vector.extract_strided_slice %281 {offsets = [0, 0], sizes = [2, 384], strides = [1, 1]} : vector<2x512xf32> to vector<2x384xf32>
    %285 = arith.negf %284 : vector<2x384xf32>
    %286 = math.exp %285 : vector<2x384xf32>
    %cst_89 = arith.constant 1.000000e+00 : f32
    %287 = vector.broadcast %cst_89 : f32 to vector<2x384xf32>
    %288 = arith.addf %287, %286 : vector<2x384xf32>
    %289 = arith.divf %287, %288 : vector<2x384xf32>
    %290 = vector.extract_strided_slice %289 {offsets = [0, 0], sizes = [2, 128], strides = [1, 1]} : vector<2x384xf32> to vector<2x128xf32>
    %291 = vector.extract_strided_slice %289 {offsets = [0, 128], sizes = [2, 128], strides = [1, 1]} : vector<2x384xf32> to vector<2x128xf32>
    %292 = vector.extract_strided_slice %289 {offsets = [0, 256], sizes = [2, 128], strides = [1, 1]} : vector<2x384xf32> to vector<2x128xf32>
    %293 = vector.extract_strided_slice %281 {offsets = [0, 384], sizes = [2, 128], strides = [1, 1]} : vector<2x512xf32> to vector<2x128xf32>
    %294 = math.tanh %293 : vector<2x128xf32>
    %295 = arith.mulf %291, %257 : vector<2x128xf32>
    %296 = arith.mulf %290, %294 : vector<2x128xf32>
    %297 = arith.addf %295, %296 : vector<2x128xf32>
    %298 = math.tanh %297 : vector<2x128xf32>
    %299 = arith.mulf %292, %298 : vector<2x128xf32>
    %300 = vector.extract_strided_slice %283 {offsets = [0, 0], sizes = [2, 384], strides = [1, 1]} : vector<2x512xf32> to vector<2x384xf32>
    %301 = arith.negf %300 : vector<2x384xf32>
    %302 = math.exp %301 : vector<2x384xf32>
    %cst_90 = arith.constant 1.000000e+00 : f32
    %303 = vector.broadcast %cst_90 : f32 to vector<2x384xf32>
    %304 = arith.addf %303, %302 : vector<2x384xf32>
    %305 = arith.divf %303, %304 : vector<2x384xf32>
    %306 = vector.extract_strided_slice %305 {offsets = [0, 0], sizes = [2, 128], strides = [1, 1]} : vector<2x384xf32> to vector<2x128xf32>
    %307 = vector.extract_strided_slice %305 {offsets = [0, 128], sizes = [2, 128], strides = [1, 1]} : vector<2x384xf32> to vector<2x128xf32>
    %308 = vector.extract_strided_slice %305 {offsets = [0, 256], sizes = [2, 128], strides = [1, 1]} : vector<2x384xf32> to vector<2x128xf32>
    %309 = vector.extract_strided_slice %283 {offsets = [0, 384], sizes = [2, 128], strides = [1, 1]} : vector<2x512xf32> to vector<2x128xf32>
    %310 = math.tanh %309 : vector<2x128xf32>
    %311 = arith.mulf %307, %273 : vector<2x128xf32>
    %312 = arith.mulf %306, %310 : vector<2x128xf32>
    %313 = arith.addf %311, %312 : vector<2x128xf32>
    %314 = math.tanh %313 : vector<2x128xf32>
    %315 = arith.mulf %308, %314 : vector<2x128xf32>
    %316 = tpu.concatenate %299, %315 in 1 : vector<2x128xf32>, vector<2x128xf32> -> vector<2x256xf32>
    %c0_91 = arith.constant 0 : index
    %c0_92 = arith.constant 0 : index
    %317 = vector.load %arg4[%c0_91, %c0_92] : memref<256x1024xf32, #tpu.memory_space<vmem>>, vector<256x1024xf32>
    %cst_93 = arith.constant dense<0.000000e+00> : vector<2x1024xf32>
    %318 = tpu.matmul %316, %317, %cst_93 {dimension_numbers = #tpu.dot_dimension_numbers<[1], [0], [0], [1], [0, 0, 1, 1], [], []>} : vector<2x256xf32>, vector<256x1024xf32>, vector<2x1024xf32> -> vector<2x1024xf32>
    %c14 = arith.constant 14 : index
    %c0_94 = arith.constant 0 : index
    %319 = vector.load %arg11[%c14, %c0_94] : memref<16x512xf32, #tpu.memory_space<vmem>>, vector<2x512xf32>
    %320 = vector.extract_strided_slice %318 {offsets = [0, 0], sizes = [2, 512], strides = [1, 1]} : vector<2x1024xf32> to vector<2x512xf32>
    %321 = arith.addf %319, %320 : vector<2x512xf32>
    %322 = vector.extract_strided_slice %318 {offsets = [0, 512], sizes = [2, 512], strides = [1, 1]} : vector<2x1024xf32> to vector<2x512xf32>
    %323 = arith.addf %322, %57 : vector<2x512xf32>
    %324 = vector.extract_strided_slice %321 {offsets = [0, 0], sizes = [2, 384], strides = [1, 1]} : vector<2x512xf32> to vector<2x384xf32>
    %325 = arith.negf %324 : vector<2x384xf32>
    %326 = math.exp %325 : vector<2x384xf32>
    %cst_95 = arith.constant 1.000000e+00 : f32
    %327 = vector.broadcast %cst_95 : f32 to vector<2x384xf32>
    %328 = arith.addf %327, %326 : vector<2x384xf32>
    %329 = arith.divf %327, %328 : vector<2x384xf32>
    %330 = vector.extract_strided_slice %329 {offsets = [0, 0], sizes = [2, 128], strides = [1, 1]} : vector<2x384xf32> to vector<2x128xf32>
    %331 = vector.extract_strided_slice %329 {offsets = [0, 128], sizes = [2, 128], strides = [1, 1]} : vector<2x384xf32> to vector<2x128xf32>
    %332 = vector.extract_strided_slice %329 {offsets = [0, 256], sizes = [2, 128], strides = [1, 1]} : vector<2x384xf32> to vector<2x128xf32>
    %333 = vector.extract_strided_slice %321 {offsets = [0, 384], sizes = [2, 128], strides = [1, 1]} : vector<2x512xf32> to vector<2x128xf32>
    %334 = math.tanh %333 : vector<2x128xf32>
    %335 = arith.mulf %331, %297 : vector<2x128xf32>
    %336 = arith.mulf %330, %334 : vector<2x128xf32>
    %337 = arith.addf %335, %336 : vector<2x128xf32>
    %338 = math.tanh %337 : vector<2x128xf32>
    %339 = arith.mulf %332, %338 : vector<2x128xf32>
    %340 = vector.extract_strided_slice %323 {offsets = [0, 0], sizes = [2, 384], strides = [1, 1]} : vector<2x512xf32> to vector<2x384xf32>
    %341 = arith.negf %340 : vector<2x384xf32>
    %342 = math.exp %341 : vector<2x384xf32>
    %cst_96 = arith.constant 1.000000e+00 : f32
    %343 = vector.broadcast %cst_96 : f32 to vector<2x384xf32>
    %344 = arith.addf %343, %342 : vector<2x384xf32>
    %345 = arith.divf %343, %344 : vector<2x384xf32>
    %346 = vector.extract_strided_slice %345 {offsets = [0, 0], sizes = [2, 128], strides = [1, 1]} : vector<2x384xf32> to vector<2x128xf32>
    %347 = vector.extract_strided_slice %345 {offsets = [0, 128], sizes = [2, 128], strides = [1, 1]} : vector<2x384xf32> to vector<2x128xf32>
    %348 = vector.extract_strided_slice %345 {offsets = [0, 256], sizes = [2, 128], strides = [1, 1]} : vector<2x384xf32> to vector<2x128xf32>
    %349 = vector.extract_strided_slice %323 {offsets = [0, 384], sizes = [2, 128], strides = [1, 1]} : vector<2x512xf32> to vector<2x128xf32>
    %350 = math.tanh %349 : vector<2x128xf32>
    %351 = arith.mulf %347, %313 : vector<2x128xf32>
    %352 = arith.mulf %346, %350 : vector<2x128xf32>
    %353 = arith.addf %351, %352 : vector<2x128xf32>
    %354 = math.tanh %353 : vector<2x128xf32>
    %355 = arith.mulf %348, %354 : vector<2x128xf32>
    %356 = tpu.concatenate %339, %355 in 1 : vector<2x128xf32>, vector<2x128xf32> -> vector<2x256xf32>
    %c0_97 = arith.constant 0 : index
    %c512 = arith.constant 512 : index
    %357 = vector.load %arg4[%c0_97, %c512] : memref<256x1024xf32, #tpu.memory_space<vmem>>, vector<256x512xf32>
    %cst_98 = arith.constant dense<0.000000e+00> : vector<2x512xf32>
    %358 = tpu.matmul %356, %357, %cst_98 {dimension_numbers = #tpu.dot_dimension_numbers<[1], [0], [0], [1], [0, 0, 1, 1], [], []>} : vector<2x256xf32>, vector<256x512xf32>, vector<2x512xf32> -> vector<2x512xf32>
    %359 = arith.addf %358, %57 : vector<2x512xf32>
    %360 = vector.extract_strided_slice %359 {offsets = [0, 0], sizes = [2, 384], strides = [1, 1]} : vector<2x512xf32> to vector<2x384xf32>
    %361 = arith.negf %360 : vector<2x384xf32>
    %362 = math.exp %361 : vector<2x384xf32>
    %cst_99 = arith.constant 1.000000e+00 : f32
    %363 = vector.broadcast %cst_99 : f32 to vector<2x384xf32>
    %364 = arith.addf %363, %362 : vector<2x384xf32>
    %365 = arith.divf %363, %364 : vector<2x384xf32>
    %366 = vector.extract_strided_slice %365 {offsets = [0, 0], sizes = [2, 128], strides = [1, 1]} : vector<2x384xf32> to vector<2x128xf32>
    %367 = vector.extract_strided_slice %365 {offsets = [0, 128], sizes = [2, 128], strides = [1, 1]} : vector<2x384xf32> to vector<2x128xf32>
    %368 = vector.extract_strided_slice %365 {offsets = [0, 256], sizes = [2, 128], strides = [1, 1]} : vector<2x384xf32> to vector<2x128xf32>
    %369 = vector.extract_strided_slice %359 {offsets = [0, 384], sizes = [2, 128], strides = [1, 1]} : vector<2x512xf32> to vector<2x128xf32>
    %370 = math.tanh %369 : vector<2x128xf32>
    %371 = arith.mulf %367, %353 : vector<2x128xf32>
    %372 = arith.mulf %366, %370 : vector<2x128xf32>
    %373 = arith.addf %371, %372 : vector<2x128xf32>
    %374 = math.tanh %373 : vector<2x128xf32>
    %375 = arith.mulf %368, %374 : vector<2x128xf32>
    %c0_100 = arith.constant 0 : index
    %c0_101 = arith.constant 0 : index
    %376 = vector.load %arg6[%c0_100, %c0_101] : memref<128x64xf32, #tpu.memory_space<vmem>>, vector<128x64xf32>
    %cst_102 = arith.constant dense<0.000000e+00> : vector<2x64xf32>
    %377 = tpu.matmul %375, %376, %cst_102 {dimension_numbers = #tpu.dot_dimension_numbers<[1], [0], [0], [1], [0, 0, 1, 1], [], []>} : vector<2x128xf32>, vector<128x64xf32>, vector<2x64xf32> -> vector<2x64xf32>
    %c0_103 = arith.constant 0 : index
    %c0_104 = arith.constant 0 : index
    %378 = vector.load %arg7[%c0_103, %c0_104] : memref<1x64xf32, #tpu.memory_space<vmem>>, vector<1x64xf32>
    %379 = vector.broadcast %378 : vector<1x64xf32> to vector<2x64xf32>
    %380 = arith.addf %377, %379 : vector<2x64xf32>
    %cst_105 = arith.constant 0.000000e+00 : f32
    %381 = vector.broadcast %cst_105 : f32 to vector<2x64xf32>
    %382 = arith.maximumf %380, %381 : vector<2x64xf32>
    %c0_106 = arith.constant 0 : index
    %c0_107 = arith.constant 0 : index
    %383 = vector.load %arg8[%c0_106, %c0_107] : memref<1x64xf32, #tpu.memory_space<vmem>>, vector<1x64xf32>
    %384 = vector.broadcast %383 : vector<1x64xf32> to vector<2x64xf32>
    %385 = arith.mulf %382, %384 : vector<2x64xf32>
    %cst_108 = arith.constant dense<0.000000e+00> : vector<2xf32>
    %386 = vector.multi_reduction <add>, %385, %cst_108 [1] : vector<2x64xf32> to vector<2xf32>
    %387 = vector.shape_cast %386 : vector<2xf32> to vector<2x1xf32>
    %c0_109 = arith.constant 0 : index
    %c0_110 = arith.constant 0 : index
    %388 = vector.load %arg9[%c0_109, %c0_110] : memref<1x1xf32, #tpu.memory_space<vmem>>, vector<1x1xf32>
    %389 = vector.broadcast %388 : vector<1x1xf32> to vector<2x1xf32>
    %390 = arith.addf %387, %389 : vector<2x1xf32>
    %391 = arith.negf %390 : vector<2x1xf32>
    %392 = math.exp %391 : vector<2x1xf32>
    %cst_111 = arith.constant 1.000000e+00 : f32
    %393 = vector.broadcast %cst_111 : f32 to vector<2x1xf32>
    %394 = arith.addf %393, %392 : vector<2x1xf32>
    %395 = arith.divf %393, %394 : vector<2x1xf32>
    %c0_112 = arith.constant 0 : index
    %c0_113 = arith.constant 0 : index
    %396 = vector.load %arg10[%c0_112, %c0_113] : memref<2x1xf32, #tpu.memory_space<vmem>>, vector<2x1xf32>
    tpu.vector_store %arg10[%c0_112, %c0_113], %395 {strides = array<i32>} : memref<2x1xf32, #tpu.memory_space<vmem>>, vector<2x1xf32>,
    return
  }
}

</mosaic_0001>

<bundles_post_ra>
// kernel: tpu_custom_call.1
= control target key start
LH: loop header
LB: loop body
LE: loop exit
PB: predicated region body
PF: predicated region fallthrough
CT: control target
= control target key end

     0   :  { %s7730_s0 = inlined_call_operand.vmem [shape: s32[2,8], index: 0, kind: input, shape index: {}]   ;;  %s7731_s1 = inlined_call_operand.vmem [shape: f32[64,128], index: 1, kind: input, shape index: {}]   ;;  %s7732_s2 = inlined_call_operand.hbm [shape: f32[128,512], index: 2, kind: input, shape index: {}]   ;;  %s7733_s3 = inlined_call_operand.vmem [shape: f32[1,512], index: 3, kind: input, shape index: {}]   ;;  %s7734_s4 = inlined_call_operand.hbm [shape: f32[256,1024], index: 4, kind: input, shape index: {}]   ;;  %s7735_s5 = inlined_call_operand.vmem [shape: f32[1,512], index: 5, kind: input, shape index: {}]   ;;  %s7736_s6 = inlined_call_operand.vmem [shape: f32[128,64], index: 6, kind: input, shape index: {}]   ;;  %s7737_s7 = inlined_call_operand.vmem [shape: f32[1,64], index: 7, kind: input, shape index: {}]   ;;  %s7738_s8 = inlined_call_operand.vmem [shape: f32[1,64], index: 8, kind: input, shape index: {}]   ;;  %s7739_s9 = inlined_call_operand.<no memory space> [shape: f32[1,1], index: 9, kind: input, shape index: {}]   ;;  %s7740_s10 = inlined_call_operand.vmem [shape: f32[2,1], index: 10, kind: output, shape index: {}]  }
   0x1   :  { %v15_v0 = vstv %s7739_s9 }
   0x2   :  { %16 = vst [vmem:[#allocation3] sm:$0x1] %v15_v0 }
   0x3   :  { %17 = vsyncpa [#allocation6], 0 }
   0x4   :  { %18 = vsyncpa [#allocation5], 0  ;;  %s26_s17 = sshll.u32 %s7730_s0, 4  ;;  %s27_s17 = int_to_ptr.vmem [resolvable:$true] %s26_s17 }
   0x5   :  { %19 = vsyncpa [#allocation9], 0  ;;  %s5994_s18 = scalar_lea.vmem %s27_s17, 32  ;;  %p5999_p1 = scmp.lt.s32.totalorder %s27_s17, %s27_s17 }
   0x6   :  { %p5995_p0 = scmp.ne.s32.totalorder %s27_s17, %s5994_s18  ;;  %p6000_p2 = scmp.lt.s32.totalorder %s5994_s18, %s5994_s18 }
   0x8   :  { %p6001_p3 = por %p6000_p2, %p5999_p1 }
   0xa   :  { %p6002_p4 = pnand %p6001_p3, %p5995_p0 }
   0xc   :  { %6005 = shalt.err (!%p6002_p4)
}
   0xd   :  { %s6056_s19 = smov [#allocation4]   ;;  %s6057_s20 = smov [#allocation7]  }
   0xe   :  { %29 = dma.vmem_to_smem %s27_s17, 32, %s6056_s19, [#allocation6]  }
   0xf   :  { %s37_s9 = sshll.u32 %s6057_s20, 4  ;;  %s6006_s23 = scalar_lea.hbm %s7732_s2, 8192  ;;  %s38_s9 = int_to_ptr.vmem [resolvable:$true] %s37_s9 }
  0x10   :  { %p6007_p5 = scmp.ne.s32.totalorder %s7732_s2, %s6006_s23  ;;  %p6010_p6 = scmp.lt.u32.totalorder %s6006_s23, %s7732_s2 }
  0x12   :  { %p6012_p7 = pnand %p6010_p6, %p6007_p5 }
  0x14   :  { %6015 = shalt.err (!%p6012_p7)
}
  0x15   :  { %s6016_s27 = scalar_lea.vmem %s38_s9, 8192  ;;  %p6021_p9 = scmp.lt.s32.totalorder %s38_s9, %s38_s9 }
  0x16   :  { %p6017_p8 = scmp.ne.s32.totalorder %s38_s9, %s6016_s27  ;;  %p6022_p10 = scmp.lt.s32.totalorder %s6016_s27, %s6016_s27 }
  0x18   :  { %p6023_p11 = por %p6022_p10, %p6021_p9 }
  0x1a   :  { %p6024_p12 = pnand %p6023_p11, %p6017_p8 }
  0x1c   :  { %6027 = shalt.err (!%p6024_p12)
}
  0x1d   :  { %s6058_s28 = smov 512   ;;  %s6059_s29 = smov 32  }
  0x1e   :  { %43 = dma.hbm_to_vmem [thread:$0]  %s7732_s2, 8192, %s38_s9, [#allocation5], %s6058_s28, %s6058_s28, %s6059_s29  }
  0x1f   :  { %s6060_s12 = smov [#allocation8]   ;;  %s6028_s16 = scalar_lea.hbm %s7734_s4, 32768 }
  0x20   :  { %s51_s13 = sshll.u32 %s6060_s12, 4  ;;  %p6029_p13 = scmp.ne.s32.totalorder %s7734_s4, %s6028_s16  ;;  %s52_s13 = int_to_ptr.vmem [resolvable:$true] %s51_s13 }
  0x21   :  { %p6032_p0 = scmp.lt.u32.totalorder %s6028_s16, %s7734_s4 }
  0x23   :  { %p6034_p1 = pnand %p6032_p0, %p6029_p13 }
  0x25   :  { %6037 = shalt.err (!%p6034_p1)
}
  0x26   :  { %s6038_s21 = scalar_lea.vmem %s52_s13, 32768  ;;  %p6043_p3 = scmp.lt.s32.totalorder %s52_s13, %s52_s13 }
  0x27   :  { %p6039_p2 = scmp.ne.s32.totalorder %s52_s13, %s6038_s21  ;;  %p6044_p4 = scmp.lt.s32.totalorder %s6038_s21, %s6038_s21 }
  0x29   :  { %p6045_p5 = por %p6044_p4, %p6043_p3 }
  0x2b   :  { %p6046_p6 = pnand %p6045_p5, %p6039_p2 }
  0x2d   :  { %6049 = shalt.err (!%p6046_p6)
}
  0x2e   :  { %s6061_s2 = smov 1024   ;;  %s6062_s9 = smov 64  }
  0x2f   :  { %57 = dma.hbm_to_vmem [thread:$0]  %s7734_s4, 32768, %s52_s13, [#allocation9], %s6061_s2, %s6061_s2, %s6062_s9  }
  0x30   :  { %6050 = dma.done.wait [#allocation6], 32  }
  0x31   :  { %6051 = vsyncadd [#allocation6], 4294967264 }
  0x32   :  { %6052 = dma.done.wait [#allocation5], 8192  }
  0x33   :  { %6053 = vsyncadd [#allocation5], 4294959104 }
  0x34   :  { %6054 = dma.done.wait [#allocation9], 32768  }
  0x35   :  { %6055 = vsyncadd [#allocation9], 4294934528 }
  0x36   :  { %77 = sfence }
  0x37   :  { %v190_v1 = vld [vmem:[#allocation7 + $0x8] sm:$0xff]  ;;  %v189_v3 = vld [vmem:[#allocation7] sm:$0xff]  ;;  %v7741_v8 = vmov 0.0   ;;  %s6153_s4 = sld [smem:[#allocation4]]  ;;  %v192_v20 = vld [vmem:[#allocation7 + $0x18] sm:$0xff]  ;;  %s6157_s0 = sld [smem:[#allocation4 + $0x1]] }
  0x38   :  { %v194_v2 = vld [vmem:[#allocation7 + $0x28] sm:$0xff]  ;;  %v193_v5 = vld [vmem:[#allocation7 + $0x20] sm:$0xff]  ;;  %339 = vmatprep.mubr.f32.mxu0 %v7741_v8  ;;  %416 = vmatprep.mubr.f32.mxu1 %v7741_v8  ;;  %v196_v21 = vld [vmem:[#allocation7 + $0x38] sm:$0xff]  ;;  %s6155_s24 = sld [smem:[#allocation4 + $0x80]]  ;;  %s6159_s25 = sld [smem:[#allocation4 + $0x81]]  ;;  %vm168_vm0 = vcmask 1040384  }
  0x39   :  { %v3716_v4 = vpack.c.bf16 %v194_v2, %v190_v1  ;;  %v198_v6 = vld [vmem:[#allocation7 + $0x48] sm:$0xff]  ;;  %v3718_v9 = vpack.c.bf16 %v193_v5, %v189_v3  ;;  %v197_v11 = vld [vmem:[#allocation7 + $0x40] sm:$0xff]  ;;  %v3748_v23 = vpack.c.bf16 %v196_v21, %v192_v20  ;;  %v191_v24 = vld [vmem:[#allocation7 + $0x10] sm:$0xff]  ;;  %s6161_s26 = sld [smem:[#allocation4 + $0x2]]  ;;  %s6165_s28 = sld [smem:[#allocation4 + $0x3]]  ;;  %vm170_vm1 = vcmask 1041408  }
  0x3a   :  { %v202_v7 = vld [vmem:[#allocation7 + $0x68] sm:$0xff]  ;;  %v201_v12 = vld [vmem:[#allocation7 + $0x60] sm:$0xff]  ;;  %v195_v25 = vld [vmem:[#allocation7 + $0x30] sm:$0xff]  ;;  %s6163_s27 = sld [smem:[#allocation4 + $0x82]]  ;;  %s6175_s15 = sld [smem:[#allocation4 + $0x83]]  ;;  %vm172_vm2 = vcmask 1042432  }
  0x3b   :  { %v3720_v10 = vpack.c.bf16 %v202_v7, %v198_v6  ;;  %v206_v13 = vld [vmem:[#allocation7 + $0x88] sm:$0xff]  ;;  %3717 = vmatprep.subr.bf16.mxu0 %v3716_v4  ;;  %v3722_v15 = vpack.c.bf16 %v201_v12, %v197_v11  ;;  %v205_v16 = vld [vmem:[#allocation7 + $0x80] sm:$0xff]  ;;  %v3750_v26 = vpack.c.bf16 %v195_v25, %v191_v24  ;;  %3749 = vmatprep.subr.bf16.mxu1 %v3748_v23  ;;  %v200_v28 = vld [vmem:[#allocation7 + $0x58] sm:$0xff]  ;;  %vm174_vm3 = vcmask 1043456   ;;  %s6327_s30 = sld [smem:[#allocation4 + $0x4]]  ;;  %s6340_s12 = sld [smem:[#allocation4 + $0x5]] }
  0x3c   :  { %v210_v14 = vld [vmem:[#allocation7 + $0xa8] sm:$0xff]  ;;  %3719 = vmatpush1.bf16.msra.mxu0 %v3718_v9  ;;  %v209_v17 = vld [vmem:[#allocation7 + $0xa0] sm:$0xff]  ;;  %v204_v29 = vld [vmem:[#allocation7 + $0x78] sm:$0xff]  ;;  %vm176_vm4 = vcmask 1044480   ;;  %vm178_vm5 = vcmask 1045504   ;;  %vm180_vm6 = vcmask 1046528  }
  0x3d   :  { %3721 = vmatprep.subr.bf16.mxu0 %v3720_v10  ;;  %v3724_v18 = vpack.c.bf16 %v210_v14, %v206_v13  ;;  %v214_v19 = vld [vmem:[#allocation7 + $0xc8] sm:$0xff]  ;;  %v3726_v27 = vpack.c.bf16 %v209_v17, %v205_v16  ;;  %v199_v30 = vld [vmem:[#allocation7 + $0x50] sm:$0xff]  ;;  %v213_v32 = vld [vmem:[#allocation7 + $0xc0] sm:$0xff]  ;;  %3751 = vmatpush1.bf16.msra.mxu1 %v3750_v26  ;;  %v3752_v34 = vpack.c.bf16 %v204_v29, %v200_v28  ;;  %s85_s14 = scalar_lea.vmem %s7731_s1, %s6157_s0  ;;  %s79_s22 = scalar_lea.vmem %s7731_s1, %s6153_s4  ;;  %vm6065_vm7 = vmmov 0  }
  0x3e   :  { %v218_v22 = vld [vmem:[#allocation7 + $0xe8] sm:$0xff]  ;;  %v217_v33 = vld [vmem:[#allocation7 + $0xe0] sm:$0xff]  ;;  %v203_v35 = vld [vmem:[#allocation7 + $0x70] sm:$0xff]  ;;  %s82_s11 = scalar_lea.vmem %s7731_s1, %s6155_s24  ;;  %s88_s18 = scalar_lea.vmem %s7731_s1, %s6159_s25  ;;  %vm3554_vm8 = vcmask 517120   ;;  %vm3572_vm9 = vcmask 1024  }
  0x3f   :  { %v3728_v31 = vpack.c.bf16 %v218_v22, %v214_v19  ;;  %v222_v36 = vld [vmem:[#allocation7 + $0x108] sm:$0xff]  ;;  %v3754_v38 = vpack.c.bf16 %v203_v35, %v199_v30  ;;  %v208_v39 = vld [vmem:[#allocation7 + $0x98] sm:$0xff]  ;;  %3753 = vmatprep.subr.bf16.mxu1 %v3752_v34  ;;  %v207_v41 = vld [vmem:[#allocation7 + $0x90] sm:$0xff]  ;;  %v3730_v43 = vpack.c.bf16 %v217_v33, %v213_v32  ;;  %s91_s21 = scalar_lea.vmem %s7731_s1, %s6161_s26  ;;  %s97_s26 = scalar_lea.vmem %s7731_s1, %s6165_s28 }
  0x40   :  { %3723 = vmatpush1.bf16.msra.mxu0 %v3722_v15  ;;  %v226_v37 = vld [vmem:[#allocation7 + $0x128] sm:$0xff]  ;;  %v212_v40 = vld [vmem:[#allocation7 + $0xb8] sm:$0xff]  ;;  %v211_v42 = vld [vmem:[#allocation7 + $0xb0] sm:$0xff]  ;;  %s94_s0 = scalar_lea.vmem %s7731_s1, %s6163_s27  ;;  %s100_s29 = scalar_lea.vmem %s7731_s1, %s6175_s15 }
  0x41   :  { %3725 = vmatprep.subr.bf16.mxu0 %v3724_v18  ;;  %v221_v44 = vld [vmem:[#allocation7 + $0x100] sm:$0xff]  ;;  %v3756_v46 = vpack.c.bf16 %v212_v40, %v208_v39  ;;  %v3732_v47 = vpack.c.bf16 %v226_v37, %v222_v36  ;;  %3755 = vmatpush1.bf16.msra.mxu1 %v3754_v38  ;;  %v230_v48 = vld [vmem:[#allocation7 + $0x148] sm:$0xff]  ;;  %v3758_v49 = vpack.c.bf16 %v211_v42, %v207_v41  ;;  %v216_v50 = vld [vmem:[#allocation7 + $0xd8] sm:$0xff]  ;;  %s6345_s13 = sld [smem:[#allocation4 + $0x85]]  ;;  %s6354_s15 = sld [smem:[#allocation4 + $0x86]] }
  0x42   :  { %v225_v45 = vld [vmem:[#allocation7 + $0x120] sm:$0xff]  ;;  %v220_v51 = vld [vmem:[#allocation7 + $0xf8] sm:$0xff]  ;;  %v234_v52 = vld [vmem:[#allocation7 + $0x168] sm:$0xff]  ;;  %s6362_s16 = sld [smem:[#allocation4 + $0x7]]  ;;  %s103_s20 = scalar_lea.vmem %s7731_s1, %s6327_s30 }
  0x43   :  { %3757 = vmatprep.subr.bf16.mxu1 %v3756_v46  ;;  %v3760_v53 = vpack.c.bf16 %v220_v51, %v216_v50  ;;  %v215_v54 = vld [vmem:[#allocation7 + $0xd0] sm:$0xff]  ;;  %v229_v56 = vld [vmem:[#allocation7 + $0x140] sm:$0xff]  ;;  %v3734_v58 = vpack.c.bf16 %v225_v45, %v221_v44  ;;  %v238_v59 = vld [vmem:[#allocation7 + $0x188] sm:$0xff]  ;;  %v3736_v63 = vpack.c.bf16 %v234_v52, %v230_v48  ;;  %s6370_s17 = sld [smem:[#allocation4 + $0x87]]  ;;  %s109_s24 = scalar_lea.vmem %s7731_s1, %s6340_s12 }
  0x44   :  { %3727 = vmatpush1.bf16.msra.mxu0 %v3726_v27  ;;  %v219_v55 = vld [vmem:[#allocation7 + $0xf0] sm:$0xff]  ;;  %v233_v57 = vld [vmem:[#allocation7 + $0x160] sm:$0xff]  ;;  %v242_v60 = vld [vmem:[#allocation7 + $0x1a8] sm:$0xff] }
  0x45   :  { %3729 = vmatprep.subr.bf16.mxu0 %v3728_v31  ;;  %v224_v61 = vld [vmem:[#allocation7 + $0x118] sm:$0xff]  ;;  %3759 = vmatpush1.bf16.msra.mxu1 %v3758_v49  ;;  %v3762_v0 = vpack.c.bf16 %v219_v55, %v215_v54  ;;  %v223_v1 = vld [vmem:[#allocation7 + $0x110] sm:$0xff]  ;;  %v3738_v11 = vpack.c.bf16 %v233_v57, %v229_v56  ;;  %v237_v12 = vld [vmem:[#allocation7 + $0x180] sm:$0xff]  ;;  %v3740_v18 = vpack.c.bf16 %v242_v60, %v238_v59 }
  0x46   :  { %v228_v62 = vld [vmem:[#allocation7 + $0x138] sm:$0xff]  ;;  %v227_v2 = vld [vmem:[#allocation7 + $0x130] sm:$0xff]  ;;  %3761 = vmatprep.subr.bf16.mxu1 %v3760_v53  ;;  %v241_v19 = vld [vmem:[#allocation7 + $0x1a0] sm:$0xff] }
  0x47   :  { %v83_v3 = vld [vmem:[%s82_s11] sm:$0x1]  ;;  %v3764_v4 = vpack.c.bf16 %v228_v62, %v224_v61  ;;  %v246_v20 = vld [vmem:[#allocation7 + $0x1c8] sm:$0xff]  ;;  %v3766_v22 = vpack.c.bf16 %v227_v2, %v223_v1  ;;  %v231_v28 = vld [vmem:[#allocation7 + $0x150] sm:$0xff]  ;;  %v3742_v33 = vpack.c.bf16 %v241_v19, %v237_v12  ;;  %s6332_s11 = sld [smem:[#allocation4 + $0x84]]  ;;  %s112_s25 = scalar_lea.vmem %s7731_s1, %s6345_s13 }
  0x48   :  { %3731 = vmatpush1.bf16.msra.mxu0 %v3730_v43  ;;  %v86_v5 = vld [vmem:[%s85_s14] sm:$0x1]  ;;  %v127_v13 = vrot.slane %v83_v3, 7  ;;  %v250_v21 = vld [vmem:[#allocation7 + $0x1e8] sm:$0xff]  ;;  %v235_v29 = vld [vmem:[#allocation7 + $0x170] sm:$0xff]  ;;  %s6352_s14 = sld [smem:[#allocation4 + $0x6]]  ;;  %s118_s12 = scalar_lea.vmem %s7731_s1, %s6354_s15 }
  0x49   :  { %3733 = vmatprep.subr.bf16.mxu0 %v3732_v47  ;;  %v89_v6 = vld [vmem:[%s88_s18] sm:$0x1]  ;;  %v130_v14 = vrot.slane %v86_v5, 6  ;;  %3763 = vmatpush1.bf16.msra.mxu1 %v3762_v0  ;;  %v245_v34 = vld [vmem:[#allocation7 + $0x1c0] sm:$0xff]  ;;  %v3744_v36 = vpack.c.bf16 %v250_v21, %v246_v20  ;;  %v3770_v41 = vpack.c.bf16 %v235_v29, %v231_v28  ;;  %v239_v42 = vld [vmem:[#allocation7 + $0x190] sm:$0xff]  ;;  %s124_s15 = scalar_lea.vmem %s7731_s1, %s6370_s17 }
  0x4a   :  { %v92_v7 = vld [vmem:[%s91_s21] sm:$0x1]  ;;  %v133_v15 = vrot.slane %v89_v6, 5  ;;  %3765 = vmatprep.subr.bf16.mxu1 %v3764_v4  ;;  %v249_v37 = vld [vmem:[#allocation7 + $0x1e0] sm:$0xff]  ;;  %v243_v45 = vld [vmem:[#allocation7 + $0x1b0] sm:$0xff]  ;;  %s121_s21 = scalar_lea.vmem %s7731_s1, %s6362_s16 }
  0x4b   :  { %v80_v9 = vld [vmem:[%s79_s22] sm:$0x1]  ;;  %v136_v23 = vrot.slane %v92_v7, 4  ;;  %v488_v46 = vld [vmem:[#allocation8 + $0x8] sm:$0xff]  ;;  %v3746_v50 = vpack.c.bf16 %v249_v37, %v245_v34  ;;  %v3774_v53 = vpack.c.bf16 %v243_v45, %v239_v42  ;;  %v247_v54 = vld [vmem:[#allocation7 + $0x1d0] sm:$0xff] }
  0x4c   :  { %v95_v10 = vld [vmem:[%s94_s0] sm:$0x1]  ;;  %3735 = vmatpush1.bf16.msra.mxu0 %v3734_v58  ;;  %v169_v26 = vsel %vm168_vm0, %v80_v9, %v127_v13  ;;  %v496_v47 = vld [vmem:[#allocation8 + $0x48] sm:$0xff]  ;;  %v487_v56 = vld [vmem:[#allocation8] sm:$0xff] }
  0x4d   :  { %v232_v16 = vld [vmem:[#allocation7 + $0x158] sm:$0xff]  ;;  %3737 = vmatprep.subr.bf16.mxu0 %v3736_v63  ;;  %v139_v25 = vrot.slane %v95_v10, 3  ;;  %v171_v30 = vsel %vm170_vm1, %v169_v26, %v130_v14  ;;  %3767 = vmatpush1.bf16.msra.mxu1 %v3766_v22  ;;  %v6207_v55 = vpack.c.bf16 %v496_v47, %v488_v46  ;;  %v495_v57 = vld [vmem:[#allocation8 + $0x40] sm:$0xff]  ;;  %v251_v59 = vld [vmem:[#allocation7 + $0x1f0] sm:$0xff]  ;;  %s106_s9 = scalar_lea.vmem %s7731_s1, %s6332_s11 }
  0x4e   :  { %v236_v17 = vld [vmem:[#allocation7 + $0x178] sm:$0xff]  ;;  %v173_v35 = vsel %vm172_vm2, %v171_v30, %v133_v15  ;;  %v504_v60 = vld [vmem:[#allocation8 + $0x88] sm:$0xff]  ;;  %v6210_v1 = vpack.c.bf16 %v495_v57, %v487_v56  ;;  %v3778_v2 = vpack.c.bf16 %v251_v59, %v247_v54  ;;  %v489_v3 = vld [vmem:[#allocation8 + $0x10] sm:$0xff]  ;;  %s115_s28 = scalar_lea.vmem %s7731_s1, %s6352_s14 }
  0x4f   :  { %v98_v24 = vld [vmem:[%s97_s26] sm:$0x1]  ;;  %v3768_v27 = vpack.c.bf16 %v236_v17, %v232_v16  ;;  %v175_v40 = vsel %vm174_vm3, %v173_v35, %v136_v23  ;;  %8030 = vst [vmem:[#allocation13_spill] sm:$0xff] %v6207_v55  ;;  %v512_v61 = vld [vmem:[#allocation8 + $0xc8] sm:$0xff]  ;;  %v503_v5 = vld [vmem:[#allocation8 + $0x80] sm:$0xff] }
  0x50   :  { %v240_v31 = vld [vmem:[#allocation7 + $0x198] sm:$0xff]  ;;  %3739 = vmatpush1.bf16.msra.mxu0 %v3738_v11  ;;  %v142_v39 = vrot.slane %v98_v24, 2  ;;  %v177_v43 = vsel %vm176_vm4, %v175_v40, %v139_v25  ;;  %8031 = vst [vmem:[#allocation14_spill] sm:$0xff] %v6210_v1  ;;  %v6213_v4 = vpack.c.bf16 %v512_v61, %v504_v60  ;;  %v511_v6 = vld [vmem:[#allocation8 + $0xc0] sm:$0xff]  ;;  %v497_v9 = vld [vmem:[#allocation8 + $0x50] sm:$0xff] }
  0x51   :  { %v244_v32 = vld [vmem:[#allocation7 + $0x1b8] sm:$0xff]  ;;  %3741 = vmatprep.subr.bf16.mxu0 %v3740_v18  ;;  %3769 = vmatprep.subr.bf16.mxu1 %v3768_v27  ;;  %v520_v10 = vld [vmem:[#allocation8 + $0x108] sm:$0xff]  ;;  %v6218_v14 = vpack.c.bf16 %v511_v6, %v503_v5  ;;  %v6221_v15 = vpack.c.bf16 %v497_v9, %v489_v3  ;;  %v519_v17 = vld [vmem:[#allocation8 + $0x100] sm:$0xff] }
  0x52   :  { %v101_v38 = vld [vmem:[%s100_s29] sm:$0x1]  ;;  %v3772_v44 = vpack.c.bf16 %v244_v32, %v240_v31  ;;  %v179_v52 = vsel %vm178_vm5, %v177_v43, %v142_v39  ;;  %3771 = vmatpush1.bf16.msra.mxu1 %v3770_v41  ;;  %8032 = vst [vmem:[#allocation15_spill] sm:$0xff] %v6213_v4  ;;  %v528_v11 = vld [vmem:[#allocation8 + $0x148] sm:$0xff]  ;;  %v527_v18 = vld [vmem:[#allocation8 + $0x140] sm:$0xff] }
  0x53   :  { %v248_v48 = vld [vmem:[#allocation7 + $0x1d8] sm:$0xff]  ;;  %v145_v51 = vrot.slane %v101_v38, 1  ;;  %8034 = vst [vmem:[#allocation17_spill] sm:$0xff] %v6218_v14  ;;  %8035 = vst [vmem:[#allocation18_spill] sm:$0xff] %v6221_v15  ;;  %v6224_v16 = vpack.c.bf16 %v528_v11, %v520_v10  ;;  %v505_v20 = vld [vmem:[#allocation8 + $0x90] sm:$0xff]  ;;  %v6230_v24 = vpack.c.bf16 %v527_v18, %v519_v17 }
  0x54   :  { %v252_v49 = vld [vmem:[#allocation7 + $0x1f8] sm:$0xff]  ;;  %3743 = vmatpush1.bf16.msra.mxu0 %v3742_v33  ;;  %3773 = vmatprep.subr.bf16.mxu1 %v3772_v44  ;;  %v513_v21 = vld [vmem:[#allocation8 + $0xd0] sm:$0xff]  ;;  %v536_v30 = vld [vmem:[#allocation8 + $0x188] sm:$0xff] }
  0x55   :  { %3745 = vmatprep.subr.bf16.mxu0 %v3744_v36  ;;  %v3776_v58 = vpack.c.bf16 %v252_v49, %v248_v48  ;;  %v490_v62 = vld [vmem:[#allocation8 + $0x18] sm:$0xff]  ;;  %v181_v0 = vsel %vm180_vm6, %v179_v52, %v145_v51  ;;  %8036 = vst [vmem:[#allocation19_spill] sm:$0xff] %v6224_v16  ;;  %8038 = vst [vmem:[#allocation21_spill] sm:$0xff] %v6230_v24  ;;  %v6233_v25 = vpack.c.bf16 %v513_v21, %v505_v20  ;;  %v521_v27 = vld [vmem:[#allocation8 + $0x110] sm:$0xff] }
  0x56   :  { %v498_v63 = vld [vmem:[#allocation8 + $0x58] sm:$0xff]  ;;  %3775 = vmatpush1.bf16.msra.mxu1 %v3774_v53  ;;  %v529_v28 = vld [vmem:[#allocation8 + $0x150] sm:$0xff]  ;;  %v544_v31 = vld [vmem:[#allocation8 + $0x1c8] sm:$0xff] }
  0x57   :  { %3777 = vmatprep.subr.bf16.mxu1 %v3776_v58  ;;  %v6215_v7 = vpack.c.bf16 %v498_v63, %v490_v62  ;;  %v506_v12 = vld [vmem:[#allocation8 + $0x98] sm:$0xff]  ;;  %8039 = vst [vmem:[#allocation22_spill] sm:$0xff] %v6233_v25  ;;  %v6242_v29 = vpack.c.bf16 %v529_v28, %v521_v27  ;;  %v6246_v33 = vpack.c.bf16 %v544_v31, %v536_v30  ;;  %v535_v35 = vld [vmem:[#allocation8 + $0x180] sm:$0xff]  ;;  %v537_v39 = vld [vmem:[#allocation8 + $0x190] sm:$0xff] }
  0x58   :  { %3747 = vmatpush1.bf16.msra.mxu0 %v3746_v50  ;;  %v514_v13 = vld [vmem:[#allocation8 + $0xd8] sm:$0xff]  ;;  %v543_v36 = vld [vmem:[#allocation8 + $0x1c0] sm:$0xff]  ;;  %v545_v40 = vld [vmem:[#allocation8 + $0x1d0] sm:$0xff] }
  0x59   :  { %3781 = vmatprep.subr.bf16.mxu0 %v6207_v55  ;;  %8033 = vst [vmem:[#allocation16_spill] sm:$0xff] %v6215_v7  ;;  %v6227_v19 = vpack.c.bf16 %v514_v13, %v506_v12  ;;  %v522_v22 = vld [vmem:[#allocation8 + $0x118] sm:$0xff]  ;;  %8041 = vst [vmem:[#allocation24_spill] sm:$0xff] %v6242_v29  ;;  %v6250_v38 = vpack.c.bf16 %v543_v36, %v535_v35  ;;  %v6253_v41 = vpack.c.bf16 %v545_v40, %v537_v39  ;;  %v552_v42 = vld [vmem:[#allocation8 + $0x208] sm:$0xff] }
  0x5a   :  { %3779 = vmatpush1.bf16.msra.mxu1 %v3778_v2  ;;  %v530_v23 = vld [vmem:[#allocation8 + $0x158] sm:$0xff]  ;;  %8042 = vst [vmem:[#allocation25_spill] sm:$0xff] %v6246_v33  ;;  %v560_v43 = vld [vmem:[#allocation8 + $0x248] sm:$0xff]  ;;  %v551_v47 = vld [vmem:[#allocation8 + $0x200] sm:$0xff] }
  0x5b   :  { %340 = vmatmul.mubr.f32.vlgmr.msra.gmra.mrb[0].mxu0 %v181_v0  ;;  %3845 = vmatprep.subr.bf16.mxu1 %v6215_v7  ;;  %8037 = vst [vmem:[#allocation20_spill] sm:$0xff] %v6227_v19  ;;  %v6237_v26 = vpack.c.bf16 %v530_v23, %v522_v22  ;;  %v538_v32 = vld [vmem:[#allocation8 + $0x198] sm:$0xff]  ;;  %8044 = vst [vmem:[#allocation27_spill] sm:$0xff] %v6250_v38  ;;  %v6258_v44 = vpack.c.bf16 %v560_v43, %v552_v42  ;;  %v559_v49 = vld [vmem:[#allocation8 + $0x240] sm:$0xff] }
  0x5c   :  { %3783 = vmatpush1.bf16.msra.mxu0 %v6210_v1  ;;  %345 = vmatprep.mubr.f32.mxu0 %v7741_v8  ;;  %v546_v34 = vld [vmem:[#allocation8 + $0x1d8] sm:$0xff]  ;;  %8045 = vst [vmem:[#allocation28_spill] sm:$0xff] %v6253_v41  ;;  %v553_v50 = vld [vmem:[#allocation8 + $0x210] sm:$0xff]  ;;  %v6263_v52 = vpack.c.bf16 %v559_v49, %v551_v47  ;;  %v568_v54 = vld [vmem:[#allocation8 + $0x288] sm:$0xff] }
  0x5d   :  { %3785 = vmatprep.subr.bf16.mxu0 %v6213_v4  ;;  %417 = vmatmul.mubr.f32.vlgmr.msra.gmra.mrb[0].mxu1 %v181_v0  ;;  %8040 = vst [vmem:[#allocation23_spill] sm:$0xff] %v6237_v26  ;;  %v6248_v37 = vpack.c.bf16 %v546_v34, %v538_v32  ;;  %8046 = vst [vmem:[#allocation29_spill] sm:$0xff] %v6258_v44  ;;  %v554_v45 = vld [vmem:[#allocation8 + $0x218] sm:$0xff]  ;;  %v561_v51 = vld [vmem:[#allocation8 + $0x250] sm:$0xff] }
  0x5e   :  { %3847 = vmatpush1.bf16.msra.mxu1 %v6221_v15  ;;  %422 = vmatprep.mubr.f32.mxu1 %v7741_v8  ;;  %v562_v46 = vld [vmem:[#allocation8 + $0x258] sm:$0xff]  ;;  %8048 = vst [vmem:[#allocation31_spill] sm:$0xff] %v6263_v52  ;;  %v6265_v53 = vpack.c.bf16 %v561_v51, %v553_v50  ;;  %v576_v56 = vld [vmem:[#allocation8 + $0x2c8] sm:$0xff]  ;;  %v567_v60 = vld [vmem:[#allocation8 + $0x280] sm:$0xff] }
  0x5f   :  { %3849 = vmatprep.subr.bf16.mxu1 %v6227_v19  ;;  %8043 = vst [vmem:[#allocation26_spill] sm:$0xff] %v6248_v37  ;;  %v6260_v48 = vpack.c.bf16 %v562_v46, %v554_v45  ;;  %v570_v57 = vld [vmem:[#allocation8 + $0x298] sm:$0xff]  ;;  %v6270_v58 = vpack.c.bf16 %v576_v56, %v568_v54  ;;  %v575_v61 = vld [vmem:[#allocation8 + $0x2c0] sm:$0xff]  ;;  %v569_v0 = vld [vmem:[#allocation8 + $0x290] sm:$0xff] }
  0x60   :  { %3787 = vmatpush1.bf16.msra.mxu0 %v6218_v14  ;;  %8049 = vst [vmem:[#allocation32_spill] sm:$0xff] %v6265_v53  ;;  %v578_v59 = vld [vmem:[#allocation8 + $0x2d8] sm:$0xff]  ;;  %v6274_v63 = vpack.c.bf16 %v575_v61, %v567_v60  ;;  %v577_v2 = vld [vmem:[#allocation8 + $0x2d0] sm:$0xff]  ;;  %v584_v5 = vld [vmem:[#allocation8 + $0x308] sm:$0xff] }
  0x61   :  { %3789 = vmatprep.subr.bf16.mxu0 %v6224_v16  ;;  %8047 = vst [vmem:[#allocation30_spill] sm:$0xff] %v6260_v48  ;;  %8050 = vst [vmem:[#allocation33_spill] sm:$0xff] %v6270_v58  ;;  %v6272_v62 = vpack.c.bf16 %v578_v59, %v570_v57  ;;  %v6277_v3 = vpack.c.bf16 %v577_v2, %v569_v0  ;;  %v592_v6 = vld [vmem:[#allocation8 + $0x348] sm:$0xff]  ;;  %v586_v9 = vld [vmem:[#allocation8 + $0x318] sm:$0xff] }
  0x62   :  { %3851 = vmatpush1.bf16.msra.mxu1 %v6233_v25  ;;  %8052 = vst [vmem:[#allocation35_spill] sm:$0xff] %v6274_v63  ;;  %v6282_v10 = vpack.c.bf16 %v592_v6, %v584_v5  ;;  %v594_v11 = vld [vmem:[#allocation8 + $0x358] sm:$0xff]  ;;  %v583_v12 = vld [vmem:[#allocation8 + $0x300] sm:$0xff]  ;;  %v585_v20 = vld [vmem:[#allocation8 + $0x310] sm:$0xff] }
  0x63   :  { %3853 = vmatprep.subr.bf16.mxu1 %v6237_v26  ;;  %8051 = vst [vmem:[#allocation34_spill] sm:$0xff] %v6272_v62  ;;  %8053 = vst [vmem:[#allocation36_spill] sm:$0xff] %v6277_v3  ;;  %v591_v13 = vld [vmem:[#allocation8 + $0x340] sm:$0xff]  ;;  %v6284_v17 = vpack.c.bf16 %v594_v11, %v586_v9  ;;  %v593_v21 = vld [vmem:[#allocation8 + $0x350] sm:$0xff] }
  0x64   :  { %3791 = vmatpush1.bf16.msra.mxu0 %v6230_v24  ;;  %8054 = vst [vmem:[#allocation37_spill] sm:$0xff] %v6282_v10  ;;  %v6286_v18 = vpack.c.bf16 %v591_v13, %v583_v12  ;;  %v6289_v22 = vpack.c.bf16 %v593_v21, %v585_v20  ;;  %v600_v23 = vld [vmem:[#allocation8 + $0x388] sm:$0xff]  ;;  %v602_v28 = vld [vmem:[#allocation8 + $0x398] sm:$0xff]  ;;  %v599_v32 = vld [vmem:[#allocation8 + $0x380] sm:$0xff] }
  0x65   :  { %3793 = vmatprep.subr.bf16.mxu0 %v6246_v33  ;;  %8055 = vst [vmem:[#allocation38_spill] sm:$0xff] %v6284_v17  ;;  %v608_v27 = vld [vmem:[#allocation8 + $0x3c8] sm:$0xff]  ;;  %v610_v31 = vld [vmem:[#allocation8 + $0x3d8] sm:$0xff]  ;;  %v607_v34 = vld [vmem:[#allocation8 + $0x3c0] sm:$0xff] }
  0x66   :  { %3855 = vmatpush1.bf16.msra.mxu1 %v6242_v29  ;;  %8056 = vst [vmem:[#allocation39_spill] sm:$0xff] %v6286_v18  ;;  %8057 = vst [vmem:[#allocation40_spill] sm:$0xff] %v6289_v22  ;;  %v6294_v30 = vpack.c.bf16 %v608_v27, %v600_v23  ;;  %v6296_v35 = vpack.c.bf16 %v610_v31, %v602_v28  ;;  %v6298_v36 = vpack.c.bf16 %v607_v34, %v599_v32  ;;  %v601_v39 = vld [vmem:[#allocation8 + $0x390] sm:$0xff]  ;;  %v616_v43 = vld [vmem:[#allocation8 + $0x408] sm:$0xff] }
  0x67   :  { %3857 = vmatprep.subr.bf16.mxu1 %v6248_v37  ;;  %v609_v40 = vld [vmem:[#allocation8 + $0x3d0] sm:$0xff]  ;;  %v624_v45 = vld [vmem:[#allocation8 + $0x448] sm:$0xff]  ;;  %v618_v46 = vld [vmem:[#allocation8 + $0x418] sm:$0xff] }
  0x68   :  { %3795 = vmatpush1.bf16.msra.mxu0 %v6250_v38  ;;  %8058 = vst [vmem:[#allocation41_spill] sm:$0xff] %v6294_v30  ;;  %8059 = vst [vmem:[#allocation42_spill] sm:$0xff] %v6296_v35  ;;  %v6301_v42 = vpack.c.bf16 %v609_v40, %v601_v39  ;;  %v6306_v47 = vpack.c.bf16 %v624_v45, %v616_v43  ;;  %v626_v49 = vld [vmem:[#allocation8 + $0x458] sm:$0xff]  ;;  %v615_v50 = vld [vmem:[#allocation8 + $0x400] sm:$0xff] }
  0x69   :  { %3797 = vmatprep.subr.bf16.mxu0 %v6258_v44  ;;  %8060 = vst [vmem:[#allocation43_spill] sm:$0xff] %v6298_v36  ;;  %v623_v51 = vld [vmem:[#allocation8 + $0x440] sm:$0xff]  ;;  %v6308_v54 = vpack.c.bf16 %v626_v49, %v618_v46  ;;  %v617_v57 = vld [vmem:[#allocation8 + $0x410] sm:$0xff]  ;;  %v632_v61 = vld [vmem:[#allocation8 + $0x488] sm:$0xff] }
  0x6a   :  { %3859 = vmatpush1.bf16.msra.mxu1 %v6253_v41  ;;  %8061 = vst [vmem:[#allocation44_spill] sm:$0xff] %v6301_v42  ;;  %8062 = vst [vmem:[#allocation45_spill] sm:$0xff] %v6306_v47  ;;  %v6310_v56 = vpack.c.bf16 %v623_v51, %v615_v50  ;;  %v625_v59 = vld [vmem:[#allocation8 + $0x450] sm:$0xff]  ;;  %v640_v0 = vld [vmem:[#allocation8 + $0x4c8] sm:$0xff] }
  0x6b   :  { %3861 = vmatprep.subr.bf16.mxu1 %v6260_v48  ;;  %8063 = vst [vmem:[#allocation46_spill] sm:$0xff] %v6308_v54  ;;  %v6313_v60 = vpack.c.bf16 %v625_v59, %v617_v57  ;;  %v634_v2 = vld [vmem:[#allocation8 + $0x498] sm:$0xff]  ;;  %v6318_v5 = vpack.c.bf16 %v640_v0, %v632_v61  ;;  %v631_v9 = vld [vmem:[#allocation8 + $0x480] sm:$0xff]  ;;  %v633_v20 = vld [vmem:[#allocation8 + $0x490] sm:$0xff] }
  0x6c   :  { %3799 = vmatpush1.bf16.msra.mxu0 %v6263_v52  ;;  %8064 = vst [vmem:[#allocation47_spill] sm:$0xff] %v6310_v56  ;;  %v642_v6 = vld [vmem:[#allocation8 + $0x4d8] sm:$0xff]  ;;  %v639_v11 = vld [vmem:[#allocation8 + $0x4c0] sm:$0xff]  ;;  %v641_v21 = vld [vmem:[#allocation8 + $0x4d0] sm:$0xff] }
  0x6d   :  { %3801 = vmatprep.subr.bf16.mxu0 %v6270_v58  ;;  %8065 = vst [vmem:[#allocation48_spill] sm:$0xff] %v6313_v60  ;;  %8066 = vst [vmem:[#allocation49_spill] sm:$0xff] %v6318_v5  ;;  %v6320_v12 = vpack.c.bf16 %v642_v6, %v634_v2  ;;  %v6322_v13 = vpack.c.bf16 %v639_v11, %v631_v9  ;;  %v6325_v23 = vpack.c.bf16 %v641_v21, %v633_v20  ;;  %v648_v27 = vld [vmem:[#allocation8 + $0x508] sm:$0xff]  ;;  %v650_v31 = vld [vmem:[#allocation8 + $0x518] sm:$0xff] }
  0x6e   :  { %3863 = vmatpush1.bf16.msra.mxu1 %v6265_v53  ;;  %v656_v28 = vld [vmem:[#allocation8 + $0x548] sm:$0xff]  ;;  %v658_v34 = vld [vmem:[#allocation8 + $0x558] sm:$0xff]  ;;  %v647_v39 = vld [vmem:[#allocation8 + $0x500] sm:$0xff] }
  0x6f   :  { %3865 = vmatprep.subr.bf16.mxu1 %v6272_v62  ;;  %8067 = vst [vmem:[#allocation50_spill] sm:$0xff] %v6320_v12  ;;  %8068 = vst [vmem:[#allocation51_spill] sm:$0xff] %v6322_v13  ;;  %v6330_v32 = vpack.c.bf16 %v656_v28, %v648_v27  ;;  %v655_v40 = vld [vmem:[#allocation8 + $0x540] sm:$0xff]  ;;  %v6336_v43 = vpack.c.bf16 %v658_v34, %v650_v31  ;;  %v649_v46 = vld [vmem:[#allocation8 + $0x510] sm:$0xff] }
  0x70   :  { %3803 = vmatpush1.bf16.msra.mxu0 %v6274_v63  ;;  %8069 = vst [vmem:[#allocation52_spill] sm:$0xff] %v6325_v23  ;;  %v6338_v45 = vpack.c.bf16 %v655_v40, %v647_v39  ;;  %v657_v49 = vld [vmem:[#allocation8 + $0x550] sm:$0xff]  ;;  %v664_v50 = vld [vmem:[#allocation8 + $0x588] sm:$0xff]  ;;  %v666_v59 = vld [vmem:[#allocation8 + $0x598] sm:$0xff] }
  0x71   :  { %3805 = vmatprep.subr.bf16.mxu0 %v6282_v10  ;;  %8070 = vst [vmem:[#allocation53_spill] sm:$0xff] %v6330_v32  ;;  %8071 = vst [vmem:[#allocation54_spill] sm:$0xff] %v6336_v43  ;;  %v6343_v51 = vpack.c.bf16 %v657_v49, %v649_v46  ;;  %v672_v57 = vld [vmem:[#allocation8 + $0x5c8] sm:$0xff]  ;;  %v674_v61 = vld [vmem:[#allocation8 + $0x5d8] sm:$0xff] }
  0x72   :  { %3867 = vmatpush1.bf16.msra.mxu1 %v6277_v3  ;;  %8072 = vst [vmem:[#allocation55_spill] sm:$0xff] %v6338_v45  ;;  %v6348_v0 = vpack.c.bf16 %v672_v57, %v664_v50  ;;  %v6350_v2 = vpack.c.bf16 %v674_v61, %v666_v59  ;;  %v663_v6 = vld [vmem:[#allocation8 + $0x580] sm:$0xff]  ;;  %v665_v11 = vld [vmem:[#allocation8 + $0x590] sm:$0xff]  ;;  %v680_v21 = vld [vmem:[#allocation8 + $0x608] sm:$0xff] }
  0x73   :  { %3869 = vmatprep.subr.bf16.mxu1 %v6284_v17  ;;  %8073 = vst [vmem:[#allocation56_spill] sm:$0xff] %v6343_v51  ;;  %v671_v9 = vld [vmem:[#allocation8 + $0x5c0] sm:$0xff]  ;;  %v673_v20 = vld [vmem:[#allocation8 + $0x5d0] sm:$0xff]  ;;  %v688_v27 = vld [vmem:[#allocation8 + $0x648] sm:$0xff] }
  0x74   :  { %3807 = vmatpush1.bf16.msra.mxu0 %v6286_v18  ;;  %8074 = vst [vmem:[#allocation57_spill] sm:$0xff] %v6348_v0  ;;  %8075 = vst [vmem:[#allocation58_spill] sm:$0xff] %v6350_v2  ;;  %v6358_v28 = vpack.c.bf16 %v671_v9, %v663_v6  ;;  %v6360_v31 = vpack.c.bf16 %v673_v20, %v665_v11  ;;  %v682_v34 = vld [vmem:[#allocation8 + $0x618] sm:$0xff]  ;;  %v679_v40 = vld [vmem:[#allocation8 + $0x600] sm:$0xff]  ;;  %v6366_v46 = vpack.c.bf16 %v688_v27, %v680_v21 }
  0x75   :  { %3809 = vmatprep.subr.bf16.mxu0 %v6294_v30  ;;  %v690_v39 = vld [vmem:[#allocation8 + $0x658] sm:$0xff]  ;;  %v687_v50 = vld [vmem:[#allocation8 + $0x640] sm:$0xff]  ;;  %v681_v57 = vld [vmem:[#allocation8 + $0x610] sm:$0xff] }
  0x76   :  { %3871 = vmatpush1.bf16.msra.mxu1 %v6289_v22  ;;  %8076 = vst [vmem:[#allocation59_spill] sm:$0xff] %v6358_v28  ;;  %8077 = vst [vmem:[#allocation60_spill] sm:$0xff] %v6360_v31  ;;  %v6368_v49 = vpack.c.bf16 %v690_v39, %v682_v34  ;;  %v689_v59 = vld [vmem:[#allocation8 + $0x650] sm:$0xff]  ;;  %v696_v61 = vld [vmem:[#allocation8 + $0x688] sm:$0xff]  ;;  %v6378_v20 = vpack.c.bf16 %v687_v50, %v679_v40 }
  0x77   :  { %3873 = vmatprep.subr.bf16.mxu1 %v6296_v35  ;;  %8078 = vst [vmem:[#allocation61_spill] sm:$0xff] %v6366_v46  ;;  %v704_v6 = vld [vmem:[#allocation8 + $0x6c8] sm:$0xff]  ;;  %v698_v9 = vld [vmem:[#allocation8 + $0x698] sm:$0xff]  ;;  %v6380_v21 = vpack.c.bf16 %v689_v59, %v681_v57  ;;  %v695_v27 = vld [vmem:[#allocation8 + $0x680] sm:$0xff] }
  0x78   :  { %3811 = vmatpush1.bf16.msra.mxu0 %v6298_v36  ;;  %8079 = vst [vmem:[#allocation62_spill] sm:$0xff] %v6368_v49  ;;  %v706_v11 = vld [vmem:[#allocation8 + $0x6d8] sm:$0xff]  ;;  %8080 = vst [vmem:[#allocation63_spill] sm:$0xff] %v6378_v20  ;;  %v703_v34 = vld [vmem:[#allocation8 + $0x6c0] sm:$0xff]  ;;  %v6392_v39 = vpack.c.bf16 %v704_v6, %v696_v61 }
  0x79   :  { %3813 = vmatprep.subr.bf16.mxu0 %v6306_v47  ;;  %8081 = vst [vmem:[#allocation64_spill] sm:$0xff] %v6380_v21  ;;  %v6394_v40 = vpack.c.bf16 %v706_v11, %v698_v9  ;;  %v697_v50 = vld [vmem:[#allocation8 + $0x690] sm:$0xff]  ;;  %v712_v59 = vld [vmem:[#allocation8 + $0x708] sm:$0xff]  ;;  %v711_v61 = vld [vmem:[#allocation8 + $0x700] sm:$0xff] }
  0x7a   :  { %3875 = vmatpush1.bf16.msra.mxu1 %v6301_v42  ;;  %8082 = vst [vmem:[#allocation65_spill] sm:$0xff] %v6392_v39  ;;  %v705_v57 = vld [vmem:[#allocation8 + $0x6d0] sm:$0xff]  ;;  %v720_v8 = vld [vmem:[#allocation8 + $0x748] sm:$0xff]  ;;  %v719_v6 = vld [vmem:[#allocation8 + $0x740] sm:$0xff] }
  0x7b   :  { %3877 = vmatprep.subr.bf16.mxu1 %v6308_v54  ;;  %8083 = vst [vmem:[#allocation66_spill] sm:$0xff] %v6394_v40  ;;  %v713_v9 = vld [vmem:[#allocation8 + $0x710] sm:$0xff] }
  0x7c   :  { %3815 = vmatpush1.bf16.msra.mxu0 %v6310_v56  ;;  %v721_v11 = vld [vmem:[#allocation8 + $0x750] sm:$0xff] }
  0x7d   :  { %3817 = vmatprep.subr.bf16.mxu0 %v6318_v5  ;;  %v730_v5 = vld [vmem:[#allocation8 + $0x798] sm:$0xff] }
  0x7e   :  { %3879 = vmatpush1.bf16.msra.mxu1 %v6313_v60  ;;  %v502_v60 = vld [vmem:[#allocation8 + $0x78] sm:$0xff] }
  0x7f   :  { %3881 = vmatprep.subr.bf16.mxu1 %v6320_v12  ;;  %v125_v12 = vld [vmem:[%s124_s15] sm:$0x1] }
  0x80   :  { %3819 = vmatpush1.bf16.msra.mxu0 %v6322_v13  ;;  %v736_v13 = vld [vmem:[#allocation8 + $0x7c8] sm:$0xff] }
  0x81   :  { %3821 = vmatprep.subr.bf16.mxu0 %v6330_v32 }
  0x82   :  { %3883 = vmatpush1.bf16.msra.mxu1 %v6325_v23  ;;  %v728_v23 = vld [vmem:[#allocation8 + $0x788] sm:$0xff] }
  0x83   :  { %3885 = vmatprep.subr.bf16.mxu1 %v6336_v43  ;;  %v6424_v43 = vpack.c.bf16 %v720_v8, %v712_v59  ;;  %v6435_v8 = vpack.c.bf16 %v719_v6, %v711_v61  ;;  %v729_v61 = vld [vmem:[#allocation8 + $0x790] sm:$0xff] }
  0x84   :  { %3823 = vmatpush1.bf16.msra.mxu0 %v6338_v45  ;;  %v116_v45 = vld [vmem:[%s115_s28] sm:$0x1]  ;;  %v737_v6 = vld [vmem:[#allocation8 + $0x7d0] sm:$0xff] }
  0x85   :  { %3825 = vmatprep.subr.bf16.mxu0 %v6348_v0  ;;  %v110_v0 = vld [vmem:[%s109_s24] sm:$0x1]  ;;  %8086 = vst [vmem:[#allocation69_spill] sm:$0xff] %v6424_v43  ;;  %8088 = vst [vmem:[#allocation71_spill] sm:$0xff] %v6435_v8 }
  0x86   :  { %3887 = vmatpush1.bf16.msra.mxu1 %v6343_v51  ;;  %v113_v51 = vld [vmem:[%s112_s25] sm:$0x1] }
  0x87   :  { %3889 = vmatprep.subr.bf16.mxu1 %v6350_v2  ;;  %v6416_v2 = vpack.c.bf16 %v705_v57, %v697_v50  ;;  %v122_v50 = vld [vmem:[%s121_s21] sm:$0x1]  ;;  %v154_v32 = vrot.slane %v113_v51, 5 }
  0x88   :  { %3827 = vmatpush1.bf16.msra.mxu0 %v6358_v28  ;;  %v6414_v28 = vpack.c.bf16 %v703_v34, %v695_v27  ;;  %v104_v27 = vld [vmem:[%s103_s20] sm:$0x1]  ;;  %v163_v51 = vrot.slane %v122_v50, 2 }
  0x89   :  { %3829 = vmatprep.subr.bf16.mxu0 %v6366_v46  ;;  %v722_v46 = vld [vmem:[#allocation8 + $0x758] sm:$0xff]  ;;  %8085 = vst [vmem:[#allocation68_spill] sm:$0xff] %v6416_v2 }
  0x8a   :  { %3891 = vmatpush1.bf16.msra.mxu1 %v6360_v31  ;;  %v714_v31 = vld [vmem:[#allocation8 + $0x718] sm:$0xff]  ;;  %8084 = vst [vmem:[#allocation67_spill] sm:$0xff] %v6414_v28 }
  0x8b   :  { %3893 = vmatprep.subr.bf16.mxu1 %v6368_v49  ;;  %v107_v49 = vld [vmem:[%s106_s9] sm:$0x1] }
  0x8c   :  { %3831 = vmatpush1.bf16.msra.mxu0 %v6378_v20  ;;  %v6426_v20 = vpack.c.bf16 %v722_v46, %v714_v31  ;;  %v119_v34 = vld [vmem:[%s118_s12] sm:$0x1]  ;;  %v148_v57 = vrot.slane %v107_v49, 7  ;;  %v6437_v31 = vpack.c.bf16 %v721_v11, %v713_v9  ;;  %v727_v49 = vld [vmem:[#allocation8 + $0x780] sm:$0xff]  ;;  %v166_v9 = vrot.slane %v125_v12, 1 }
  0x8d   :  { %3833 = vmatprep.subr.bf16.mxu0 %v6392_v39  ;;  %v157_v39 = vrot.slane %v116_v45, 4  ;;  %v160_v46 = vrot.slane %v119_v34, 3  ;;  %v492_v34 = vld [vmem:[#allocation8 + $0x28] sm:$0xff] }
  0x8e   :  { %3895 = vmatpush1.bf16.msra.mxu1 %v6380_v21  ;;  %8087 = vst [vmem:[#allocation70_spill] sm:$0xff] %v6426_v20  ;;  %v151_v21 = vrot.slane %v110_v0, 6  ;;  %8089 = vst [vmem:[#allocation72_spill] sm:$0xff] %v6437_v31  ;;  %v182_v59 = vsel %vm168_vm0, %v104_v27, %v148_v57  ;;  %v6443_v0 = vpack.c.bf16 %v736_v13, %v728_v23  ;;  %v500_v57 = vld [vmem:[#allocation8 + $0x68] sm:$0xff] }
  0x8f   :  { %3897 = vmatprep.subr.bf16.mxu1 %v6394_v40  ;;  %v738_v40 = vld [vmem:[#allocation8 + $0x7d8] sm:$0xff]  ;;  %v6454_v23 = vpack.c.bf16 %v737_v6, %v729_v61 }
  0x90   :  { %3835 = vmatpush1.bf16.msra.mxu0 %v6414_v28  ;;  %v183_v45 = vsel %vm170_vm1, %v182_v59, %v151_v21  ;;  %8090 = vst [vmem:[#allocation73_spill] sm:$0xff] %v6443_v0  ;;  %v6445_v28 = vpack.c.bf16 %v738_v40, %v730_v5  ;;  %v6460_v21 = vpack.c.bf16 %v500_v57, %v492_v34  ;;  %v255_v40 = vlaneseq }
  0x91   :  { %3837 = vmatprep.subr.bf16.mxu0 %v6424_v43  ;;  %v184_v11 = vsel %vm172_vm2, %v183_v45, %v154_v32  ;;  %v494_v43 = vld [vmem:[#allocation8 + $0x38] sm:$0xff]  ;;  %8093 = vst [vmem:[#allocation76_spill] sm:$0xff] %v6454_v23 }
  0x92   :  { %3899 = vmatpush1.bf16.msra.mxu1 %v6416_v2  ;;  %8091 = vst [vmem:[#allocation74_spill] sm:$0xff] %v6445_v28  ;;  %v735_v2 = vld [vmem:[#allocation8 + $0x7c0] sm:$0xff]  ;;  %v185_v27 = vsel %vm174_vm3, %v184_v11, %v157_v39  ;;  %8094 = vst [vmem:[#allocation77_spill] sm:$0xff] %v6460_v21  ;;  %v6462_v39 = vpack.c.bf16 %v502_v60, %v494_v43  ;;  %v6470_v50 = vshrl.u32 %v255_v40, 7 }
  0x93   :  { %3901 = vmatprep.subr.bf16.mxu1 %v6426_v20  ;;  %v186_v13 = vsel %vm176_vm4, %v185_v27, %v160_v46  ;;  %v6452_v5 = vpack.c.bf16 %v735_v2, %v727_v49  ;;  %v8096_v2 = vmov 0.0   ;;  %v253_v43 = vld [vmem:[%s7733_s3] sm:$0xf] }
  0x94   :  { %3839 = vmatpush1.bf16.msra.mxu0 %v6435_v8  ;;  %v187_v12 = vsel %vm178_vm5, %v186_v13, %v163_v51  ;;  %8095 = vst [vmem:[#allocation78_spill] sm:$0xff] %v6462_v39  ;;  %8097 = vst [vmem:[#allocation79_spill] sm:$0xff] %v6470_v50  ;;  %v7789_v60 = vsub.s32 0, %v6470_v50  ;;  %v7787_v46 = vsub.s32 1, %v6470_v50  ;;  %v7788_v51 = vsub.s32 2, %v6470_v50  ;;  %v534_v8 = vld [vmem:[#allocation8 + $0x178] sm:$0xff] }
  0x95   :  { %8092 = vst [vmem:[#allocation75_spill] sm:$0xff] %v6452_v5  ;;  %3841 = vmatprep.subr.bf16.mxu0 %v6443_v0  ;;  %v188_v32 = vsel %vm180_vm6, %v187_v12, %v166_v9  ;;  %v7790_v45 = vsub.s32 3, %v6470_v50  ;;  %v532_v0 = vld [vmem:[#allocation8 + $0x168] sm:$0xff] }
  0x96   :  { %3903 = vmatpush1.bf16.msra.mxu1 %v6437_v31  ;;  %346 = vmatmul.mubr.f32.gmra.mrb[2].mxu0 %v188_v32  ;;  %v6479_v59 = vrot.slane %v253_v43, %v7789_v60  ;;  %v6483_v49 = vrot.slane %v253_v43, %v7787_v46  ;;  %v6491_v34 = vrot.slane %v253_v43, %v7788_v51  ;;  %v526_v31 = vld [vmem:[#allocation8 + $0x138] sm:$0xff] }
  0x97   :  { %3905 = vmatprep.subr.bf16.mxu1 %v6445_v28  ;;  %423 = vmatmul.mubr.f32.gmra.mrb[2].mxu1 %v188_v32  ;;  %v6495_v27 = vrot.slane %v253_v43, %v7790_v45  ;;  %v524_v28 = vld [vmem:[#allocation8 + $0x128] sm:$0xff] }
  0x98   :  { %3843 = vmatpush1.bf16.msra.mxu0 %v6452_v5  ;;  %807 = vmatprep.mubr.f32.mxu0 %v8096_v2 }
  0x99   :  { %878 = vmatprep.mubr.f32.mxu1 %v8096_v2  ;;  %3909 = vmatprep.subr.bf16.mxu0 %v6460_v21  ;;  %v518_v21 = vld [vmem:[#allocation8 + $0xf8] sm:$0xff] }
  0x9a   :  { %3907 = vmatpush1.bf16.msra.mxu1 %v6454_v23 }
  0x9b   :  { %3973 = vmatprep.subr.bf16.mxu1 %v6462_v39 }
 0x12e   :  { %v341_v61 = vpop.f32.mrb[0].mxu0 }
 0x12f   :  { %v342_v6 = vadd.f32 %v341_v61, %v6479_v59  ;;  %v343_v9 = vpop.f32.mrb[1].mxu0 }
 0x130   :  { %v344_v11 = vadd.f32 %v343_v9, %v6483_v49  ;;  %v418_v57 = vpop.f32.mrb[0].mxu1 }
 0x131   :  { %429 = vst [vmem:[#allocation2] sm:$0xff] %v342_v6  ;;  %v419_v13 = vadd.f32 %v418_v57, %v6491_v34  ;;  %v420_v12 = vpop.f32.mrb[1].mxu1 }
 0x132   :  { %430 = vst [vmem:[#allocation2 + $0x8] sm:$0xff] %v344_v11  ;;  %v421_v32 = vadd.f32 %v420_v12, %v6495_v27 }
 0x133   :  { %431 = vst [vmem:[#allocation2 + $0x10] sm:$0xff] %v419_v13 }
 0x134   :  { %432 = vst [vmem:[#allocation2 + $0x18] sm:$0xff] %v421_v32 }
 0x138   :  { %v459_v40 = vld [vmem:[#allocation2] sm:$0x3] }
 0x139   :  { %v3612_v61 = vmul.f32 -1.442695, %v459_v40  ;;  %v460_v9 = vld [vmem:[#allocation2 + $0x8] sm:$0x3] }
 0x13a   :  { %v3613_v46 = vmul.f32 -1.442695, %v460_v9  ;;  %v461_v6 = vld [vmem:[#allocation2 + $0x10] sm:$0x3] }
 0x13b   :  { %5734 = vpow2.f32 %v3612_v61  ;;  %v3614_v51 = vmul.f32 -1.442695, %v461_v6  ;;  %v462_v60 = vld [vmem:[#allocation2 + $0x18] sm:$0x3]  ;;  %v491_v61 = vld [vmem:[#allocation8 + $0x20] sm:$0xff] }
 0x13c   :  { %5736 = vpow2.f32 %v3613_v46  ;;  %v493_v6 = vld [vmem:[#allocation8 + $0x30] sm:$0xff] }
 0x13d   :  { %5738 = vpow2.f32 %v3614_v51  ;;  %v499_v51 = vld [vmem:[#allocation8 + $0x60] sm:$0xff] }
 0x13e   :  { %5740 = vtanh.f32 %v462_v60  ;;  %v508_v60 = vld [vmem:[#allocation8 + $0xa8] sm:$0xff]  ;;  %v6502_v5 = vpack.c.bf16 %v499_v51, %v491_v61  ;;  %v531_v51 = vld [vmem:[#allocation8 + $0x160] sm:$0xff] }
 0x140   :  { %8099 = vst [vmem:[#allocation81_spill] sm:$0xff] %v6502_v5 }
 0x145   :  { %v5735_v43 = vpop.eup %5734 }
 0x146   :  { %v5737_v11 = vpop.eup %5736  ;;  %v472_v45 = vadd.f32 1.0, %v5735_v43  ;;  %v501_v43 = vld [vmem:[#allocation8 + $0x70] sm:$0xff] }
 0x147   :  { %v473_v57 = vadd.f32 1.0, %v5737_v11  ;;  %v5739_v12 = vpop.eup %5738 }
 0x148   :  { %5742 = vrcp.f32 %v472_v45  ;;  %v5741_v13 = vpop.eup %5740  ;;  %v474_v50 = vadd.f32 1.0, %v5739_v12  ;;  %v516_v45 = vld [vmem:[#allocation8 + $0xe8] sm:$0xff]  ;;  %v6504_v12 = vpack.c.bf16 %v501_v43, %v493_v6  ;;  %v6522_v6 = vpack.c.bf16 %v532_v0, %v524_v28 }
 0x149   :  { %5744 = vrcp.f32 %v473_v57  ;;  %v510_v57 = vld [vmem:[#allocation8 + $0xb8] sm:$0xff]  ;;  %v6524_v43 = vpack.c.bf16 %v534_v8, %v526_v31  ;;  %v539_v8 = vld [vmem:[#allocation8 + $0x1a0] sm:$0xff] }
 0x14a   :  { %5746 = vrcp.f32 %v474_v50  ;;  %8100 = vst [vmem:[#allocation82_spill] sm:$0xff] %v6504_v12  ;;  %v515_v50 = vld [vmem:[#allocation8 + $0xe0] sm:$0xff]  ;;  %8104 = vst [vmem:[#allocation86_spill] sm:$0xff] %v6522_v6 }
 0x14b   :  { %8105 = vst [vmem:[#allocation87_spill] sm:$0xff] %v6524_v43  ;;  %v547_v31 = vld [vmem:[#allocation8 + $0x1e0] sm:$0xff] }
 0x152   :  { %v5743_v32 = vpop.eup %5742 }
 0x153   :  { %v5745_v40 = vpop.eup %5744  ;;  %v483_v39 = vmul.f32 %v5743_v32, %v5741_v13  ;;  %v507_v13 = vld [vmem:[#allocation8 + $0xa0] sm:$0xff]  ;;  %v6508_v32 = vpack.c.bf16 %v516_v45, %v508_v60  ;;  %v525_v60 = vld [vmem:[#allocation8 + $0x130] sm:$0xff]  ;;  %v540_v45 = vld [vmem:[#allocation8 + $0x1a8] sm:$0xff] }
 0x154   :  { %v482_v9 = vmul.f32 0.0, %v5745_v40  ;;  %v5747_v11 = vpop.eup %5746  ;;  %v6510_v40 = vpack.c.bf16 %v518_v21, %v510_v57  ;;  %v523_v21 = vld [vmem:[#allocation8 + $0x120] sm:$0xff]  ;;  %v548_v57 = vld [vmem:[#allocation8 + $0x1e8] sm:$0xff] }
 0x155   :  { %v6536_v0 = vpack.c.bf16 %v548_v57, %v540_v45  ;;  %v557_v45 = vld [vmem:[#allocation8 + $0x230] sm:$0xff] }
 0x156   :  { %v6499_v46 = vadd.f32 %v483_v39, %v482_v9  ;;  %8101 = vst [vmem:[#allocation83_spill] sm:$0xff] %v6510_v40  ;;  %v509_v9 = vld [vmem:[#allocation8 + $0xb0] sm:$0xff] }
 0x157   :  { %8108 = vst [vmem:[#allocation90_spill] sm:$0xff] %v6536_v0  ;;  %v565_v57 = vld [vmem:[#allocation8 + $0x270] sm:$0xff] }
 0x158   :  { %8098 = vst [vmem:[#allocation80_spill] sm:$0xff] %v6499_v46  ;;  %5748 = vtanh.f32 %v6499_v46  ;;  %v517_v46 = vld [vmem:[#allocation8 + $0xf0] sm:$0xff] }
 0x159   :  { %v6518_v61 = vpack.c.bf16 %v517_v46, %v509_v9  ;;  %v6530_v46 = vpack.c.bf16 %v531_v51, %v523_v21  ;;  %v549_v9 = vld [vmem:[#allocation8 + $0x1f0] sm:$0xff]  ;;  %v6542_v21 = vpack.c.bf16 %v547_v31, %v539_v8  ;;  %v6556_v31 = vpack.c.bf16 %v565_v57, %v557_v45  ;;  %v587_v45 = vld [vmem:[#allocation8 + $0x320] sm:$0xff] }
 0x15a   :  { %v595_v57 = vld [vmem:[#allocation8 + $0x360] sm:$0xff] }
 0x15b   :  { %8103 = vst [vmem:[#allocation85_spill] sm:$0xff] %v6518_v61  ;;  %8106 = vst [vmem:[#allocation88_spill] sm:$0xff] %v6530_v46 }
 0x15c   :  { %8110 = vst [vmem:[#allocation92_spill] sm:$0xff] %v6542_v21  ;;  %8115 = vst [vmem:[#allocation97_spill] sm:$0xff] %v6556_v31 }
 0x162   :  { %v5749_v23 = vpop.eup %5748 }
 0x163   :  { %v6506_v39 = vmul.f32 %v5749_v23, %v5747_v11  ;;  %v6516_v23 = vpack.c.bf16 %v515_v50, %v507_v13  ;;  %v533_v11 = vld [vmem:[#allocation8 + $0x170] sm:$0xff] }
 0x164   :  { %v6532_v28 = vpack.c.bf16 %v533_v11, %v525_v60  ;;  %v541_v50 = vld [vmem:[#allocation8 + $0x1b0] sm:$0xff]  ;;  %v555_v60 = vld [vmem:[#allocation8 + $0x220] sm:$0xff] }
 0x165   :  { %808 = vmatmul.mubr.f32.vlgmr.msra.gmra.mrb[4].mxu0 %v6506_v39  ;;  %879 = vmatmul.mubr.f32.vlgmr.msra.gmra.mrb[4].mxu1 %v6506_v39  ;;  %8102 = vst [vmem:[#allocation84_spill] sm:$0xff] %v6516_v23  ;;  %v6544_v51 = vpack.c.bf16 %v549_v9, %v541_v50  ;;  %v563_v11 = vld [vmem:[#allocation8 + $0x260] sm:$0xff] }
 0x166   :  { %3911 = vmatpush1.bf16.msra.mxu0 %v6502_v5  ;;  %3975 = vmatpush1.bf16.msra.mxu1 %v6504_v12  ;;  %v542_v5 = vld [vmem:[#allocation8 + $0x1b8] sm:$0xff]  ;;  %8107 = vst [vmem:[#allocation89_spill] sm:$0xff] %v6532_v28  ;;  %v6554_v8 = vpack.c.bf16 %v563_v11, %v555_v60  ;;  %v571_v50 = vld [vmem:[#allocation8 + $0x2a0] sm:$0xff] }
 0x167   :  { %3913 = vmatprep.subr.bf16.mxu0 %v6508_v32  ;;  %3977 = vmatprep.subr.bf16.mxu1 %v6510_v40  ;;  %v550_v12 = vld [vmem:[#allocation8 + $0x1f8] sm:$0xff]  ;;  %8111 = vst [vmem:[#allocation93_spill] sm:$0xff] %v6544_v51  ;;  %v579_v9 = vld [vmem:[#allocation8 + $0x2e0] sm:$0xff] }
 0x168   :  { %949 = vmatprep.mubr.f32.mxu0 %v8096_v2  ;;  %1020 = vmatprep.mubr.f32.mxu1 %v8096_v2  ;;  %v6538_v13 = vpack.c.bf16 %v550_v12, %v542_v5  ;;  %v556_v2 = vld [vmem:[#allocation8 + $0x228] sm:$0xff]  ;;  %v558_v40 = vld [vmem:[#allocation8 + $0x238] sm:$0xff]  ;;  %8114 = vst [vmem:[#allocation96_spill] sm:$0xff] %v6554_v8  ;;  %v6566_v60 = vpack.c.bf16 %v579_v9, %v571_v50 }
 0x169   :  { %v6578_v50 = vpack.c.bf16 %v595_v57, %v587_v45 }
 0x16a   :  { %3915 = vmatpush1.bf16.msra.mxu0 %v6516_v23  ;;  %3979 = vmatpush1.bf16.msra.mxu1 %v6518_v61  ;;  %8109 = vst [vmem:[#allocation91_spill] sm:$0xff] %v6538_v13  ;;  %v564_v23 = vld [vmem:[#allocation8 + $0x268] sm:$0xff]  ;;  %v566_v61 = vld [vmem:[#allocation8 + $0x278] sm:$0xff]  ;;  %8118 = vst [vmem:[#allocation100_spill] sm:$0xff] %v6566_v60 }
 0x16b   :  { %3917 = vmatprep.subr.bf16.mxu0 %v6522_v6  ;;  %3981 = vmatprep.subr.bf16.mxu1 %v6524_v43  ;;  %v6548_v5 = vpack.c.bf16 %v564_v23, %v556_v2  ;;  %v6550_v12 = vpack.c.bf16 %v566_v61, %v558_v40  ;;  %v572_v43 = vld [vmem:[#allocation8 + $0x2a8] sm:$0xff]  ;;  %v574_v6 = vld [vmem:[#allocation8 + $0x2b8] sm:$0xff]  ;;  %v573_v23 = vld [vmem:[#allocation8 + $0x2b0] sm:$0xff]  ;;  %8122 = vst [vmem:[#allocation104_spill] sm:$0xff] %v6578_v50 }
 0x16c   :  { %v581_v61 = vld [vmem:[#allocation8 + $0x2f0] sm:$0xff] }
 0x16d   :  { %8112 = vst [vmem:[#allocation94_spill] sm:$0xff] %v6548_v5  ;;  %8113 = vst [vmem:[#allocation95_spill] sm:$0xff] %v6550_v12  ;;  %v6568_v11 = vpack.c.bf16 %v581_v61, %v573_v23  ;;  %v603_v23 = vld [vmem:[#allocation8 + $0x3a0] sm:$0xff] }
 0x16e   :  { %3919 = vmatpush1.bf16.msra.mxu0 %v6530_v46  ;;  %3983 = vmatpush1.bf16.msra.mxu1 %v6532_v28  ;;  %v580_v46 = vld [vmem:[#allocation8 + $0x2e8] sm:$0xff]  ;;  %v582_v28 = vld [vmem:[#allocation8 + $0x2f8] sm:$0xff]  ;;  %v611_v61 = vld [vmem:[#allocation8 + $0x3e0] sm:$0xff] }
 0x16f   :  { %3921 = vmatprep.subr.bf16.mxu0 %v6536_v0  ;;  %3985 = vmatprep.subr.bf16.mxu1 %v6538_v13  ;;  %v6560_v2 = vpack.c.bf16 %v580_v46, %v572_v43  ;;  %v6562_v40 = vpack.c.bf16 %v582_v28, %v574_v6  ;;  %v588_v13 = vld [vmem:[#allocation8 + $0x328] sm:$0xff]  ;;  %v590_v0 = vld [vmem:[#allocation8 + $0x338] sm:$0xff]  ;;  %8119 = vst [vmem:[#allocation101_spill] sm:$0xff] %v6568_v11  ;;  %v589_v46 = vld [vmem:[#allocation8 + $0x330] sm:$0xff] }
 0x170   :  { %v597_v28 = vld [vmem:[#allocation8 + $0x370] sm:$0xff]  ;;  %v6590_v45 = vpack.c.bf16 %v611_v61, %v603_v23 }
 0x171   :  { %8116 = vst [vmem:[#allocation98_spill] sm:$0xff] %v6560_v2  ;;  %8117 = vst [vmem:[#allocation99_spill] sm:$0xff] %v6562_v40  ;;  %v6580_v9 = vpack.c.bf16 %v597_v28, %v589_v46  ;;  %v619_v46 = vld [vmem:[#allocation8 + $0x420] sm:$0xff] }
 0x172   :  { %3923 = vmatpush1.bf16.msra.mxu0 %v6542_v21  ;;  %3987 = vmatpush1.bf16.msra.mxu1 %v6544_v51  ;;  %v596_v21 = vld [vmem:[#allocation8 + $0x368] sm:$0xff]  ;;  %v598_v51 = vld [vmem:[#allocation8 + $0x378] sm:$0xff]  ;;  %8126 = vst [vmem:[#allocation108_spill] sm:$0xff] %v6590_v45  ;;  %v627_v28 = vld [vmem:[#allocation8 + $0x460] sm:$0xff] }
 0x173   :  { %3925 = vmatprep.subr.bf16.mxu0 %v6548_v5  ;;  %3989 = vmatprep.subr.bf16.mxu1 %v6550_v12  ;;  %v6572_v6 = vpack.c.bf16 %v596_v21, %v588_v13  ;;  %v6574_v43 = vpack.c.bf16 %v598_v51, %v590_v0  ;;  %v604_v12 = vld [vmem:[#allocation8 + $0x3a8] sm:$0xff]  ;;  %v606_v5 = vld [vmem:[#allocation8 + $0x3b8] sm:$0xff]  ;;  %8123 = vst [vmem:[#allocation105_spill] sm:$0xff] %v6580_v9  ;;  %v605_v21 = vld [vmem:[#allocation8 + $0x3b0] sm:$0xff] }
 0x174   :  { %v613_v51 = vld [vmem:[#allocation8 + $0x3f0] sm:$0xff]  ;;  %v6602_v23 = vpack.c.bf16 %v627_v28, %v619_v46 }
 0x175   :  { %8120 = vst [vmem:[#allocation102_spill] sm:$0xff] %v6572_v6  ;;  %8121 = vst [vmem:[#allocation103_spill] sm:$0xff] %v6574_v43  ;;  %v6592_v57 = vpack.c.bf16 %v613_v51, %v605_v21  ;;  %v635_v21 = vld [vmem:[#allocation8 + $0x4a0] sm:$0xff] }
 0x176   :  { %3927 = vmatpush1.bf16.msra.mxu0 %v6554_v8  ;;  %3991 = vmatpush1.bf16.msra.mxu1 %v6556_v31  ;;  %v612_v8 = vld [vmem:[#allocation8 + $0x3e8] sm:$0xff]  ;;  %v614_v31 = vld [vmem:[#allocation8 + $0x3f8] sm:$0xff]  ;;  %8130 = vst [vmem:[#allocation112_spill] sm:$0xff] %v6602_v23  ;;  %v643_v51 = vld [vmem:[#allocation8 + $0x4e0] sm:$0xff] }
 0x177   :  { %3929 = vmatprep.subr.bf16.mxu0 %v6560_v2  ;;  %3993 = vmatprep.subr.bf16.mxu1 %v6562_v40  ;;  %v6584_v0 = vpack.c.bf16 %v612_v8, %v604_v12  ;;  %v6586_v13 = vpack.c.bf16 %v614_v31, %v606_v5  ;;  %v620_v40 = vld [vmem:[#allocation8 + $0x428] sm:$0xff]  ;;  %v622_v2 = vld [vmem:[#allocation8 + $0x438] sm:$0xff]  ;;  %8127 = vst [vmem:[#allocation109_spill] sm:$0xff] %v6592_v57  ;;  %v621_v8 = vld [vmem:[#allocation8 + $0x430] sm:$0xff] }
 0x178   :  { %v629_v31 = vld [vmem:[#allocation8 + $0x470] sm:$0xff]  ;;  %v6614_v46 = vpack.c.bf16 %v643_v51, %v635_v21 }
 0x179   :  { %8124 = vst [vmem:[#allocation106_spill] sm:$0xff] %v6584_v0  ;;  %8125 = vst [vmem:[#allocation107_spill] sm:$0xff] %v6586_v13  ;;  %v6604_v61 = vpack.c.bf16 %v629_v31, %v621_v8  ;;  %v651_v8 = vld [vmem:[#allocation8 + $0x520] sm:$0xff] }
 0x17a   :  { %3931 = vmatpush1.bf16.msra.mxu0 %v6566_v60  ;;  %3995 = vmatpush1.bf16.msra.mxu1 %v6568_v11  ;;  %v628_v60 = vld [vmem:[#allocation8 + $0x468] sm:$0xff]  ;;  %v630_v11 = vld [vmem:[#allocation8 + $0x478] sm:$0xff]  ;;  %8134 = vst [vmem:[#allocation116_spill] sm:$0xff] %v6614_v46  ;;  %v659_v31 = vld [vmem:[#allocation8 + $0x560] sm:$0xff] }
 0x17b   :  { %3933 = vmatprep.subr.bf16.mxu0 %v6572_v6  ;;  %3997 = vmatprep.subr.bf16.mxu1 %v6574_v43  ;;  %v6596_v5 = vpack.c.bf16 %v628_v60, %v620_v40  ;;  %v6598_v12 = vpack.c.bf16 %v630_v11, %v622_v2  ;;  %v636_v43 = vld [vmem:[#allocation8 + $0x4a8] sm:$0xff]  ;;  %v638_v6 = vld [vmem:[#allocation8 + $0x4b8] sm:$0xff]  ;;  %8131 = vst [vmem:[#allocation113_spill] sm:$0xff] %v6604_v61  ;;  %v637_v60 = vld [vmem:[#allocation8 + $0x4b0] sm:$0xff] }
 0x17c   :  { %v645_v11 = vld [vmem:[#allocation8 + $0x4f0] sm:$0xff]  ;;  %v6626_v21 = vpack.c.bf16 %v659_v31, %v651_v8 }
 0x17d   :  { %8128 = vst [vmem:[#allocation110_spill] sm:$0xff] %v6596_v5  ;;  %8129 = vst [vmem:[#allocation111_spill] sm:$0xff] %v6598_v12  ;;  %v6616_v28 = vpack.c.bf16 %v645_v11, %v637_v60  ;;  %v667_v60 = vld [vmem:[#allocation8 + $0x5a0] sm:$0xff] }
 0x17e   :  { %3935 = vmatpush1.bf16.msra.mxu0 %v6578_v50  ;;  %3999 = vmatpush1.bf16.msra.mxu1 %v6580_v9  ;;  %v644_v50 = vld [vmem:[#allocation8 + $0x4e8] sm:$0xff]  ;;  %v646_v9 = vld [vmem:[#allocation8 + $0x4f8] sm:$0xff]  ;;  %8138 = vst [vmem:[#allocation120_spill] sm:$0xff] %v6626_v21  ;;  %v675_v11 = vld [vmem:[#allocation8 + $0x5e0] sm:$0xff] }
 0x17f   :  { %3937 = vmatprep.subr.bf16.mxu0 %v6584_v0  ;;  %4001 = vmatprep.subr.bf16.mxu1 %v6586_v13  ;;  %v6608_v2 = vpack.c.bf16 %v644_v50, %v636_v43  ;;  %v6610_v40 = vpack.c.bf16 %v646_v9, %v638_v6  ;;  %v652_v13 = vld [vmem:[#allocation8 + $0x528] sm:$0xff]  ;;  %v654_v0 = vld [vmem:[#allocation8 + $0x538] sm:$0xff]  ;;  %8135 = vst [vmem:[#allocation117_spill] sm:$0xff] %v6616_v28  ;;  %v653_v50 = vld [vmem:[#allocation8 + $0x530] sm:$0xff] }
 0x180   :  { %v661_v9 = vld [vmem:[#allocation8 + $0x570] sm:$0xff]  ;;  %v6638_v8 = vpack.c.bf16 %v675_v11, %v667_v60 }
 0x181   :  { %8132 = vst [vmem:[#allocation114_spill] sm:$0xff] %v6608_v2  ;;  %8133 = vst [vmem:[#allocation115_spill] sm:$0xff] %v6610_v40  ;;  %v6628_v51 = vpack.c.bf16 %v661_v9, %v653_v50  ;;  %v683_v50 = vld [vmem:[#allocation8 + $0x620] sm:$0xff] }
 0x182   :  { %3939 = vmatpush1.bf16.msra.mxu0 %v6590_v45  ;;  %4003 = vmatpush1.bf16.msra.mxu1 %v6592_v57  ;;  %v660_v45 = vld [vmem:[#allocation8 + $0x568] sm:$0xff]  ;;  %v662_v57 = vld [vmem:[#allocation8 + $0x578] sm:$0xff]  ;;  %8142 = vst [vmem:[#allocation124_spill] sm:$0xff] %v6638_v8  ;;  %v691_v9 = vld [vmem:[#allocation8 + $0x660] sm:$0xff] }
 0x183   :  { %3941 = vmatprep.subr.bf16.mxu0 %v6596_v5  ;;  %4005 = vmatprep.subr.bf16.mxu1 %v6598_v12  ;;  %v6620_v6 = vpack.c.bf16 %v660_v45, %v652_v13  ;;  %v6622_v43 = vpack.c.bf16 %v662_v57, %v654_v0  ;;  %v668_v12 = vld [vmem:[#allocation8 + $0x5a8] sm:$0xff]  ;;  %v670_v5 = vld [vmem:[#allocation8 + $0x5b8] sm:$0xff]  ;;  %8139 = vst [vmem:[#allocation121_spill] sm:$0xff] %v6628_v51  ;;  %v669_v45 = vld [vmem:[#allocation8 + $0x5b0] sm:$0xff] }
 0x184   :  { %v677_v57 = vld [vmem:[#allocation8 + $0x5f0] sm:$0xff]  ;;  %v6650_v60 = vpack.c.bf16 %v691_v9, %v683_v50 }
 0x185   :  { %8136 = vst [vmem:[#allocation118_spill] sm:$0xff] %v6620_v6  ;;  %8137 = vst [vmem:[#allocation119_spill] sm:$0xff] %v6622_v43  ;;  %v6640_v31 = vpack.c.bf16 %v677_v57, %v669_v45  ;;  %v699_v45 = vld [vmem:[#allocation8 + $0x6a0] sm:$0xff] }
 0x186   :  { %3943 = vmatpush1.bf16.msra.mxu0 %v6602_v23  ;;  %4007 = vmatpush1.bf16.msra.mxu1 %v6604_v61  ;;  %v676_v23 = vld [vmem:[#allocation8 + $0x5e8] sm:$0xff]  ;;  %v678_v61 = vld [vmem:[#allocation8 + $0x5f8] sm:$0xff]  ;;  %8146 = vst [vmem:[#allocation128_spill] sm:$0xff] %v6650_v60  ;;  %v707_v57 = vld [vmem:[#allocation8 + $0x6e0] sm:$0xff] }
 0x187   :  { %3945 = vmatprep.subr.bf16.mxu0 %v6608_v2  ;;  %4009 = vmatprep.subr.bf16.mxu1 %v6610_v40  ;;  %v6632_v0 = vpack.c.bf16 %v676_v23, %v668_v12  ;;  %v6634_v13 = vpack.c.bf16 %v678_v61, %v670_v5  ;;  %v684_v40 = vld [vmem:[#allocation8 + $0x628] sm:$0xff]  ;;  %v686_v2 = vld [vmem:[#allocation8 + $0x638] sm:$0xff]  ;;  %8143 = vst [vmem:[#allocation125_spill] sm:$0xff] %v6640_v31  ;;  %v685_v23 = vld [vmem:[#allocation8 + $0x630] sm:$0xff] }
 0x188   :  { %v693_v61 = vld [vmem:[#allocation8 + $0x670] sm:$0xff]  ;;  %v6662_v50 = vpack.c.bf16 %v707_v57, %v699_v45 }
 0x189   :  { %8140 = vst [vmem:[#allocation122_spill] sm:$0xff] %v6632_v0  ;;  %8141 = vst [vmem:[#allocation123_spill] sm:$0xff] %v6634_v13  ;;  %v6652_v11 = vpack.c.bf16 %v693_v61, %v685_v23  ;;  %v715_v23 = vld [vmem:[#allocation8 + $0x720] sm:$0xff] }
 0x18a   :  { %3947 = vmatpush1.bf16.msra.mxu0 %v6614_v46  ;;  %4011 = vmatpush1.bf16.msra.mxu1 %v6616_v28  ;;  %v692_v46 = vld [vmem:[#allocation8 + $0x668] sm:$0xff]  ;;  %v694_v28 = vld [vmem:[#allocation8 + $0x678] sm:$0xff]  ;;  %8150 = vst [vmem:[#allocation132_spill] sm:$0xff] %v6662_v50  ;;  %v723_v61 = vld [vmem:[#allocation8 + $0x760] sm:$0xff] }
 0x18b   :  { %3949 = vmatprep.subr.bf16.mxu0 %v6620_v6  ;;  %4013 = vmatprep.subr.bf16.mxu1 %v6622_v43  ;;  %v6644_v5 = vpack.c.bf16 %v692_v46, %v684_v40  ;;  %v6646_v12 = vpack.c.bf16 %v694_v28, %v686_v2  ;;  %v700_v43 = vld [vmem:[#allocation8 + $0x6a8] sm:$0xff]  ;;  %v702_v6 = vld [vmem:[#allocation8 + $0x6b8] sm:$0xff]  ;;  %8147 = vst [vmem:[#allocation129_spill] sm:$0xff] %v6652_v11  ;;  %v701_v46 = vld [vmem:[#allocation8 + $0x6b0] sm:$0xff] }
 0x18c   :  { %v709_v28 = vld [vmem:[#allocation8 + $0x6f0] sm:$0xff]  ;;  %v6674_v45 = vpack.c.bf16 %v723_v61, %v715_v23 }
 0x18d   :  { %8144 = vst [vmem:[#allocation126_spill] sm:$0xff] %v6644_v5  ;;  %8145 = vst [vmem:[#allocation127_spill] sm:$0xff] %v6646_v12  ;;  %v6664_v9 = vpack.c.bf16 %v709_v28, %v701_v46  ;;  %v731_v46 = vld [vmem:[#allocation8 + $0x7a0] sm:$0xff]  ;;  %v741_v28 = vld [vmem:[#allocation8 + $0x7f0] sm:$0xff] }
 0x18e   :  { %3951 = vmatpush1.bf16.msra.mxu0 %v6626_v21  ;;  %4015 = vmatpush1.bf16.msra.mxu1 %v6628_v51  ;;  %v708_v21 = vld [vmem:[#allocation8 + $0x6e8] sm:$0xff]  ;;  %v710_v51 = vld [vmem:[#allocation8 + $0x6f8] sm:$0xff]  ;;  %8154 = vst [vmem:[#allocation136_spill] sm:$0xff] %v6674_v45 }
 0x18f   :  { %3953 = vmatprep.subr.bf16.mxu0 %v6632_v0  ;;  %4017 = vmatprep.subr.bf16.mxu1 %v6634_v13  ;;  %v6656_v2 = vpack.c.bf16 %v708_v21, %v700_v43  ;;  %v6658_v40 = vpack.c.bf16 %v710_v51, %v702_v6  ;;  %v716_v13 = vld [vmem:[#allocation8 + $0x728] sm:$0xff]  ;;  %v718_v0 = vld [vmem:[#allocation8 + $0x738] sm:$0xff]  ;;  %8151 = vst [vmem:[#allocation133_spill] sm:$0xff] %v6664_v9  ;;  %v717_v21 = vld [vmem:[#allocation8 + $0x730] sm:$0xff] }
 0x190   :  { %v725_v51 = vld [vmem:[#allocation8 + $0x770] sm:$0xff] }
 0x191   :  { %8148 = vst [vmem:[#allocation130_spill] sm:$0xff] %v6656_v2  ;;  %8149 = vst [vmem:[#allocation131_spill] sm:$0xff] %v6658_v40  ;;  %v6676_v57 = vpack.c.bf16 %v725_v51, %v717_v21 }
 0x192   :  { %3955 = vmatpush1.bf16.msra.mxu0 %v6638_v8  ;;  %4019 = vmatpush1.bf16.msra.mxu1 %v6640_v31  ;;  %v724_v8 = vld [vmem:[#allocation8 + $0x768] sm:$0xff]  ;;  %v726_v31 = vld [vmem:[#allocation8 + $0x778] sm:$0xff] }
 0x193   :  { %3957 = vmatprep.subr.bf16.mxu0 %v6644_v5  ;;  %4021 = vmatprep.subr.bf16.mxu1 %v6646_v12  ;;  %v6668_v6 = vpack.c.bf16 %v724_v8, %v716_v13  ;;  %v6670_v43 = vpack.c.bf16 %v726_v31, %v718_v0  ;;  %v732_v12 = vld [vmem:[#allocation8 + $0x7a8] sm:$0xff]  ;;  %v734_v5 = vld [vmem:[#allocation8 + $0x7b8] sm:$0xff]  ;;  %8155 = vst [vmem:[#allocation137_spill] sm:$0xff] %v6676_v57  ;;  %v739_v8 = vld [vmem:[#allocation8 + $0x7e0] sm:$0xff] }
 0x194   :  { %v733_v31 = vld [vmem:[#allocation8 + $0x7b0] sm:$0xff]  ;;  %v6686_v23 = vpack.c.bf16 %v739_v8, %v731_v46  ;;  %v8164_v8 = vld [vmem:[#allocation52_spill] sm:$0xff] }
 0x195   :  { %8152 = vst [vmem:[#allocation134_spill] sm:$0xff] %v6668_v6  ;;  %8153 = vst [vmem:[#allocation135_spill] sm:$0xff] %v6670_v43  ;;  %v6688_v61 = vpack.c.bf16 %v741_v28, %v733_v31  ;;  %v8165_v31 = vld [vmem:[#allocation53_spill] sm:$0xff]  ;;  %v8166_v28 = vld [vmem:[#allocation54_spill] sm:$0xff] }
 0x196   :  { %3959 = vmatpush1.bf16.msra.mxu0 %v6650_v60  ;;  %4023 = vmatpush1.bf16.msra.mxu1 %v6652_v11  ;;  %v740_v60 = vld [vmem:[#allocation8 + $0x7e8] sm:$0xff]  ;;  %v742_v11 = vld [vmem:[#allocation8 + $0x7f8] sm:$0xff]  ;;  %8158 = vst [vmem:[#allocation140_spill] sm:$0xff] %v6686_v23 }
 0x197   :  { %3961 = vmatprep.subr.bf16.mxu0 %v6656_v2  ;;  %4025 = vmatprep.subr.bf16.mxu1 %v6658_v40  ;;  %v6680_v0 = vpack.c.bf16 %v740_v60, %v732_v12  ;;  %v6682_v13 = vpack.c.bf16 %v742_v11, %v734_v5  ;;  %8159 = vst [vmem:[#allocation141_spill] sm:$0xff] %v6688_v61  ;;  %v424_v5 = vpop.f32.mrb[2].mxu1 }
 0x198   :  { %v425_v11 = vadd.f32 %v424_v5, %v6491_v34  ;;  %v426_v21 = vpop.f32.mrb[3].mxu1  ;;  %v8162_v34 = vld [vmem:[#allocation50_spill] sm:$0xff]  ;;  %v8168_v5 = vld [vmem:[#allocation56_spill] sm:$0xff] }
 0x199   :  { %8156 = vst [vmem:[#allocation138_spill] sm:$0xff] %v6680_v0  ;;  %8157 = vst [vmem:[#allocation139_spill] sm:$0xff] %v6682_v13  ;;  %v427_v46 = vadd.f32 %v426_v21, %v6495_v27  ;;  %v8163_v27 = vld [vmem:[#allocation51_spill] sm:$0xff]  ;;  %v8172_v21 = vld [vmem:[#allocation60_spill] sm:$0xff] }
 0x19a   :  { %3963 = vmatpush1.bf16.msra.mxu0 %v6662_v50  ;;  %4027 = vmatpush1.bf16.msra.mxu1 %v6664_v9  ;;  %435 = vst [vmem:[#allocation2 + $0x30] sm:$0xff] %v425_v11  ;;  %v8171_v11 = vld [vmem:[#allocation59_spill] sm:$0xff] }
 0x19b   :  { %3965 = vmatprep.subr.bf16.mxu0 %v6668_v6  ;;  %4029 = vmatprep.subr.bf16.mxu1 %v6670_v43  ;;  %436 = vst [vmem:[#allocation2 + $0x38] sm:$0xff] %v427_v46  ;;  %v8174_v46 = vld [vmem:[#allocation62_spill] sm:$0xff] }
 0x19e   :  { %3967 = vmatpush1.bf16.msra.mxu0 %v6674_v45  ;;  %4031 = vmatpush1.bf16.msra.mxu1 %v6676_v57 }
 0x19f   :  { %3969 = vmatprep.subr.bf16.mxu0 %v6680_v0  ;;  %4033 = vmatprep.subr.bf16.mxu1 %v6682_v13 }
 0x1a2   :  { %3971 = vmatpush1.bf16.msra.mxu0 %v6686_v23  ;;  %4035 = vmatpush1.bf16.msra.mxu1 %v6688_v61 }
 0x1a3   :  { %4037 = vmatprep.subr.bf16.mxu0 %v6207_v55  ;;  %4101 = vmatprep.subr.bf16.mxu1 %v6215_v7 }
 0x1a5   :  { %950 = vmatmul.mubr.f32.vlgmr.msra.gmra.mrb[6].mxu0 %v6506_v39  ;;  %1021 = vmatmul.mubr.f32.vlgmr.msra.gmra.mrb[6].mxu1 %v6506_v39  ;;  %v347_v39 = vpop.f32.mrb[2].mxu0 }
 0x1a6   :  { %4039 = vmatpush1.bf16.msra.mxu0 %v6210_v1  ;;  %4103 = vmatpush1.bf16.msra.mxu1 %v6221_v15  ;;  %v348_v12 = vadd.f32 %v347_v39, %v6479_v59  ;;  %v349_v60 = vpop.f32.mrb[3].mxu0  ;;  %v8160_v59 = vld [vmem:[#allocation48_spill] sm:$0xff]  ;;  %v8167_v39 = vld [vmem:[#allocation55_spill] sm:$0xff] }
 0x1a7   :  { %4041 = vmatprep.subr.bf16.mxu0 %v6213_v4  ;;  %4105 = vmatprep.subr.bf16.mxu1 %v6227_v19  ;;  %v350_v51 = vadd.f32 %v349_v60, %v6483_v49  ;;  %v8161_v49 = vld [vmem:[#allocation49_spill] sm:$0xff]  ;;  %v8170_v60 = vld [vmem:[#allocation58_spill] sm:$0xff] }
 0x1a8   :  { %433 = vst [vmem:[#allocation2 + $0x20] sm:$0xff] %v348_v12  ;;  %v8169_v12 = vld [vmem:[#allocation57_spill] sm:$0xff] }
 0x1a9   :  { %434 = vst [vmem:[#allocation2 + $0x28] sm:$0xff] %v350_v51  ;;  %v8173_v51 = vld [vmem:[#allocation61_spill] sm:$0xff] }
 0x1aa   :  { %4043 = vmatpush1.bf16.msra.mxu0 %v6218_v14  ;;  %4107 = vmatpush1.bf16.msra.mxu1 %v6233_v25 }
 0x1ab   :  { %4045 = vmatprep.subr.bf16.mxu0 %v6224_v16  ;;  %4109 = vmatprep.subr.bf16.mxu1 %v6237_v26 }
 0x1ae   :  { %4047 = vmatpush1.bf16.msra.mxu0 %v6230_v24  ;;  %4111 = vmatpush1.bf16.msra.mxu1 %v6242_v29 }
 0x1af   :  { %4049 = vmatprep.subr.bf16.mxu0 %v6246_v33  ;;  %4113 = vmatprep.subr.bf16.mxu1 %v6248_v37 }
 0x1b2   :  { %4051 = vmatpush1.bf16.msra.mxu0 %v6250_v38  ;;  %4115 = vmatpush1.bf16.msra.mxu1 %v6253_v41 }
 0x1b3   :  { %4053 = vmatprep.subr.bf16.mxu0 %v6258_v44  ;;  %4117 = vmatprep.subr.bf16.mxu1 %v6260_v48 }
 0x1b6   :  { %4055 = vmatpush1.bf16.msra.mxu0 %v6263_v52  ;;  %4119 = vmatpush1.bf16.msra.mxu1 %v6265_v53 }
 0x1b7   :  { %4057 = vmatprep.subr.bf16.mxu0 %v6270_v58  ;;  %4121 = vmatprep.subr.bf16.mxu1 %v6272_v62 }
 0x1ba   :  { %4059 = vmatpush1.bf16.msra.mxu0 %v6274_v63  ;;  %4123 = vmatpush1.bf16.msra.mxu1 %v6277_v3 }
 0x1bb   :  { %4061 = vmatprep.subr.bf16.mxu0 %v6282_v10  ;;  %4125 = vmatprep.subr.bf16.mxu1 %v6284_v17 }
 0x1be   :  { %4063 = vmatpush1.bf16.msra.mxu0 %v6286_v18  ;;  %4127 = vmatpush1.bf16.msra.mxu1 %v6289_v22 }
 0x1bf   :  { %4065 = vmatprep.subr.bf16.mxu0 %v6294_v30  ;;  %4129 = vmatprep.subr.bf16.mxu1 %v6296_v35 }
 0x1c2   :  { %4067 = vmatpush1.bf16.msra.mxu0 %v6298_v36  ;;  %4131 = vmatpush1.bf16.msra.mxu1 %v6301_v42 }
 0x1c3   :  { %4069 = vmatprep.subr.bf16.mxu0 %v6306_v47  ;;  %4133 = vmatprep.subr.bf16.mxu1 %v6308_v54  ;;  %v1030_v54 = vld [vmem:[#allocation2 + $0x18] sm:$0xc] }
 0x1c6   :  { %4071 = vmatpush1.bf16.msra.mxu0 %v6310_v56  ;;  %4135 = vmatpush1.bf16.msra.mxu1 %v8160_v59 }
 0x1c7   :  { %4073 = vmatprep.subr.bf16.mxu0 %v8161_v49  ;;  %4137 = vmatprep.subr.bf16.mxu1 %v8162_v34  ;;  %v1028_v49 = vld [vmem:[#allocation2 + $0x8] sm:$0xc] }
 0x1ca   :  { %4075 = vmatpush1.bf16.msra.mxu0 %v8163_v27  ;;  %4139 = vmatpush1.bf16.msra.mxu1 %v8164_v8  ;;  %v8175_v8 = vld [vmem:[#allocation63_spill] sm:$0xff] }
 0x1cb   :  { %4077 = vmatprep.subr.bf16.mxu0 %v8165_v31  ;;  %4141 = vmatprep.subr.bf16.mxu1 %v8166_v28  ;;  %v8176_v31 = vld [vmem:[#allocation64_spill] sm:$0xff]  ;;  %v8177_v28 = vld [vmem:[#allocation65_spill] sm:$0xff] }
 0x1ce   :  { %4079 = vmatpush1.bf16.msra.mxu0 %v8167_v39  ;;  %4143 = vmatpush1.bf16.msra.mxu1 %v8168_v5  ;;  %v8178_v39 = vld [vmem:[#allocation66_spill] sm:$0xff]  ;;  %v8179_v5 = vld [vmem:[#allocation67_spill] sm:$0xff] }
 0x1cf   :  { %4081 = vmatprep.subr.bf16.mxu0 %v8169_v12  ;;  %4145 = vmatprep.subr.bf16.mxu1 %v8170_v60  ;;  %v8180_v12 = vld [vmem:[#allocation68_spill] sm:$0xff]  ;;  %v8181_v60 = vld [vmem:[#allocation69_spill] sm:$0xff] }
 0x1d2   :  { %4083 = vmatpush1.bf16.msra.mxu0 %v8171_v11  ;;  %4147 = vmatpush1.bf16.msra.mxu1 %v8172_v21  ;;  %v8182_v21 = vld [vmem:[#allocation71_spill] sm:$0xff] }
 0x1d3   :  { %4085 = vmatprep.subr.bf16.mxu0 %v8173_v51  ;;  %4149 = vmatprep.subr.bf16.mxu1 %v8174_v46  ;;  %v8183_v51 = vld [vmem:[#allocation72_spill] sm:$0xff]  ;;  %v8184_v46 = vld [vmem:[#allocation73_spill] sm:$0xff] }
 0x1d6   :  { %4087 = vmatpush1.bf16.msra.mxu0 %v8175_v8  ;;  %4151 = vmatpush1.bf16.msra.mxu1 %v8176_v31  ;;  %v8185_v8 = vld [vmem:[#allocation74_spill] sm:$0xff]  ;;  %v8186_v31 = vld [vmem:[#allocation75_spill] sm:$0xff] }
 0x1d7   :  { %4089 = vmatprep.subr.bf16.mxu0 %v8177_v28  ;;  %4153 = vmatprep.subr.bf16.mxu1 %v8178_v39  ;;  %v8187_v28 = vld [vmem:[#allocation76_spill] sm:$0xff]  ;;  %v8188_v39 = vld [vmem:[#allocation77_spill] sm:$0xff] }
 0x1da   :  { %4091 = vmatpush1.bf16.msra.mxu0 %v8179_v5  ;;  %4155 = vmatpush1.bf16.msra.mxu1 %v8180_v12  ;;  %v8189_v5 = vld [vmem:[#allocation78_spill] sm:$0xff] }
 0x1db   :  { %4093 = vmatprep.subr.bf16.mxu0 %v8181_v60  ;;  %4157 = vmatprep.subr.bf16.mxu1 %v6426_v20 }
 0x1de   :  { %4095 = vmatpush1.bf16.msra.mxu0 %v8182_v21  ;;  %4159 = vmatpush1.bf16.msra.mxu1 %v8183_v51  ;;  %v1027_v21 = vld [vmem:[#allocation2] sm:$0xc] }
 0x1df   :  { %4097 = vmatprep.subr.bf16.mxu0 %v8184_v46  ;;  %4161 = vmatprep.subr.bf16.mxu1 %v8185_v8 }
 0x1e2   :  { %4099 = vmatpush1.bf16.msra.mxu0 %v8186_v31  ;;  %4163 = vmatpush1.bf16.msra.mxu1 %v8187_v28  ;;  %v1029_v28 = vld [vmem:[#allocation2 + $0x10] sm:$0xc] }
 0x1e3   :  { %4165 = vmatprep.subr.bf16.mxu0 %v8188_v39  ;;  %4229 = vmatprep.subr.bf16.mxu1 %v8189_v5 }
 0x238   :  { %v809_v12 = vpop.f32.mrb[4].mxu0  ;;  %v880_v60 = vpop.f32.mrb[4].mxu1 }
 0x239   :  { %v1035_v11 = vrot.slane %v809_v12, 6  ;;  %v811_v20 = vpop.f32.mrb[5].mxu0  ;;  %v882_v27 = vpop.f32.mrb[5].mxu1  ;;  %v1037_v31 = vrot.slane %v880_v60, 6 }
 0x23a   :  { %v1036_v34 = vrot.slane %v811_v20, 6  ;;  %v1038_v56 = vrot.slane %v882_v27, 6 }
 0x23b   :  { %v1043_v51 = vadd.f32 %v1035_v11, %v1027_v21  ;;  %v1045_v39 = vadd.f32 %v1037_v31, %v1029_v28 }
 0x23c   :  { %v1044_v46 = vadd.f32 %v1036_v34, %v1028_v49  ;;  %v1046_v5 = vadd.f32 %v1038_v56, %v1030_v54  ;;  %v8191_v56 = vld [vmem:[#allocation79_spill] sm:$0xff] }
 0x23d   :  { %v3615_v59 = vmul.f32 -1.442695, %v1043_v51  ;;  %v3617_v47 = vmul.f32 -1.442695, %v1045_v39  ;;  %v8192_v39 = vsub.s32 0, %v8191_v56  ;;  %v8194_v51 = vsub.s32 1, %v8191_v56 }
 0x23e   :  { %v3616_v8 = vmul.f32 -1.442695, %v1044_v46 }
 0x23f   :  { %5750 = vpow2.f32 %v3615_v59  ;;  %v8190_v59 = vld [vmem:[#allocation80_spill] sm:$0xff] }
 0x240   :  { %5752 = vpow2.f32 %v3616_v8  ;;  %v1071_v60 = vrot.slane %v8190_v59, 6 }
 0x241   :  { %5754 = vtanh.f32 %v1046_v5 }
 0x242   :  { %5756 = vpow2.f32 %v3617_v47 }
 0x249   :  { %v5751_v42 = vpop.eup %5750 }
 0x24a   :  { %v1060_v12 = vadd.f32 1.0, %v5751_v42  ;;  %v5753_v36 = vpop.eup %5752 }
 0x24b   :  { %v1061_v20 = vadd.f32 1.0, %v5753_v36  ;;  %v5755_v49 = vpop.eup %5754  ;;  %v437_v36 = vld [vmem:[%s7735_s5] sm:$0xf] }
 0x24c   :  { %5758 = vrcp.f32 %v1060_v12  ;;  %v5757_v34 = vpop.eup %5756  ;;  %v6775_v5 = vrot.slane %v437_v36, %v8192_v39  ;;  %v6779_v46 = vrot.slane %v437_v36, %v8194_v51 }
 0x24d   :  { %5760 = vrcp.f32 %v1061_v20  ;;  %v1062_v27 = vadd.f32 1.0, %v5757_v34 }
 0x24e   :  { %8193 = vst [vmem:[#allocation80_spill] sm:$0xff] %v6775_v5  ;;  %8195 = vst [vmem:[#allocation79_spill] sm:$0xff] %v6779_v46 }
 0x24f   :  { %5762 = vrcp.f32 %v1062_v27 }
 0x256   :  { %v5759_v11 = vpop.eup %5758 }
 0x257   :  { %v1074_v8 = vmul.f32 %v5759_v11, %v5755_v49  ;;  %v5761_v21 = vpop.eup %5760 }
 0x258   :  { %v1073_v31 = vmul.f32 %v5761_v21, %v1071_v60  ;;  %v8196_v21 = vsub.s32 2, %v8191_v56 }
 0x259   :  { %v5763_v42 = vpop.eup %5762 }
 0x25a   :  { %v6767_v28 = vadd.f32 %v1074_v8, %v1073_v31  ;;  %v6785_v27 = vrot.slane %v437_v36, %v8196_v21  ;;  %v8198_v31 = vsub.s32 3, %v8191_v56 }
 0x25c   :  { %5764 = vtanh.f32 %v6767_v28  ;;  %8197 = vst [vmem:[#allocation142_spill] sm:$0xff] %v6785_v27 }
 0x266   :  { %v5765_v54 = vpop.eup %5764 }
 0x267   :  { %v1077_v47 = vmul.f32 %v5765_v54, %v5763_v42  ;;  %v6789_v42 = vrot.slane %v437_v36, %v8198_v31 }
 0x269   :  { %8199 = vst [vmem:[#allocation143_spill] sm:$0xff] %v6789_v42 }
 0x278   :  { %v951_v12 = vpop.f32.mrb[6].mxu0  ;;  %v1022_v20 = vpop.f32.mrb[6].mxu1 }
 0x279   :  { %v1047_v49 = vadd.f32 %v951_v12, %v6775_v5  ;;  %v953_v34 = vpop.f32.mrb[7].mxu0  ;;  %v1024_v11 = vpop.f32.mrb[7].mxu1  ;;  %v1049_v54 = vadd.f32 %v1022_v20, %v6785_v27 }
 0x27a   :  { %v1048_v59 = vadd.f32 %v953_v34, %v6779_v46  ;;  %v1050_v39 = vadd.f32 %v1024_v11, %v6789_v42 }
 0x27b   :  { %v3618_v60 = vmul.f32 -1.442695, %v1047_v49  ;;  %v3620_v51 = vmul.f32 -1.442695, %v1049_v54 }
 0x27c   :  { %v3619_v8 = vmul.f32 -1.442695, %v1048_v59 }
 0x27d   :  { %5766 = vpow2.f32 %v3618_v60 }
 0x27e   :  { %5768 = vpow2.f32 %v3619_v8 }
 0x27f   :  { %5770 = vtanh.f32 %v1050_v39 }
 0x280   :  { %5772 = vpow2.f32 %v3620_v51 }
 0x287   :  { %v5767_v12 = vpop.eup %5766 }
 0x288   :  { %v1087_v5 = vadd.f32 1.0, %v5767_v12  ;;  %v5769_v49 = vpop.eup %5768  ;;  %v8200_v12 = vld [vmem:[#allocation81_spill] sm:$0xff] }
 0x289   :  { %v1088_v34 = vadd.f32 1.0, %v5769_v49  ;;  %v5771_v59 = vpop.eup %5770  ;;  %v8201_v49 = vld [vmem:[#allocation82_spill] sm:$0xff] }
 0x28a   :  { %5774 = vrcp.f32 %v1087_v5  ;;  %v5773_v60 = vpop.eup %5772  ;;  %v6796_v5 = vrot.slane %v1077_v47, 2  ;;  %v8204_v47 = vld [vmem:[#allocation85_spill] sm:$0xff] }
 0x28b   :  { %5776 = vrcp.f32 %v1088_v34  ;;  %v1089_v36 = vadd.f32 1.0, %v5773_v60  ;;  %v8202_v34 = vld [vmem:[#allocation83_spill] sm:$0xff]  ;;  %v8205_v60 = vld [vmem:[#allocation86_spill] sm:$0xff] }
 0x28d   :  { %5778 = vrcp.f32 %v1089_v36  ;;  %v8209_v36 = vld [vmem:[#allocation90_spill] sm:$0xff] }
 0x294   :  { %v5775_v8 = vpop.eup %5774 }
 0x295   :  { %v1098_v21 = vmul.f32 %v5775_v8, %v5771_v59  ;;  %v5777_v56 = vpop.eup %5776  ;;  %v8203_v59 = vld [vmem:[#allocation84_spill] sm:$0xff]  ;;  %v8206_v8 = vld [vmem:[#allocation87_spill] sm:$0xff] }
 0x296   :  { %v1097_v31 = vmul.f32 0.0, %v5777_v56  ;;  %v8208_v56 = vld [vmem:[#allocation89_spill] sm:$0xff] }
 0x297   :  { %v5779_v20 = vpop.eup %5778 }
 0x298   :  { %v6793_v46 = vadd.f32 %v1098_v21, %v1097_v31  ;;  %v8207_v21 = vld [vmem:[#allocation88_spill] sm:$0xff]  ;;  %v8210_v31 = vld [vmem:[#allocation91_spill] sm:$0xff] }
 0x29a   :  { %5780 = vtanh.f32 %v6793_v46 }
 0x2a4   :  { %v5781_v11 = vpop.eup %5780 }
 0x2a5   :  { %v1101_v54 = vmul.f32 %v5781_v11, %v5779_v20  ;;  %v8211_v20 = vld [vmem:[#allocation92_spill] sm:$0xff]  ;;  %v8212_v11 = vld [vmem:[#allocation93_spill] sm:$0xff] }
 0x2a7   :  { %v1103_v39 = vrot.slane %v1101_v54, 6  ;;  %v8213_v54 = vld [vmem:[#allocation94_spill] sm:$0xff] }
 0x2a9   :  { %v1106_v51 = vrot.slane %v1103_v39, 2  ;;  %v8214_v39 = vld [vmem:[#allocation95_spill] sm:$0xff] }
 0x2ab   :  { %1173 = vmatprep.mubr.f32.mxu0 %v1106_v51  ;;  %1244 = vmatprep.mubr.f32.mxu1 %v1106_v51 }
 0x2ac   :  { %1174 = vmatmul.mubr.f32.vlgmr.msra.gmra.mrb[8].mxu0 %v6796_v5  ;;  %1245 = vmatmul.mubr.f32.vlgmr.msra.gmra.mrb[8].mxu1 %v6796_v5 }
 0x2ad   :  { %4167 = vmatpush1.bf16.msra.mxu0 %v8200_v12  ;;  %4231 = vmatpush1.bf16.msra.mxu1 %v8201_v49 }
 0x2ae   :  { %1315 = vmatprep.mubr.f32.mxu0 %v1106_v51  ;;  %1386 = vmatprep.mubr.f32.mxu1 %v1106_v51  ;;  %v8215_v51 = vld [vmem:[#allocation96_spill] sm:$0xff] }
 0x2af   :  { %4169 = vmatprep.subr.bf16.mxu0 %v6508_v32  ;;  %4233 = vmatprep.subr.bf16.mxu1 %v8202_v34 }
 0x2b1   :  { %4171 = vmatpush1.bf16.msra.mxu0 %v8203_v59  ;;  %4235 = vmatpush1.bf16.msra.mxu1 %v8204_v47 }
 0x2b2   :  { %4173 = vmatprep.subr.bf16.mxu0 %v8205_v60  ;;  %4237 = vmatprep.subr.bf16.mxu1 %v8206_v8  ;;  %v8216_v60 = vld [vmem:[#allocation97_spill] sm:$0xff]  ;;  %v8217_v8 = vld [vmem:[#allocation98_spill] sm:$0xff] }
 0x2b5   :  { %4175 = vmatpush1.bf16.msra.mxu0 %v8207_v21  ;;  %4239 = vmatpush1.bf16.msra.mxu1 %v8208_v56  ;;  %v8218_v21 = vld [vmem:[#allocation99_spill] sm:$0xff]  ;;  %v8219_v56 = vld [vmem:[#allocation100_spill] sm:$0xff] }
 0x2b6   :  { %4177 = vmatprep.subr.bf16.mxu0 %v8209_v36  ;;  %4241 = vmatprep.subr.bf16.mxu1 %v8210_v31  ;;  %v8220_v36 = vld [vmem:[#allocation101_spill] sm:$0xff]  ;;  %v8221_v31 = vld [vmem:[#allocation102_spill] sm:$0xff] }
 0x2b9   :  { %4179 = vmatpush1.bf16.msra.mxu0 %v8211_v20  ;;  %4243 = vmatpush1.bf16.msra.mxu1 %v8212_v11  ;;  %v8222_v20 = vld [vmem:[#allocation103_spill] sm:$0xff]  ;;  %v8223_v11 = vld [vmem:[#allocation104_spill] sm:$0xff] }
 0x2ba   :  { %4181 = vmatprep.subr.bf16.mxu0 %v8213_v54  ;;  %4245 = vmatprep.subr.bf16.mxu1 %v8214_v39  ;;  %v8224_v54 = vld [vmem:[#allocation105_spill] sm:$0xff]  ;;  %v8225_v39 = vld [vmem:[#allocation106_spill] sm:$0xff] }
 0x2bd   :  { %4183 = vmatpush1.bf16.msra.mxu0 %v8215_v51  ;;  %4247 = vmatpush1.bf16.msra.mxu1 %v8216_v60  ;;  %v8226_v51 = vld [vmem:[#allocation107_spill] sm:$0xff]  ;;  %v8227_v60 = vld [vmem:[#allocation108_spill] sm:$0xff] }
 0x2be   :  { %4185 = vmatprep.subr.bf16.mxu0 %v8217_v8  ;;  %4249 = vmatprep.subr.bf16.mxu1 %v8218_v21  ;;  %v8228_v8 = vld [vmem:[#allocation109_spill] sm:$0xff]  ;;  %v8229_v21 = vld [vmem:[#allocation110_spill] sm:$0xff] }
 0x2c1   :  { %4187 = vmatpush1.bf16.msra.mxu0 %v8219_v56  ;;  %4251 = vmatpush1.bf16.msra.mxu1 %v8220_v36  ;;  %v8230_v56 = vld [vmem:[#allocation111_spill] sm:$0xff]  ;;  %v8231_v36 = vld [vmem:[#allocation112_spill] sm:$0xff] }
 0x2c2   :  { %4189 = vmatprep.subr.bf16.mxu0 %v8221_v31  ;;  %4253 = vmatprep.subr.bf16.mxu1 %v8222_v20  ;;  %v8232_v31 = vld [vmem:[#allocation113_spill] sm:$0xff]  ;;  %v8233_v20 = vld [vmem:[#allocation114_spill] sm:$0xff] }
 0x2c5   :  { %4191 = vmatpush1.bf16.msra.mxu0 %v8223_v11  ;;  %4255 = vmatpush1.bf16.msra.mxu1 %v8224_v54  ;;  %v8234_v11 = vld [vmem:[#allocation115_spill] sm:$0xff]  ;;  %v8235_v54 = vld [vmem:[#allocation116_spill] sm:$0xff] }
 0x2c6   :  { %4193 = vmatprep.subr.bf16.mxu0 %v8225_v39  ;;  %4257 = vmatprep.subr.bf16.mxu1 %v8226_v51  ;;  %v8236_v39 = vld [vmem:[#allocation117_spill] sm:$0xff]  ;;  %v8237_v51 = vld [vmem:[#allocation118_spill] sm:$0xff] }
 0x2c9   :  { %4195 = vmatpush1.bf16.msra.mxu0 %v8227_v60  ;;  %4259 = vmatpush1.bf16.msra.mxu1 %v8228_v8  ;;  %v8238_v60 = vld [vmem:[#allocation119_spill] sm:$0xff]  ;;  %v8239_v8 = vld [vmem:[#allocation120_spill] sm:$0xff] }
 0x2ca   :  { %4197 = vmatprep.subr.bf16.mxu0 %v8229_v21  ;;  %4261 = vmatprep.subr.bf16.mxu1 %v8230_v56  ;;  %v8240_v21 = vld [vmem:[#allocation121_spill] sm:$0xff]  ;;  %v8241_v56 = vld [vmem:[#allocation122_spill] sm:$0xff] }
 0x2cd   :  { %4199 = vmatpush1.bf16.msra.mxu0 %v8231_v36  ;;  %4263 = vmatpush1.bf16.msra.mxu1 %v8232_v31  ;;  %v8242_v36 = vld [vmem:[#allocation123_spill] sm:$0xff]  ;;  %v8243_v31 = vld [vmem:[#allocation124_spill] sm:$0xff] }
 0x2ce   :  { %4201 = vmatprep.subr.bf16.mxu0 %v8233_v20  ;;  %4265 = vmatprep.subr.bf16.mxu1 %v8234_v11  ;;  %v8244_v20 = vld [vmem:[#allocation125_spill] sm:$0xff]  ;;  %v8245_v11 = vld [vmem:[#allocation126_spill] sm:$0xff] }
 0x2d1   :  { %4203 = vmatpush1.bf16.msra.mxu0 %v8235_v54  ;;  %4267 = vmatpush1.bf16.msra.mxu1 %v8236_v39  ;;  %v8246_v54 = vld [vmem:[#allocation127_spill] sm:$0xff]  ;;  %v8247_v39 = vld [vmem:[#allocation128_spill] sm:$0xff] }
 0x2d2   :  { %4205 = vmatprep.subr.bf16.mxu0 %v8237_v51  ;;  %4269 = vmatprep.subr.bf16.mxu1 %v8238_v60  ;;  %v8248_v51 = vld [vmem:[#allocation129_spill] sm:$0xff] }
 0x2d5   :  { %4207 = vmatpush1.bf16.msra.mxu0 %v8239_v8  ;;  %4271 = vmatpush1.bf16.msra.mxu1 %v8240_v21 }
 0x2d6   :  { %4209 = vmatprep.subr.bf16.mxu0 %v8241_v56  ;;  %4273 = vmatprep.subr.bf16.mxu1 %v8242_v36 }
 0x2d9   :  { %4211 = vmatpush1.bf16.msra.mxu0 %v8243_v31  ;;  %4275 = vmatpush1.bf16.msra.mxu1 %v8244_v20 }
 0x2da   :  { %4213 = vmatprep.subr.bf16.mxu0 %v8245_v11  ;;  %4277 = vmatprep.subr.bf16.mxu1 %v8246_v54 }
 0x2dd   :  { %4215 = vmatpush1.bf16.msra.mxu0 %v8247_v39  ;;  %4279 = vmatpush1.bf16.msra.mxu1 %v8248_v51 }
 0x2de   :  { %4217 = vmatprep.subr.bf16.mxu0 %v6656_v2  ;;  %4281 = vmatprep.subr.bf16.mxu1 %v6658_v40 }
 0x2e1   :  { %4219 = vmatpush1.bf16.msra.mxu0 %v6662_v50  ;;  %4283 = vmatpush1.bf16.msra.mxu1 %v6664_v9 }
 0x2e2   :  { %4221 = vmatprep.subr.bf16.mxu0 %v6668_v6  ;;  %4285 = vmatprep.subr.bf16.mxu1 %v6670_v43 }
 0x2e5   :  { %4223 = vmatpush1.bf16.msra.mxu0 %v6674_v45  ;;  %4287 = vmatpush1.bf16.msra.mxu1 %v6676_v57 }
 0x2e6   :  { %4225 = vmatprep.subr.bf16.mxu0 %v6680_v0  ;;  %4289 = vmatprep.subr.bf16.mxu1 %v6682_v13 }
 0x2e9   :  { %4227 = vmatpush1.bf16.msra.mxu0 %v6686_v23  ;;  %4291 = vmatpush1.bf16.msra.mxu1 %v6688_v61 }
 0x2ea   :  { %4293 = vmatprep.subr.bf16.mxu0 %v6207_v55  ;;  %4357 = vmatprep.subr.bf16.mxu1 %v6215_v7 }
 0x2ec   :  { %1316 = vmatmul.mubr.f32.vlgmr.msra.gmra.mrb[10].mxu0 %v6796_v5  ;;  %1387 = vmatmul.mubr.f32.vlgmr.msra.gmra.mrb[10].mxu1 %v6796_v5  ;;  %v8249_v5 = vld [vmem:[#allocation43_spill] sm:$0xff] }
 0x2ed   :  { %4295 = vmatpush1.bf16.msra.mxu0 %v6210_v1  ;;  %4359 = vmatpush1.bf16.msra.mxu1 %v6221_v15 }
 0x2ee   :  { %4297 = vmatprep.subr.bf16.mxu0 %v6213_v4  ;;  %4361 = vmatprep.subr.bf16.mxu1 %v6227_v19 }
 0x2f1   :  { %4299 = vmatpush1.bf16.msra.mxu0 %v6218_v14  ;;  %4363 = vmatpush1.bf16.msra.mxu1 %v6233_v25 }
 0x2f2   :  { %4301 = vmatprep.subr.bf16.mxu0 %v6224_v16  ;;  %4365 = vmatprep.subr.bf16.mxu1 %v6237_v26 }
 0x2f5   :  { %4303 = vmatpush1.bf16.msra.mxu0 %v6230_v24  ;;  %4367 = vmatpush1.bf16.msra.mxu1 %v6242_v29 }
 0x2f6   :  { %4305 = vmatprep.subr.bf16.mxu0 %v6246_v33  ;;  %4369 = vmatprep.subr.bf16.mxu1 %v6248_v37  ;;  %v1396_v37 = vld [vmem:[#allocation2 + $0x18] sm:$0x30] }
 0x2f9   :  { %4307 = vmatpush1.bf16.msra.mxu0 %v6250_v38  ;;  %4371 = vmatpush1.bf16.msra.mxu1 %v6253_v41 }
 0x2fa   :  { %4309 = vmatprep.subr.bf16.mxu0 %v6258_v44  ;;  %4373 = vmatprep.subr.bf16.mxu1 %v6260_v48  ;;  %v1394_v44 = vld [vmem:[#allocation2 + $0x8] sm:$0x30] }
 0x2fd   :  { %4311 = vmatpush1.bf16.msra.mxu0 %v6263_v52  ;;  %4375 = vmatpush1.bf16.msra.mxu1 %v6265_v53 }
 0x2fe   :  { %4313 = vmatprep.subr.bf16.mxu0 %v6270_v58  ;;  %4377 = vmatprep.subr.bf16.mxu1 %v6272_v62  ;;  %v8250_v58 = vld [vmem:[#allocation44_spill] sm:$0xff]  ;;  %v8251_v62 = vld [vmem:[#allocation45_spill] sm:$0xff] }
 0x301   :  { %4315 = vmatpush1.bf16.msra.mxu0 %v6274_v63  ;;  %4379 = vmatpush1.bf16.msra.mxu1 %v6277_v3  ;;  %v8252_v63 = vld [vmem:[#allocation46_spill] sm:$0xff]  ;;  %v8253_v3 = vld [vmem:[#allocation47_spill] sm:$0xff] }
 0x302   :  { %4317 = vmatprep.subr.bf16.mxu0 %v6282_v10  ;;  %4381 = vmatprep.subr.bf16.mxu1 %v6284_v17  ;;  %v8254_v10 = vld [vmem:[#allocation48_spill] sm:$0xff]  ;;  %v8255_v17 = vld [vmem:[#allocation49_spill] sm:$0xff] }
 0x305   :  { %4319 = vmatpush1.bf16.msra.mxu0 %v6286_v18  ;;  %4383 = vmatpush1.bf16.msra.mxu1 %v6289_v22  ;;  %v8256_v18 = vld [vmem:[#allocation50_spill] sm:$0xff]  ;;  %v8257_v22 = vld [vmem:[#allocation51_spill] sm:$0xff] }
 0x306   :  { %4321 = vmatprep.subr.bf16.mxu0 %v6294_v30  ;;  %4385 = vmatprep.subr.bf16.mxu1 %v6296_v35  ;;  %v8258_v30 = vld [vmem:[#allocation52_spill] sm:$0xff]  ;;  %v8259_v35 = vld [vmem:[#allocation53_spill] sm:$0xff] }
 0x309   :  { %4323 = vmatpush1.bf16.msra.mxu0 %v8249_v5  ;;  %4387 = vmatpush1.bf16.msra.mxu1 %v8250_v58  ;;  %v8260_v5 = vld [vmem:[#allocation54_spill] sm:$0xff]  ;;  %v8261_v58 = vld [vmem:[#allocation55_spill] sm:$0xff] }
 0x30a   :  { %4325 = vmatprep.subr.bf16.mxu0 %v8251_v62  ;;  %4389 = vmatprep.subr.bf16.mxu1 %v8252_v63  ;;  %v8262_v62 = vld [vmem:[#allocation56_spill] sm:$0xff]  ;;  %v8263_v63 = vld [vmem:[#allocation57_spill] sm:$0xff] }
 0x30d   :  { %4327 = vmatpush1.bf16.msra.mxu0 %v8253_v3  ;;  %4391 = vmatpush1.bf16.msra.mxu1 %v8254_v10  ;;  %v8264_v3 = vld [vmem:[#allocation58_spill] sm:$0xff]  ;;  %v8265_v10 = vld [vmem:[#allocation59_spill] sm:$0xff] }
 0x30e   :  { %4329 = vmatprep.subr.bf16.mxu0 %v8255_v17  ;;  %4393 = vmatprep.subr.bf16.mxu1 %v8256_v18  ;;  %v8266_v17 = vld [vmem:[#allocation60_spill] sm:$0xff]  ;;  %v8267_v18 = vld [vmem:[#allocation61_spill] sm:$0xff] }
 0x311   :  { %4331 = vmatpush1.bf16.msra.mxu0 %v8257_v22  ;;  %4395 = vmatpush1.bf16.msra.mxu1 %v8258_v30  ;;  %v8268_v22 = vld [vmem:[#allocation62_spill] sm:$0xff]  ;;  %v8269_v30 = vld [vmem:[#allocation63_spill] sm:$0xff] }
 0x312   :  { %4333 = vmatprep.subr.bf16.mxu0 %v8259_v35  ;;  %4397 = vmatprep.subr.bf16.mxu1 %v8260_v5  ;;  %v8270_v35 = vld [vmem:[#allocation64_spill] sm:$0xff]  ;;  %v8271_v5 = vld [vmem:[#allocation65_spill] sm:$0xff] }
 0x315   :  { %4335 = vmatpush1.bf16.msra.mxu0 %v8261_v58  ;;  %4399 = vmatpush1.bf16.msra.mxu1 %v8262_v62  ;;  %v8272_v58 = vld [vmem:[#allocation66_spill] sm:$0xff]  ;;  %v8273_v62 = vld [vmem:[#allocation67_spill] sm:$0xff] }
 0x316   :  { %4337 = vmatprep.subr.bf16.mxu0 %v8263_v63  ;;  %4401 = vmatprep.subr.bf16.mxu1 %v8264_v3  ;;  %v8274_v63 = vld [vmem:[#allocation68_spill] sm:$0xff]  ;;  %v8275_v3 = vld [vmem:[#allocation69_spill] sm:$0xff] }
 0x319   :  { %4339 = vmatpush1.bf16.msra.mxu0 %v8265_v10  ;;  %4403 = vmatpush1.bf16.msra.mxu1 %v8266_v17  ;;  %v8276_v10 = vld [vmem:[#allocation70_spill] sm:$0xff]  ;;  %v8277_v17 = vld [vmem:[#allocation71_spill] sm:$0xff] }
 0x31a   :  { %4341 = vmatprep.subr.bf16.mxu0 %v8267_v18  ;;  %4405 = vmatprep.subr.bf16.mxu1 %v8268_v22  ;;  %v8278_v18 = vld [vmem:[#allocation72_spill] sm:$0xff]  ;;  %v8279_v22 = vld [vmem:[#allocation73_spill] sm:$0xff] }
 0x31d   :  { %4343 = vmatpush1.bf16.msra.mxu0 %v8269_v30  ;;  %4407 = vmatpush1.bf16.msra.mxu1 %v8270_v35  ;;  %v8280_v30 = vld [vmem:[#allocation74_spill] sm:$0xff]  ;;  %v8281_v35 = vld [vmem:[#allocation75_spill] sm:$0xff] }
 0x31e   :  { %4345 = vmatprep.subr.bf16.mxu0 %v8271_v5  ;;  %4409 = vmatprep.subr.bf16.mxu1 %v8272_v58  ;;  %v8282_v5 = vld [vmem:[#allocation76_spill] sm:$0xff]  ;;  %v8283_v58 = vld [vmem:[#allocation77_spill] sm:$0xff] }
 0x321   :  { %4347 = vmatpush1.bf16.msra.mxu0 %v8273_v62  ;;  %4411 = vmatpush1.bf16.msra.mxu1 %v8274_v63  ;;  %v8284_v62 = vld [vmem:[#allocation78_spill] sm:$0xff] }
 0x322   :  { %4349 = vmatprep.subr.bf16.mxu0 %v8275_v3  ;;  %4413 = vmatprep.subr.bf16.mxu1 %v8276_v10 }
 0x325   :  { %4351 = vmatpush1.bf16.msra.mxu0 %v8277_v17  ;;  %4415 = vmatpush1.bf16.msra.mxu1 %v8278_v18  ;;  %v1393_v17 = vld [vmem:[#allocation2] sm:$0x30] }
 0x326   :  { %4353 = vmatprep.subr.bf16.mxu0 %v8279_v22  ;;  %4417 = vmatprep.subr.bf16.mxu1 %v8280_v30 }
 0x329   :  { %4355 = vmatpush1.bf16.msra.mxu0 %v8281_v35  ;;  %4419 = vmatpush1.bf16.msra.mxu1 %v8282_v5  ;;  %v1395_v5 = vld [vmem:[#allocation2 + $0x10] sm:$0x30] }
 0x32a   :  { %4421 = vmatprep.subr.bf16.mxu0 %v8283_v58  ;;  %4485 = vmatprep.subr.bf16.mxu1 %v8284_v62 }
 0x37f   :  { %v1175_v63 = vpop.f32.mrb[8].mxu0  ;;  %v1246_v3 = vpop.f32.mrb[8].mxu1 }
 0x380   :  { %v1401_v53 = vrot.slane %v1175_v63, 4  ;;  %v1177_v10 = vpop.f32.mrb[9].mxu0  ;;  %v1248_v52 = vpop.f32.mrb[9].mxu1  ;;  %v1403_v35 = vrot.slane %v1246_v3, 4 }
 0x381   :  { %v1402_v48 = vrot.slane %v1177_v10, 4  ;;  %v1404_v38 = vrot.slane %v1248_v52, 4 }
 0x382   :  { %v1409_v18 = vadd.f32 %v1401_v53, %v1393_v17  ;;  %v1411_v58 = vadd.f32 %v1403_v35, %v1395_v5  ;;  %v8286_v5 = vld [vmem:[#allocation79_spill] sm:$0xff] }
 0x383   :  { %v1410_v22 = vadd.f32 %v1402_v48, %v1394_v44  ;;  %v1412_v62 = vadd.f32 %v1404_v38, %v1396_v37 }
 0x384   :  { %v3621_v41 = vmul.f32 -1.442695, %v1409_v18  ;;  %v3623_v33 = vmul.f32 -1.442695, %v1411_v58  ;;  %v8285_v58 = vld [vmem:[#allocation80_spill] sm:$0xff] }
 0x385   :  { %v3622_v30 = vmul.f32 -1.442695, %v1410_v22 }
 0x386   :  { %5782 = vpow2.f32 %v3621_v41  ;;  %v1437_v41 = vrot.slane %v6767_v28, 6 }
 0x387   :  { %5784 = vpow2.f32 %v3622_v30 }
 0x388   :  { %5786 = vtanh.f32 %v1412_v62 }
 0x389   :  { %5788 = vpow2.f32 %v3623_v33 }
 0x390   :  { %v5783_v29 = vpop.eup %5782 }
 0x391   :  { %v1426_v63 = vadd.f32 1.0, %v5783_v29  ;;  %v5785_v24 = vpop.eup %5784 }
 0x392   :  { %v1427_v53 = vadd.f32 1.0, %v5785_v24  ;;  %v5787_v44 = vpop.eup %5786 }
 0x393   :  { %5790 = vrcp.f32 %v1426_v63  ;;  %v5789_v48 = vpop.eup %5788 }
 0x394   :  { %5792 = vrcp.f32 %v1427_v53  ;;  %v1428_v52 = vadd.f32 1.0, %v5789_v48 }
 0x396   :  { %5794 = vrcp.f32 %v1428_v52 }
 0x39d   :  { %v5791_v10 = vpop.eup %5790 }
 0x39e   :  { %v1440_v3 = vmul.f32 %v5791_v10, %v5787_v44  ;;  %v5793_v17 = vpop.eup %5792 }
 0x39f   :  { %v1439_v18 = vmul.f32 %v5793_v17, %v1437_v41 }
 0x3a0   :  { %v5795_v29 = vpop.eup %5794 }
 0x3a1   :  { %v6931_v22 = vadd.f32 %v1440_v3, %v1439_v18 }
 0x3a3   :  { %5796 = vtanh.f32 %v6931_v22 }
 0x3ad   :  { %v5797_v37 = vpop.eup %5796 }
 0x3ae   :  { %v1443_v33 = vmul.f32 %v5797_v37, %v5795_v29 }
 0x3bf   :  { %v1317_v38 = vpop.f32.mrb[10].mxu0  ;;  %v1388_v24 = vpop.f32.mrb[10].mxu1 }
 0x3c0   :  { %v1413_v62 = vadd.f32 %v1317_v38, %v8285_v58  ;;  %v1319_v30 = vpop.f32.mrb[11].mxu0  ;;  %v1390_v35 = vpop.f32.mrb[11].mxu1  ;;  %v1415_v44 = vadd.f32 %v1388_v24, %v6785_v27 }
 0x3c1   :  { %v1414_v28 = vadd.f32 %v1319_v30, %v8286_v5  ;;  %v1416_v48 = vadd.f32 %v1390_v35, %v6789_v42 }
 0x3c2   :  { %v3624_v63 = vmul.f32 -1.442695, %v1413_v62  ;;  %v3626_v10 = vmul.f32 -1.442695, %v1415_v44 }
 0x3c3   :  { %v3625_v53 = vmul.f32 -1.442695, %v1414_v28 }
 0x3c4   :  { %5798 = vpow2.f32 %v3624_v63 }
 0x3c5   :  { %5800 = vpow2.f32 %v3625_v53 }
 0x3c6   :  { %5802 = vtanh.f32 %v1416_v48 }
 0x3c7   :  { %5804 = vpow2.f32 %v3626_v10  ;;  %v6942_v10 = vrot.slane %v1443_v33, 4  ;;  %v8288_v33 = vld [vmem:[#allocation87_spill] sm:$0xff] }
 0x3ce   :  { %v5799_v41 = vpop.eup %5798 }
 0x3cf   :  { %v1453_v3 = vadd.f32 1.0, %v5799_v41  ;;  %v5801_v17 = vpop.eup %5800  ;;  %v8289_v41 = vld [vmem:[#allocation88_spill] sm:$0xff] }
 0x3d0   :  { %v1454_v52 = vadd.f32 1.0, %v5801_v17  ;;  %v5803_v18 = vpop.eup %5802  ;;  %v8291_v17 = vld [vmem:[#allocation90_spill] sm:$0xff] }
 0x3d1   :  { %5806 = vrcp.f32 %v1453_v3  ;;  %v5805_v29 = vpop.eup %5804  ;;  %v8290_v3 = vld [vmem:[#allocation89_spill] sm:$0xff] }
 0x3d2   :  { %5808 = vrcp.f32 %v1454_v52  ;;  %v1455_v30 = vadd.f32 1.0, %v5805_v29  ;;  %v8292_v52 = vld [vmem:[#allocation91_spill] sm:$0xff]  ;;  %v8294_v29 = vld [vmem:[#allocation93_spill] sm:$0xff] }
 0x3d4   :  { %5810 = vrcp.f32 %v1455_v30  ;;  %v8298_v30 = vld [vmem:[#allocation97_spill] sm:$0xff] }
 0x3db   :  { %v5807_v37 = vpop.eup %5806 }
 0x3dc   :  { %v1464_v38 = vmul.f32 %v5807_v37, %v5803_v18  ;;  %v5809_v62 = vpop.eup %5808  ;;  %v8293_v18 = vld [vmem:[#allocation92_spill] sm:$0xff]  ;;  %v8295_v37 = vld [vmem:[#allocation94_spill] sm:$0xff] }
 0x3dd   :  { %v1463_v28 = vmul.f32 %v5809_v62, %v6793_v46  ;;  %v8287_v46 = vld [vmem:[#allocation86_spill] sm:$0xff]  ;;  %v8297_v62 = vld [vmem:[#allocation96_spill] sm:$0xff] }
 0x3de   :  { %v5811_v35 = vpop.eup %5810 }
 0x3df   :  { %v6939_v24 = vadd.f32 %v1464_v38, %v1463_v28  ;;  %v8296_v38 = vld [vmem:[#allocation95_spill] sm:$0xff]  ;;  %v8299_v28 = vld [vmem:[#allocation98_spill] sm:$0xff] }
 0x3e1   :  { %5812 = vtanh.f32 %v6939_v24 }
 0x3eb   :  { %v5813_v63 = vpop.eup %5812 }
 0x3ec   :  { %v1467_v53 = vmul.f32 %v5813_v63, %v5811_v35  ;;  %v8300_v35 = vld [vmem:[#allocation99_spill] sm:$0xff]  ;;  %v8301_v63 = vld [vmem:[#allocation100_spill] sm:$0xff] }
 0x3ee   :  { %v1469_v44 = vrot.slane %v1467_v53, 4  ;;  %v8302_v53 = vld [vmem:[#allocation101_spill] sm:$0xff] }
 0x3f0   :  { %v1472_v48 = vrot.slane %v1469_v44, 4  ;;  %v8303_v44 = vld [vmem:[#allocation102_spill] sm:$0xff] }
 0x3f2   :  { %1539 = vmatprep.mubr.f32.mxu0 %v1472_v48  ;;  %1610 = vmatprep.mubr.f32.mxu1 %v1472_v48 }
 0x3f3   :  { %1540 = vmatmul.mubr.f32.vlgmr.msra.gmra.mrb[12].mxu0 %v6942_v10  ;;  %1611 = vmatmul.mubr.f32.vlgmr.msra.gmra.mrb[12].mxu1 %v6942_v10 }
 0x3f4   :  { %4423 = vmatpush1.bf16.msra.mxu0 %v8200_v12  ;;  %4487 = vmatpush1.bf16.msra.mxu1 %v8201_v49 }
 0x3f5   :  { %1681 = vmatprep.mubr.f32.mxu0 %v1472_v48  ;;  %1752 = vmatprep.mubr.f32.mxu1 %v1472_v48  ;;  %v8304_v48 = vld [vmem:[#allocation103_spill] sm:$0xff] }
 0x3f6   :  { %4425 = vmatprep.subr.bf16.mxu0 %v6508_v32  ;;  %4489 = vmatprep.subr.bf16.mxu1 %v8202_v34 }
 0x3f8   :  { %4427 = vmatpush1.bf16.msra.mxu0 %v8203_v59  ;;  %4491 = vmatpush1.bf16.msra.mxu1 %v8204_v47 }
 0x3f9   :  { %4429 = vmatprep.subr.bf16.mxu0 %v8287_v46  ;;  %4493 = vmatprep.subr.bf16.mxu1 %v8288_v33 }
 0x3fc   :  { %4431 = vmatpush1.bf16.msra.mxu0 %v8289_v41  ;;  %4495 = vmatpush1.bf16.msra.mxu1 %v8290_v3 }
 0x3fd   :  { %4433 = vmatprep.subr.bf16.mxu0 %v8291_v17  ;;  %4497 = vmatprep.subr.bf16.mxu1 %v8292_v52 }
 0x400   :  { %4435 = vmatpush1.bf16.msra.mxu0 %v8293_v18  ;;  %4499 = vmatpush1.bf16.msra.mxu1 %v8294_v29  ;;  %v8305_v29 = vld [vmem:[#allocation104_spill] sm:$0xff] }
 0x401   :  { %4437 = vmatprep.subr.bf16.mxu0 %v8295_v37  ;;  %4501 = vmatprep.subr.bf16.mxu1 %v8296_v38  ;;  %v8306_v37 = vld [vmem:[#allocation105_spill] sm:$0xff]  ;;  %v8307_v38 = vld [vmem:[#allocation106_spill] sm:$0xff] }
 0x404   :  { %4439 = vmatpush1.bf16.msra.mxu0 %v8297_v62  ;;  %4503 = vmatpush1.bf16.msra.mxu1 %v8298_v30  ;;  %v8308_v62 = vld [vmem:[#allocation107_spill] sm:$0xff]  ;;  %v8309_v30 = vld [vmem:[#allocation108_spill] sm:$0xff] }
 0x405   :  { %4441 = vmatprep.subr.bf16.mxu0 %v8299_v28  ;;  %4505 = vmatprep.subr.bf16.mxu1 %v8300_v35  ;;  %v8310_v28 = vld [vmem:[#allocation109_spill] sm:$0xff]  ;;  %v8311_v35 = vld [vmem:[#allocation110_spill] sm:$0xff] }
 0x408   :  { %4443 = vmatpush1.bf16.msra.mxu0 %v8301_v63  ;;  %4507 = vmatpush1.bf16.msra.mxu1 %v8302_v53  ;;  %v8312_v63 = vld [vmem:[#allocation111_spill] sm:$0xff]  ;;  %v8313_v53 = vld [vmem:[#allocation112_spill] sm:$0xff] }
 0x409   :  { %4445 = vmatprep.subr.bf16.mxu0 %v8303_v44  ;;  %4509 = vmatprep.subr.bf16.mxu1 %v8304_v48  ;;  %v8314_v44 = vld [vmem:[#allocation113_spill] sm:$0xff]  ;;  %v8315_v48 = vld [vmem:[#allocation114_spill] sm:$0xff] }
 0x40c   :  { %4447 = vmatpush1.bf16.msra.mxu0 %v8305_v29  ;;  %4511 = vmatpush1.bf16.msra.mxu1 %v8306_v37  ;;  %v8316_v29 = vld [vmem:[#allocation115_spill] sm:$0xff]  ;;  %v8317_v37 = vld [vmem:[#allocation116_spill] sm:$0xff] }
 0x40d   :  { %4449 = vmatprep.subr.bf16.mxu0 %v8307_v38  ;;  %4513 = vmatprep.subr.bf16.mxu1 %v8308_v62  ;;  %v8318_v38 = vld [vmem:[#allocation117_spill] sm:$0xff]  ;;  %v8319_v62 = vld [vmem:[#allocation118_spill] sm:$0xff] }
 0x410   :  { %4451 = vmatpush1.bf16.msra.mxu0 %v8309_v30  ;;  %4515 = vmatpush1.bf16.msra.mxu1 %v8310_v28 }
 0x411   :  { %4453 = vmatprep.subr.bf16.mxu0 %v8311_v35  ;;  %4517 = vmatprep.subr.bf16.mxu1 %v8312_v63 }
 0x414   :  { %4455 = vmatpush1.bf16.msra.mxu0 %v8313_v53  ;;  %4519 = vmatpush1.bf16.msra.mxu1 %v8314_v44 }
 0x415   :  { %4457 = vmatprep.subr.bf16.mxu0 %v8315_v48  ;;  %4521 = vmatprep.subr.bf16.mxu1 %v8316_v29 }
 0x418   :  { %4459 = vmatpush1.bf16.msra.mxu0 %v8317_v37  ;;  %4523 = vmatpush1.bf16.msra.mxu1 %v8318_v38 }
 0x419   :  { %4461 = vmatprep.subr.bf16.mxu0 %v8319_v62  ;;  %4525 = vmatprep.subr.bf16.mxu1 %v8238_v60 }
 0x41c   :  { %4463 = vmatpush1.bf16.msra.mxu0 %v8239_v8  ;;  %4527 = vmatpush1.bf16.msra.mxu1 %v8240_v21 }
 0x41d   :  { %4465 = vmatprep.subr.bf16.mxu0 %v8241_v56  ;;  %4529 = vmatprep.subr.bf16.mxu1 %v8242_v36 }
 0x420   :  { %4467 = vmatpush1.bf16.msra.mxu0 %v8243_v31  ;;  %4531 = vmatpush1.bf16.msra.mxu1 %v8244_v20 }
 0x421   :  { %4469 = vmatprep.subr.bf16.mxu0 %v8245_v11  ;;  %4533 = vmatprep.subr.bf16.mxu1 %v8246_v54 }
 0x424   :  { %4471 = vmatpush1.bf16.msra.mxu0 %v8247_v39  ;;  %4535 = vmatpush1.bf16.msra.mxu1 %v8248_v51 }
 0x425   :  { %4473 = vmatprep.subr.bf16.mxu0 %v6656_v2  ;;  %4537 = vmatprep.subr.bf16.mxu1 %v6658_v40 }
 0x428   :  { %4475 = vmatpush1.bf16.msra.mxu0 %v6662_v50  ;;  %4539 = vmatpush1.bf16.msra.mxu1 %v6664_v9 }
 0x429   :  { %4477 = vmatprep.subr.bf16.mxu0 %v6668_v6  ;;  %4541 = vmatprep.subr.bf16.mxu1 %v6670_v43  ;;  %v1762_v43 = vld [vmem:[#allocation2 + $0x18] sm:$0xc0] }
 0x42c   :  { %4479 = vmatpush1.bf16.msra.mxu0 %v6674_v45  ;;  %4543 = vmatpush1.bf16.msra.mxu1 %v6676_v57 }
 0x42d   :  { %4481 = vmatprep.subr.bf16.mxu0 %v6680_v0  ;;  %4545 = vmatprep.subr.bf16.mxu1 %v6682_v13  ;;  %v1760_v0 = vld [vmem:[#allocation2 + $0x8] sm:$0xc0] }
 0x430   :  { %4483 = vmatpush1.bf16.msra.mxu0 %v6686_v23  ;;  %4547 = vmatpush1.bf16.msra.mxu1 %v6688_v61 }
 0x431   :  { %4549 = vmatprep.subr.bf16.mxu0 %v6207_v55  ;;  %4613 = vmatprep.subr.bf16.mxu1 %v6215_v7  ;;  %v8320_v7 = vld [vmem:[#allocation21_spill] sm:$0xff]  ;;  %v8321_v55 = vld [vmem:[#allocation24_spill] sm:$0xff] }
 0x433   :  { %1682 = vmatmul.mubr.f32.vlgmr.msra.gmra.mrb[14].mxu0 %v6942_v10  ;;  %1753 = vmatmul.mubr.f32.vlgmr.msra.gmra.mrb[14].mxu1 %v6942_v10  ;;  %v8322_v10 = vld [vmem:[#allocation25_spill] sm:$0xff] }
 0x434   :  { %4551 = vmatpush1.bf16.msra.mxu0 %v6210_v1  ;;  %4615 = vmatpush1.bf16.msra.mxu1 %v6221_v15  ;;  %v8323_v1 = vld [vmem:[#allocation26_spill] sm:$0xff]  ;;  %v8324_v15 = vld [vmem:[#allocation27_spill] sm:$0xff] }
 0x435   :  { %4553 = vmatprep.subr.bf16.mxu0 %v6213_v4  ;;  %4617 = vmatprep.subr.bf16.mxu1 %v6227_v19  ;;  %v8325_v4 = vld [vmem:[#allocation28_spill] sm:$0xff]  ;;  %v8326_v19 = vld [vmem:[#allocation29_spill] sm:$0xff] }
 0x438   :  { %4555 = vmatpush1.bf16.msra.mxu0 %v6218_v14  ;;  %4619 = vmatpush1.bf16.msra.mxu1 %v6233_v25  ;;  %v8327_v14 = vld [vmem:[#allocation30_spill] sm:$0xff]  ;;  %v8328_v25 = vld [vmem:[#allocation31_spill] sm:$0xff] }
 0x439   :  { %4557 = vmatprep.subr.bf16.mxu0 %v6224_v16  ;;  %4621 = vmatprep.subr.bf16.mxu1 %v6237_v26  ;;  %v8329_v16 = vld [vmem:[#allocation32_spill] sm:$0xff]  ;;  %v8330_v26 = vld [vmem:[#allocation33_spill] sm:$0xff] }
 0x43c   :  { %4559 = vmatpush1.bf16.msra.mxu0 %v8320_v7  ;;  %4623 = vmatpush1.bf16.msra.mxu1 %v8321_v55  ;;  %v8331_v7 = vld [vmem:[#allocation34_spill] sm:$0xff]  ;;  %v8332_v55 = vld [vmem:[#allocation35_spill] sm:$0xff] }
 0x43d   :  { %4561 = vmatprep.subr.bf16.mxu0 %v8322_v10  ;;  %4625 = vmatprep.subr.bf16.mxu1 %v8323_v1  ;;  %v8333_v10 = vld [vmem:[#allocation36_spill] sm:$0xff]  ;;  %v8334_v1 = vld [vmem:[#allocation37_spill] sm:$0xff] }
 0x440   :  { %4563 = vmatpush1.bf16.msra.mxu0 %v8324_v15  ;;  %4627 = vmatpush1.bf16.msra.mxu1 %v8325_v4  ;;  %v8335_v15 = vld [vmem:[#allocation38_spill] sm:$0xff]  ;;  %v8336_v4 = vld [vmem:[#allocation39_spill] sm:$0xff] }
 0x441   :  { %4565 = vmatprep.subr.bf16.mxu0 %v8326_v19  ;;  %4629 = vmatprep.subr.bf16.mxu1 %v8327_v14  ;;  %v8337_v19 = vld [vmem:[#allocation40_spill] sm:$0xff]  ;;  %v8338_v14 = vld [vmem:[#allocation41_spill] sm:$0xff] }
 0x444   :  { %4567 = vmatpush1.bf16.msra.mxu0 %v8328_v25  ;;  %4631 = vmatpush1.bf16.msra.mxu1 %v8329_v16  ;;  %v8339_v25 = vld [vmem:[#allocation42_spill] sm:$0xff]  ;;  %v8340_v16 = vld [vmem:[#allocation43_spill] sm:$0xff] }
 0x445   :  { %4569 = vmatprep.subr.bf16.mxu0 %v8330_v26  ;;  %4633 = vmatprep.subr.bf16.mxu1 %v8331_v7  ;;  %v8341_v26 = vld [vmem:[#allocation44_spill] sm:$0xff]  ;;  %v8342_v7 = vld [vmem:[#allocation45_spill] sm:$0xff] }
 0x448   :  { %4571 = vmatpush1.bf16.msra.mxu0 %v8332_v55  ;;  %4635 = vmatpush1.bf16.msra.mxu1 %v8333_v10  ;;  %v8343_v55 = vld [vmem:[#allocation46_spill] sm:$0xff]  ;;  %v8344_v10 = vld [vmem:[#allocation47_spill] sm:$0xff] }
 0x449   :  { %4573 = vmatprep.subr.bf16.mxu0 %v8334_v1  ;;  %4637 = vmatprep.subr.bf16.mxu1 %v8335_v15  ;;  %v8345_v1 = vld [vmem:[#allocation48_spill] sm:$0xff]  ;;  %v8346_v15 = vld [vmem:[#allocation49_spill] sm:$0xff] }
 0x44c   :  { %4575 = vmatpush1.bf16.msra.mxu0 %v8336_v4  ;;  %4639 = vmatpush1.bf16.msra.mxu1 %v8337_v19  ;;  %v8347_v4 = vld [vmem:[#allocation50_spill] sm:$0xff]  ;;  %v8348_v19 = vld [vmem:[#allocation51_spill] sm:$0xff] }
 0x44d   :  { %4577 = vmatprep.subr.bf16.mxu0 %v8338_v14  ;;  %4641 = vmatprep.subr.bf16.mxu1 %v8339_v25  ;;  %v8349_v14 = vld [vmem:[#allocation52_spill] sm:$0xff]  ;;  %v8350_v25 = vld [vmem:[#allocation53_spill] sm:$0xff] }
 0x450   :  { %4579 = vmatpush1.bf16.msra.mxu0 %v8340_v16  ;;  %4643 = vmatpush1.bf16.msra.mxu1 %v8341_v26  ;;  %v8351_v16 = vld [vmem:[#allocation54_spill] sm:$0xff]  ;;  %v8352_v26 = vld [vmem:[#allocation55_spill] sm:$0xff] }
 0x451   :  { %4581 = vmatprep.subr.bf16.mxu0 %v8342_v7  ;;  %4645 = vmatprep.subr.bf16.mxu1 %v8343_v55  ;;  %v8353_v7 = vld [vmem:[#allocation56_spill] sm:$0xff]  ;;  %v8354_v55 = vld [vmem:[#allocation57_spill] sm:$0xff] }
 0x454   :  { %4583 = vmatpush1.bf16.msra.mxu0 %v8344_v10  ;;  %4647 = vmatpush1.bf16.msra.mxu1 %v8345_v1  ;;  %v8355_v10 = vld [vmem:[#allocation58_spill] sm:$0xff]  ;;  %v8356_v1 = vld [vmem:[#allocation59_spill] sm:$0xff] }
 0x455   :  { %4585 = vmatprep.subr.bf16.mxu0 %v8346_v15  ;;  %4649 = vmatprep.subr.bf16.mxu1 %v8347_v4  ;;  %v8357_v15 = vld [vmem:[#allocation60_spill] sm:$0xff]  ;;  %v8358_v4 = vld [vmem:[#allocation61_spill] sm:$0xff] }
 0x458   :  { %4587 = vmatpush1.bf16.msra.mxu0 %v8348_v19  ;;  %4651 = vmatpush1.bf16.msra.mxu1 %v8349_v14  ;;  %v8359_v19 = vld [vmem:[#allocation62_spill] sm:$0xff]  ;;  %v8360_v14 = vld [vmem:[#allocation63_spill] sm:$0xff] }
 0x459   :  { %4589 = vmatprep.subr.bf16.mxu0 %v8350_v25  ;;  %4653 = vmatprep.subr.bf16.mxu1 %v8351_v16  ;;  %v8361_v25 = vld [vmem:[#allocation64_spill] sm:$0xff]  ;;  %v8362_v16 = vld [vmem:[#allocation65_spill] sm:$0xff] }
 0x45c   :  { %4591 = vmatpush1.bf16.msra.mxu0 %v8352_v26  ;;  %4655 = vmatpush1.bf16.msra.mxu1 %v8353_v7  ;;  %v8363_v26 = vld [vmem:[#allocation66_spill] sm:$0xff]  ;;  %v8364_v7 = vld [vmem:[#allocation67_spill] sm:$0xff] }
 0x45d   :  { %4593 = vmatprep.subr.bf16.mxu0 %v8354_v55  ;;  %4657 = vmatprep.subr.bf16.mxu1 %v8355_v10  ;;  %v8365_v55 = vld [vmem:[#allocation68_spill] sm:$0xff]  ;;  %v8366_v10 = vld [vmem:[#allocation69_spill] sm:$0xff] }
 0x460   :  { %4595 = vmatpush1.bf16.msra.mxu0 %v8356_v1  ;;  %4659 = vmatpush1.bf16.msra.mxu1 %v8357_v15  ;;  %v8367_v1 = vld [vmem:[#allocation70_spill] sm:$0xff]  ;;  %v8368_v15 = vld [vmem:[#allocation71_spill] sm:$0xff] }
 0x461   :  { %4597 = vmatprep.subr.bf16.mxu0 %v8358_v4  ;;  %4661 = vmatprep.subr.bf16.mxu1 %v8359_v19  ;;  %v8369_v4 = vld [vmem:[#allocation72_spill] sm:$0xff]  ;;  %v8370_v19 = vld [vmem:[#allocation73_spill] sm:$0xff] }
 0x464   :  { %4599 = vmatpush1.bf16.msra.mxu0 %v8360_v14  ;;  %4663 = vmatpush1.bf16.msra.mxu1 %v8361_v25  ;;  %v8371_v14 = vld [vmem:[#allocation74_spill] sm:$0xff]  ;;  %v8372_v25 = vld [vmem:[#allocation75_spill] sm:$0xff] }
 0x465   :  { %4601 = vmatprep.subr.bf16.mxu0 %v8362_v16  ;;  %4665 = vmatprep.subr.bf16.mxu1 %v8363_v26  ;;  %v8373_v16 = vld [vmem:[#allocation76_spill] sm:$0xff]  ;;  %v8374_v26 = vld [vmem:[#allocation77_spill] sm:$0xff] }
 0x468   :  { %4603 = vmatpush1.bf16.msra.mxu0 %v8364_v7  ;;  %4667 = vmatpush1.bf16.msra.mxu1 %v8365_v55  ;;  %v8375_v7 = vld [vmem:[#allocation78_spill] sm:$0xff] }
 0x469   :  { %4605 = vmatprep.subr.bf16.mxu0 %v8366_v10  ;;  %4669 = vmatprep.subr.bf16.mxu1 %v8367_v1 }
 0x46c   :  { %4607 = vmatpush1.bf16.msra.mxu0 %v8368_v15  ;;  %4671 = vmatpush1.bf16.msra.mxu1 %v8369_v4  ;;  %v1759_v15 = vld [vmem:[#allocation2] sm:$0xc0] }
 0x46d   :  { %4609 = vmatprep.subr.bf16.mxu0 %v8370_v19  ;;  %4673 = vmatprep.subr.bf16.mxu1 %v8371_v14 }
 0x470   :  { %4611 = vmatpush1.bf16.msra.mxu0 %v8372_v25  ;;  %4675 = vmatpush1.bf16.msra.mxu1 %v8373_v16  ;;  %v1761_v16 = vld [vmem:[#allocation2 + $0x10] sm:$0xc0] }
 0x471   :  { %4677 = vmatprep.subr.bf16.mxu0 %v8374_v26  ;;  %4741 = vmatprep.subr.bf16.mxu1 %v8375_v7 }
 0x4c6   :  { %v1541_v55 = vpop.f32.mrb[12].mxu0  ;;  %v1612_v10 = vpop.f32.mrb[12].mxu1 }
 0x4c7   :  { %v1767_v61 = vrot.slane %v1541_v55, 2  ;;  %v1543_v1 = vpop.f32.mrb[13].mxu0  ;;  %v1614_v23 = vpop.f32.mrb[13].mxu1  ;;  %v1769_v25 = vrot.slane %v1612_v10, 2 }
 0x4c8   :  { %v1768_v13 = vrot.slane %v1543_v1, 2  ;;  %v1770_v45 = vrot.slane %v1614_v23, 2 }
 0x4c9   :  { %v1775_v4 = vadd.f32 %v1767_v61, %v1759_v15  ;;  %v1777_v26 = vadd.f32 %v1769_v25, %v1761_v16 }
 0x4ca   :  { %v1776_v19 = vadd.f32 %v1768_v13, %v1760_v0  ;;  %v1778_v7 = vadd.f32 %v1770_v45, %v1762_v43 }
 0x4cb   :  { %v3627_v57 = vmul.f32 -1.442695, %v1775_v4  ;;  %v3629_v6 = vmul.f32 -1.442695, %v1777_v26 }
 0x4cc   :  { %v3628_v14 = vmul.f32 -1.442695, %v1776_v19 }
 0x4cd   :  { %5814 = vpow2.f32 %v3627_v57  ;;  %v1803_v57 = vrot.slane %v6931_v22, 6 }
 0x4ce   :  { %5816 = vpow2.f32 %v3628_v14 }
 0x4cf   :  { %5818 = vtanh.f32 %v1778_v7 }
 0x4d0   :  { %5820 = vpow2.f32 %v3629_v6 }
 0x4d7   :  { %v5815_v9 = vpop.eup %5814 }
 0x4d8   :  { %v1792_v55 = vadd.f32 1.0, %v5815_v9  ;;  %v5817_v50 = vpop.eup %5816 }
 0x4d9   :  { %v1793_v1 = vadd.f32 1.0, %v5817_v50  ;;  %v5819_v15 = vpop.eup %5818 }
 0x4da   :  { %5822 = vrcp.f32 %v1792_v55  ;;  %v5821_v4 = vpop.eup %5820 }
 0x4db   :  { %5824 = vrcp.f32 %v1793_v1  ;;  %v1794_v13 = vadd.f32 1.0, %v5821_v4 }
 0x4dd   :  { %5826 = vrcp.f32 %v1794_v13 }
 0x4e4   :  { %v5823_v19 = vpop.eup %5822 }
 0x4e5   :  { %v1806_v14 = vmul.f32 %v5823_v19, %v5819_v15  ;;  %v5825_v0 = vpop.eup %5824 }
 0x4e6   :  { %v1805_v16 = vmul.f32 %v5825_v0, %v1803_v57 }
 0x4e7   :  { %v5827_v7 = vpop.eup %5826 }
 0x4e8   :  { %v7077_v25 = vadd.f32 %v1806_v14, %v1805_v16 }
 0x4ea   :  { %5828 = vtanh.f32 %v7077_v25 }
 0x4f4   :  { %v5829_v26 = vpop.eup %5828 }
 0x4f5   :  { %v1809_v9 = vmul.f32 %v5829_v26, %v5827_v7 }
 0x506   :  { %v1683_v6 = vpop.f32.mrb[14].mxu0  ;;  %v1754_v50 = vpop.f32.mrb[14].mxu1 }
 0x507   :  { %v1779_v43 = vadd.f32 %v1683_v6, %v8285_v58  ;;  %v1685_v45 = vpop.f32.mrb[15].mxu0  ;;  %v1756_v23 = vpop.f32.mrb[15].mxu1  ;;  %v1781_v55 = vadd.f32 %v1754_v50, %v6785_v27 }
 0x508   :  { %v1780_v61 = vadd.f32 %v1685_v45, %v8286_v5  ;;  %v1782_v1 = vadd.f32 %v1756_v23, %v6789_v42 }
 0x509   :  { %v3630_v22 = vmul.f32 -1.442695, %v1779_v43  ;;  %v3632_v15 = vmul.f32 -1.442695, %v1781_v55  ;;  %v7088_v55 = vrot.slane %v1809_v9, 6  ;;  %v8377_v9 = vld [vmem:[#allocation94_spill] sm:$0xff] }
 0x50a   :  { %v3631_v10 = vmul.f32 -1.442695, %v1780_v61 }
 0x50b   :  { %5830 = vpow2.f32 %v3630_v22 }
 0x50c   :  { %5832 = vpow2.f32 %v3631_v10 }
 0x50d   :  { %5834 = vtanh.f32 %v1782_v1  ;;  %v8378_v1 = vld [vmem:[#allocation95_spill] sm:$0xff] }
 0x50e   :  { %5836 = vpow2.f32 %v3632_v15  ;;  %v8379_v15 = vld [vmem:[#allocation96_spill] sm:$0xff] }
 0x515   :  { %v5831_v4 = vpop.eup %5830 }
 0x516   :  { %v1819_v19 = vadd.f32 1.0, %v5831_v4  ;;  %v5833_v57 = vpop.eup %5832  ;;  %v8380_v4 = vld [vmem:[#allocation97_spill] sm:$0xff] }
 0x517   :  { %v1820_v14 = vadd.f32 1.0, %v5833_v57  ;;  %v5835_v0 = vpop.eup %5834  ;;  %v8382_v57 = vld [vmem:[#allocation99_spill] sm:$0xff] }
 0x518   :  { %5838 = vrcp.f32 %v1819_v19  ;;  %v5837_v13 = vpop.eup %5836  ;;  %v8381_v19 = vld [vmem:[#allocation98_spill] sm:$0xff] }
 0x519   :  { %5840 = vrcp.f32 %v1820_v14  ;;  %v1821_v6 = vadd.f32 1.0, %v5837_v13  ;;  %v8383_v14 = vld [vmem:[#allocation100_spill] sm:$0xff]  ;;  %v8385_v13 = vld [vmem:[#allocation102_spill] sm:$0xff] }
 0x51b   :  { %5842 = vrcp.f32 %v1821_v6  ;;  %v8389_v6 = vld [vmem:[#allocation106_spill] sm:$0xff] }
 0x522   :  { %v5839_v16 = vpop.eup %5838 }
 0x523   :  { %v1830_v7 = vmul.f32 %v5839_v16, %v5835_v0  ;;  %v5841_v26 = vpop.eup %5840  ;;  %v8384_v0 = vld [vmem:[#allocation101_spill] sm:$0xff]  ;;  %v8386_v16 = vld [vmem:[#allocation103_spill] sm:$0xff] }
 0x524   :  { %v1829_v43 = vmul.f32 %v5841_v26, %v6939_v24  ;;  %v8376_v24 = vld [vmem:[#allocation93_spill] sm:$0xff] }
 0x525   :  { %v5843_v45 = vpop.eup %5842  ;;  %v8388_v26 = vld [vmem:[#allocation105_spill] sm:$0xff] }
 0x526   :  { %v7085_v50 = vadd.f32 %v1830_v7, %v1829_v43  ;;  %v8387_v7 = vld [vmem:[#allocation104_spill] sm:$0xff]  ;;  %v8390_v43 = vld [vmem:[#allocation107_spill] sm:$0xff] }
 0x528   :  { %5844 = vtanh.f32 %v7085_v50 }
 0x532   :  { %v5845_v23 = vpop.eup %5844 }
 0x533   :  { %v1833_v61 = vmul.f32 %v5845_v23, %v5843_v45  ;;  %v8391_v45 = vld [vmem:[#allocation132_spill] sm:$0xff]  ;;  %v8392_v23 = vld [vmem:[#allocation133_spill] sm:$0xff] }
 0x535   :  { %v1835_v22 = vrot.slane %v1833_v61, 2  ;;  %v8393_v61 = vld [vmem:[#allocation134_spill] sm:$0xff] }
 0x537   :  { %v1838_v10 = vrot.slane %v1835_v22, 6  ;;  %v8394_v22 = vld [vmem:[#allocation135_spill] sm:$0xff] }
 0x539   :  { %1905 = vmatprep.mubr.f32.mxu0 %v1838_v10  ;;  %1976 = vmatprep.mubr.f32.mxu1 %v1838_v10 }
 0x53a   :  { %1906 = vmatmul.mubr.f32.vlgmr.msra.gmra.mrb[16].mxu0 %v7088_v55  ;;  %1977 = vmatmul.mubr.f32.vlgmr.msra.gmra.mrb[16].mxu1 %v7088_v55 }
 0x53b   :  { %4679 = vmatpush1.bf16.msra.mxu0 %v8200_v12  ;;  %4743 = vmatpush1.bf16.msra.mxu1 %v8201_v49 }
 0x53c   :  { %2047 = vmatprep.mubr.f32.mxu0 %v1838_v10  ;;  %2118 = vmatprep.mubr.f32.mxu1 %v1838_v10  ;;  %v8395_v10 = vld [vmem:[#allocation136_spill] sm:$0xff] }
 0x53d   :  { %4681 = vmatprep.subr.bf16.mxu0 %v6508_v32  ;;  %4745 = vmatprep.subr.bf16.mxu1 %v8202_v34 }
 0x53f   :  { %4683 = vmatpush1.bf16.msra.mxu0 %v8203_v59  ;;  %4747 = vmatpush1.bf16.msra.mxu1 %v8204_v47 }
 0x540   :  { %4685 = vmatprep.subr.bf16.mxu0 %v8287_v46  ;;  %4749 = vmatprep.subr.bf16.mxu1 %v8288_v33 }
 0x543   :  { %4687 = vmatpush1.bf16.msra.mxu0 %v8289_v41  ;;  %4751 = vmatpush1.bf16.msra.mxu1 %v8290_v3 }
 0x544   :  { %4689 = vmatprep.subr.bf16.mxu0 %v8291_v17  ;;  %4753 = vmatprep.subr.bf16.mxu1 %v8292_v52 }
 0x547   :  { %4691 = vmatpush1.bf16.msra.mxu0 %v8293_v18  ;;  %4755 = vmatpush1.bf16.msra.mxu1 %v8376_v24 }
 0x548   :  { %4693 = vmatprep.subr.bf16.mxu0 %v8377_v9  ;;  %4757 = vmatprep.subr.bf16.mxu1 %v8378_v1 }
 0x54b   :  { %4695 = vmatpush1.bf16.msra.mxu0 %v8379_v15  ;;  %4759 = vmatpush1.bf16.msra.mxu1 %v8380_v4 }
 0x54c   :  { %4697 = vmatprep.subr.bf16.mxu0 %v8381_v19  ;;  %4761 = vmatprep.subr.bf16.mxu1 %v8382_v57 }
 0x54f   :  { %4699 = vmatpush1.bf16.msra.mxu0 %v8383_v14  ;;  %4763 = vmatpush1.bf16.msra.mxu1 %v8384_v0 }
 0x550   :  { %4701 = vmatprep.subr.bf16.mxu0 %v8385_v13  ;;  %4765 = vmatprep.subr.bf16.mxu1 %v8386_v16 }
 0x553   :  { %4703 = vmatpush1.bf16.msra.mxu0 %v8387_v7  ;;  %4767 = vmatpush1.bf16.msra.mxu1 %v8388_v26 }
 0x554   :  { %4705 = vmatprep.subr.bf16.mxu0 %v8389_v6  ;;  %4769 = vmatprep.subr.bf16.mxu1 %v8390_v43 }
 0x557   :  { %4707 = vmatpush1.bf16.msra.mxu0 %v8309_v30  ;;  %4771 = vmatpush1.bf16.msra.mxu1 %v8310_v28 }
 0x558   :  { %4709 = vmatprep.subr.bf16.mxu0 %v8311_v35  ;;  %4773 = vmatprep.subr.bf16.mxu1 %v8312_v63 }
 0x55b   :  { %4711 = vmatpush1.bf16.msra.mxu0 %v8313_v53  ;;  %4775 = vmatpush1.bf16.msra.mxu1 %v8314_v44 }
 0x55c   :  { %4713 = vmatprep.subr.bf16.mxu0 %v8315_v48  ;;  %4777 = vmatprep.subr.bf16.mxu1 %v8316_v29 }
 0x55f   :  { %4715 = vmatpush1.bf16.msra.mxu0 %v8317_v37  ;;  %4779 = vmatpush1.bf16.msra.mxu1 %v8318_v38 }
 0x560   :  { %4717 = vmatprep.subr.bf16.mxu0 %v8319_v62  ;;  %4781 = vmatprep.subr.bf16.mxu1 %v8238_v60 }
 0x563   :  { %4719 = vmatpush1.bf16.msra.mxu0 %v8239_v8  ;;  %4783 = vmatpush1.bf16.msra.mxu1 %v8240_v21 }
 0x564   :  { %4721 = vmatprep.subr.bf16.mxu0 %v8241_v56  ;;  %4785 = vmatprep.subr.bf16.mxu1 %v8242_v36  ;;  %v2128_v56 = vld [vmem:[#allocation2 + $0x38] sm:$0x3] }
 0x567   :  { %4723 = vmatpush1.bf16.msra.mxu0 %v8243_v31  ;;  %4787 = vmatpush1.bf16.msra.mxu1 %v8244_v20 }
 0x568   :  { %4725 = vmatprep.subr.bf16.mxu0 %v8245_v11  ;;  %4789 = vmatprep.subr.bf16.mxu1 %v8246_v54  ;;  %v8396_v11 = vld [vmem:[#allocation137_spill] sm:$0xff]  ;;  %v8397_v54 = vld [vmem:[#allocation138_spill] sm:$0xff] }
 0x56b   :  { %4727 = vmatpush1.bf16.msra.mxu0 %v8247_v39  ;;  %4791 = vmatpush1.bf16.msra.mxu1 %v8248_v51  ;;  %v8398_v39 = vld [vmem:[#allocation139_spill] sm:$0xff]  ;;  %v8399_v51 = vld [vmem:[#allocation140_spill] sm:$0xff] }
 0x56c   :  { %4729 = vmatprep.subr.bf16.mxu0 %v6656_v2  ;;  %4793 = vmatprep.subr.bf16.mxu1 %v6658_v40  ;;  %v8400_v2 = vld [vmem:[#allocation141_spill] sm:$0xff] }
 0x56d   :  { %v8401_v40 = vld [vmem:[#allocation13_spill] sm:$0xff] }
 0x56f   :  { %4731 = vmatpush1.bf16.msra.mxu0 %v8391_v45  ;;  %4795 = vmatpush1.bf16.msra.mxu1 %v8392_v23  ;;  %v8402_v45 = vld [vmem:[#allocation16_spill] sm:$0xff] }
 0x570   :  { %4733 = vmatprep.subr.bf16.mxu0 %v8393_v61  ;;  %4797 = vmatprep.subr.bf16.mxu1 %v8394_v22  ;;  %v8403_v22 = vld [vmem:[#allocation14_spill] sm:$0xff]  ;;  %v8412_v61 = vld [vmem:[#allocation24_spill] sm:$0xff] }
 0x573   :  { %4735 = vmatpush1.bf16.msra.mxu0 %v8395_v10  ;;  %4799 = vmatpush1.bf16.msra.mxu1 %v8396_v11  ;;  %v8404_v10 = vld [vmem:[#allocation18_spill] sm:$0xff]  ;;  %v8405_v11 = vld [vmem:[#allocation15_spill] sm:$0xff] }
 0x574   :  { %4737 = vmatprep.subr.bf16.mxu0 %v8397_v54  ;;  %4801 = vmatprep.subr.bf16.mxu1 %v8398_v39  ;;  %v8406_v54 = vld [vmem:[#allocation20_spill] sm:$0xff]  ;;  %v8407_v39 = vld [vmem:[#allocation17_spill] sm:$0xff] }
 0x577   :  { %4739 = vmatpush1.bf16.msra.mxu0 %v8399_v51  ;;  %4803 = vmatpush1.bf16.msra.mxu1 %v8400_v2  ;;  %v8408_v51 = vld [vmem:[#allocation22_spill] sm:$0xff]  ;;  %v8409_v2 = vld [vmem:[#allocation19_spill] sm:$0xff] }
 0x578   :  { %4805 = vmatprep.subr.bf16.mxu0 %v8401_v40  ;;  %4869 = vmatprep.subr.bf16.mxu1 %v8402_v45  ;;  %v8410_v40 = vld [vmem:[#allocation23_spill] sm:$0xff]  ;;  %v8411_v45 = vld [vmem:[#allocation21_spill] sm:$0xff] }
 0x57a   :  { %2048 = vmatmul.mubr.f32.vlgmr.msra.gmra.mrb[18].mxu0 %v7088_v55  ;;  %2119 = vmatmul.mubr.f32.vlgmr.msra.gmra.mrb[18].mxu1 %v7088_v55  ;;  %v8413_v55 = vld [vmem:[#allocation25_spill] sm:$0xff] }
 0x57b   :  { %4807 = vmatpush1.bf16.msra.mxu0 %v8403_v22  ;;  %4871 = vmatpush1.bf16.msra.mxu1 %v8404_v10  ;;  %v8414_v22 = vld [vmem:[#allocation26_spill] sm:$0xff]  ;;  %v8415_v10 = vld [vmem:[#allocation27_spill] sm:$0xff] }
 0x57c   :  { %4809 = vmatprep.subr.bf16.mxu0 %v8405_v11  ;;  %4873 = vmatprep.subr.bf16.mxu1 %v8406_v54  ;;  %v8416_v11 = vld [vmem:[#allocation28_spill] sm:$0xff]  ;;  %v8417_v54 = vld [vmem:[#allocation29_spill] sm:$0xff] }
 0x57f   :  { %4811 = vmatpush1.bf16.msra.mxu0 %v8407_v39  ;;  %4875 = vmatpush1.bf16.msra.mxu1 %v8408_v51  ;;  %v8418_v39 = vld [vmem:[#allocation30_spill] sm:$0xff]  ;;  %v8419_v51 = vld [vmem:[#allocation31_spill] sm:$0xff] }
 0x580   :  { %4813 = vmatprep.subr.bf16.mxu0 %v8409_v2  ;;  %4877 = vmatprep.subr.bf16.mxu1 %v8410_v40  ;;  %v8420_v2 = vld [vmem:[#allocation32_spill] sm:$0xff]  ;;  %v8421_v40 = vld [vmem:[#allocation33_spill] sm:$0xff] }
 0x583   :  { %4815 = vmatpush1.bf16.msra.mxu0 %v8411_v45  ;;  %4879 = vmatpush1.bf16.msra.mxu1 %v8412_v61  ;;  %v8422_v45 = vld [vmem:[#allocation34_spill] sm:$0xff]  ;;  %v8423_v61 = vld [vmem:[#allocation35_spill] sm:$0xff] }
 0x584   :  { %4817 = vmatprep.subr.bf16.mxu0 %v8413_v55  ;;  %4881 = vmatprep.subr.bf16.mxu1 %v8414_v22  ;;  %v8424_v55 = vld [vmem:[#allocation36_spill] sm:$0xff]  ;;  %v8425_v22 = vld [vmem:[#allocation37_spill] sm:$0xff] }
 0x587   :  { %4819 = vmatpush1.bf16.msra.mxu0 %v8415_v10  ;;  %4883 = vmatpush1.bf16.msra.mxu1 %v8416_v11  ;;  %v8426_v10 = vld [vmem:[#allocation38_spill] sm:$0xff]  ;;  %v8427_v11 = vld [vmem:[#allocation39_spill] sm:$0xff] }
 0x588   :  { %4821 = vmatprep.subr.bf16.mxu0 %v8417_v54  ;;  %4885 = vmatprep.subr.bf16.mxu1 %v8418_v39  ;;  %v8428_v54 = vld [vmem:[#allocation40_spill] sm:$0xff]  ;;  %v8429_v39 = vld [vmem:[#allocation41_spill] sm:$0xff] }
 0x58b   :  { %4823 = vmatpush1.bf16.msra.mxu0 %v8419_v51  ;;  %4887 = vmatpush1.bf16.msra.mxu1 %v8420_v2  ;;  %v8430_v51 = vld [vmem:[#allocation42_spill] sm:$0xff]  ;;  %v8431_v2 = vld [vmem:[#allocation43_spill] sm:$0xff] }
 0x58c   :  { %4825 = vmatprep.subr.bf16.mxu0 %v8421_v40  ;;  %4889 = vmatprep.subr.bf16.mxu1 %v8422_v45  ;;  %v8432_v40 = vld [vmem:[#allocation44_spill] sm:$0xff]  ;;  %v8433_v45 = vld [vmem:[#allocation45_spill] sm:$0xff] }
 0x58f   :  { %4827 = vmatpush1.bf16.msra.mxu0 %v8423_v61  ;;  %4891 = vmatpush1.bf16.msra.mxu1 %v8424_v55  ;;  %v8434_v61 = vld [vmem:[#allocation46_spill] sm:$0xff]  ;;  %v8435_v55 = vld [vmem:[#allocation47_spill] sm:$0xff] }
 0x590   :  { %4829 = vmatprep.subr.bf16.mxu0 %v8425_v22  ;;  %4893 = vmatprep.subr.bf16.mxu1 %v8426_v10  ;;  %v8436_v22 = vld [vmem:[#allocation48_spill] sm:$0xff]  ;;  %v8437_v10 = vld [vmem:[#allocation49_spill] sm:$0xff] }
 0x593   :  { %4831 = vmatpush1.bf16.msra.mxu0 %v8427_v11  ;;  %4895 = vmatpush1.bf16.msra.mxu1 %v8428_v54  ;;  %v8438_v11 = vld [vmem:[#allocation50_spill] sm:$0xff]  ;;  %v8439_v54 = vld [vmem:[#allocation51_spill] sm:$0xff] }
 0x594   :  { %4833 = vmatprep.subr.bf16.mxu0 %v8429_v39  ;;  %4897 = vmatprep.subr.bf16.mxu1 %v8430_v51  ;;  %v8440_v39 = vld [vmem:[#allocation52_spill] sm:$0xff]  ;;  %v8441_v51 = vld [vmem:[#allocation53_spill] sm:$0xff] }
 0x597   :  { %4835 = vmatpush1.bf16.msra.mxu0 %v8431_v2  ;;  %4899 = vmatpush1.bf16.msra.mxu1 %v8432_v40  ;;  %v8442_v2 = vld [vmem:[#allocation54_spill] sm:$0xff]  ;;  %v8443_v40 = vld [vmem:[#allocation55_spill] sm:$0xff] }
 0x598   :  { %4837 = vmatprep.subr.bf16.mxu0 %v8433_v45  ;;  %4901 = vmatprep.subr.bf16.mxu1 %v8434_v61  ;;  %v8444_v45 = vld [vmem:[#allocation56_spill] sm:$0xff]  ;;  %v8445_v61 = vld [vmem:[#allocation57_spill] sm:$0xff] }
 0x59b   :  { %4839 = vmatpush1.bf16.msra.mxu0 %v8435_v55  ;;  %4903 = vmatpush1.bf16.msra.mxu1 %v8436_v22  ;;  %v8446_v55 = vld [vmem:[#allocation58_spill] sm:$0xff]  ;;  %v8447_v22 = vld [vmem:[#allocation59_spill] sm:$0xff] }
 0x59c   :  { %4841 = vmatprep.subr.bf16.mxu0 %v8437_v10  ;;  %4905 = vmatprep.subr.bf16.mxu1 %v8438_v11  ;;  %v8448_v10 = vld [vmem:[#allocation60_spill] sm:$0xff]  ;;  %v8449_v11 = vld [vmem:[#allocation61_spill] sm:$0xff] }
 0x59f   :  { %4843 = vmatpush1.bf16.msra.mxu0 %v8439_v54  ;;  %4907 = vmatpush1.bf16.msra.mxu1 %v8440_v39  ;;  %v8450_v54 = vld [vmem:[#allocation62_spill] sm:$0xff]  ;;  %v8451_v39 = vld [vmem:[#allocation63_spill] sm:$0xff] }
 0x5a0   :  { %4845 = vmatprep.subr.bf16.mxu0 %v8441_v51  ;;  %4909 = vmatprep.subr.bf16.mxu1 %v8442_v2  ;;  %v8452_v51 = vld [vmem:[#allocation64_spill] sm:$0xff]  ;;  %v8453_v2 = vld [vmem:[#allocation65_spill] sm:$0xff] }
 0x5a3   :  { %4847 = vmatpush1.bf16.msra.mxu0 %v8443_v40  ;;  %4911 = vmatpush1.bf16.msra.mxu1 %v8444_v45  ;;  %v8454_v40 = vld [vmem:[#allocation66_spill] sm:$0xff]  ;;  %v8455_v45 = vld [vmem:[#allocation67_spill] sm:$0xff] }
 0x5a4   :  { %4849 = vmatprep.subr.bf16.mxu0 %v8445_v61  ;;  %4913 = vmatprep.subr.bf16.mxu1 %v8446_v55  ;;  %v8456_v61 = vld [vmem:[#allocation68_spill] sm:$0xff]  ;;  %v8457_v55 = vld [vmem:[#allocation69_spill] sm:$0xff] }
 0x5a7   :  { %4851 = vmatpush1.bf16.msra.mxu0 %v8447_v22  ;;  %4915 = vmatpush1.bf16.msra.mxu1 %v8448_v10  ;;  %v8458_v22 = vld [vmem:[#allocation70_spill] sm:$0xff]  ;;  %v8459_v10 = vld [vmem:[#allocation71_spill] sm:$0xff] }
 0x5a8   :  { %4853 = vmatprep.subr.bf16.mxu0 %v8449_v11  ;;  %4917 = vmatprep.subr.bf16.mxu1 %v8450_v54  ;;  %v8460_v11 = vld [vmem:[#allocation72_spill] sm:$0xff]  ;;  %v8461_v54 = vld [vmem:[#allocation73_spill] sm:$0xff] }
 0x5ab   :  { %4855 = vmatpush1.bf16.msra.mxu0 %v8451_v39  ;;  %4919 = vmatpush1.bf16.msra.mxu1 %v8452_v51  ;;  %v8462_v39 = vld [vmem:[#allocation74_spill] sm:$0xff]  ;;  %v8463_v51 = vld [vmem:[#allocation75_spill] sm:$0xff] }
 0x5ac   :  { %4857 = vmatprep.subr.bf16.mxu0 %v8453_v2  ;;  %4921 = vmatprep.subr.bf16.mxu1 %v8454_v40  ;;  %v8464_v2 = vld [vmem:[#allocation76_spill] sm:$0xff]  ;;  %v8465_v40 = vld [vmem:[#allocation77_spill] sm:$0xff] }
 0x5af   :  { %4859 = vmatpush1.bf16.msra.mxu0 %v8455_v45  ;;  %4923 = vmatpush1.bf16.msra.mxu1 %v8456_v61  ;;  %v8466_v45 = vld [vmem:[#allocation78_spill] sm:$0xff] }
 0x5b0   :  { %4861 = vmatprep.subr.bf16.mxu0 %v8457_v55  ;;  %4925 = vmatprep.subr.bf16.mxu1 %v8458_v22  ;;  %v2125_v55 = vld [vmem:[#allocation2 + $0x20] sm:$0x3] }
 0x5b3   :  { %4863 = vmatpush1.bf16.msra.mxu0 %v8459_v10  ;;  %4927 = vmatpush1.bf16.msra.mxu1 %v8460_v11  ;;  %v2126_v10 = vld [vmem:[#allocation2 + $0x28] sm:$0x3] }
 0x5b4   :  { %4865 = vmatprep.subr.bf16.mxu0 %v8461_v54  ;;  %4929 = vmatprep.subr.bf16.mxu1 %v8462_v39  ;;  %v2127_v39 = vld [vmem:[#allocation2 + $0x30] sm:$0x3] }
 0x5b7   :  { %4867 = vmatpush1.bf16.msra.mxu0 %v8463_v51  ;;  %4931 = vmatpush1.bf16.msra.mxu1 %v8464_v2 }
 0x5b8   :  { %4933 = vmatprep.subr.bf16.mxu0 %v8465_v40  ;;  %4997 = vmatprep.subr.bf16.mxu1 %v8466_v45 }
 0x60d   :  { %v1907_v61 = vpop.f32.mrb[16].mxu0  ;;  %v1978_v23 = vpop.f32.mrb[16].mxu1 }
 0x60e   :  { %v2129_v22 = vadd.f32 %v2125_v55, %v1907_v61  ;;  %v1909_v20 = vpop.f32.mrb[17].mxu0  ;;  %v1980_v31 = vpop.f32.mrb[17].mxu1  ;;  %v2131_v51 = vadd.f32 %v2127_v39, %v1978_v23 }
 0x60f   :  { %v2130_v11 = vadd.f32 %v2126_v10, %v1909_v20  ;;  %v2132_v2 = vadd.f32 %v2128_v56, %v1980_v31 }
 0x610   :  { %v3633_v36 = vmul.f32 -1.442695, %v2129_v22  ;;  %v3635_v21 = vmul.f32 -1.442695, %v2131_v51 }
 0x611   :  { %v3634_v54 = vmul.f32 -1.442695, %v2130_v11  ;;  %v2157_v11 = vrot.slane %v7077_v25, 6 }
 0x612   :  { %5846 = vpow2.f32 %v3633_v36 }
 0x613   :  { %5848 = vpow2.f32 %v3634_v54 }
 0x614   :  { %5850 = vtanh.f32 %v2132_v2 }
 0x615   :  { %5852 = vpow2.f32 %v3635_v21 }
 0x61c   :  { %v5847_v40 = vpop.eup %5846 }
 0x61d   :  { %v2146_v8 = vadd.f32 1.0, %v5847_v40  ;;  %v5849_v45 = vpop.eup %5848 }
 0x61e   :  { %v2147_v61 = vadd.f32 1.0, %v5849_v45  ;;  %v5851_v55 = vpop.eup %5850 }
 0x61f   :  { %5854 = vrcp.f32 %v2146_v8  ;;  %v5853_v60 = vpop.eup %5852 }
 0x620   :  { %5856 = vrcp.f32 %v2147_v61  ;;  %v2148_v22 = vadd.f32 1.0, %v5853_v60 }
 0x622   :  { %5858 = vrcp.f32 %v2148_v22 }
 0x629   :  { %v5855_v20 = vpop.eup %5854 }
 0x62a   :  { %v2160_v36 = vmul.f32 %v5855_v20, %v5851_v55  ;;  %v5857_v54 = vpop.eup %5856 }
 0x62b   :  { %v2159_v39 = vmul.f32 %v5857_v54, %v2157_v11 }
 0x62c   :  { %v5859_v2 = vpop.eup %5858 }
 0x62d   :  { %v7223_v23 = vadd.f32 %v2160_v36, %v2159_v39 }
 0x62f   :  { %5860 = vtanh.f32 %v7223_v23 }
 0x639   :  { %v5861_v40 = vpop.eup %5860 }
 0x63a   :  { %v7226_v21 = vmul.f32 %v5861_v40, %v5859_v2 }
 0x64d   :  { %v2049_v8 = vpop.f32.mrb[18].mxu0  ;;  %v2120_v56 = vpop.f32.mrb[18].mxu1 }
 0x64e   :  { %v2133_v31 = vadd.f32 %v2049_v8, %v8285_v58  ;;  %v2051_v51 = vpop.f32.mrb[19].mxu0  ;;  %v2122_v45 = vpop.f32.mrb[19].mxu1  ;;  %v2135_v61 = vadd.f32 %v2120_v56, %v6785_v27 }
 0x64f   :  { %v2134_v25 = vadd.f32 %v2051_v51, %v8286_v5  ;;  %v2136_v55 = vadd.f32 %v2122_v45, %v6789_v42 }
 0x650   :  { %v3636_v10 = vmul.f32 -1.442695, %v2133_v31  ;;  %v3638_v20 = vmul.f32 -1.442695, %v2135_v61  ;;  %v8468_v61 = vld [vmem:[#allocation120_spill] sm:$0xff] }
 0x651   :  { %v3637_v60 = vmul.f32 -1.442695, %v2134_v25 }
 0x652   :  { %5862 = vpow2.f32 %v3636_v10 }
 0x653   :  { %5864 = vpow2.f32 %v3637_v60 }
 0x654   :  { %5866 = vtanh.f32 %v2136_v55  ;;  %v8469_v55 = vld [vmem:[#allocation121_spill] sm:$0xff] }
 0x655   :  { %5868 = vpow2.f32 %v3638_v20  ;;  %v8470_v20 = vld [vmem:[#allocation122_spill] sm:$0xff] }
 0x65c   :  { %v5863_v11 = vpop.eup %5862 }
 0x65d   :  { %v2173_v36 = vadd.f32 1.0, %v5863_v11  ;;  %v5865_v54 = vpop.eup %5864  ;;  %v8471_v11 = vld [vmem:[#allocation123_spill] sm:$0xff] }
 0x65e   :  { %v2174_v22 = vadd.f32 1.0, %v5865_v54  ;;  %v5867_v39 = vpop.eup %5866  ;;  %v8473_v54 = vld [vmem:[#allocation125_spill] sm:$0xff] }
 0x65f   :  { %5870 = vrcp.f32 %v2173_v36  ;;  %v5869_v2 = vpop.eup %5868  ;;  %v8472_v36 = vld [vmem:[#allocation124_spill] sm:$0xff] }
 0x660   :  { %5872 = vrcp.f32 %v2174_v22  ;;  %v2175_v51 = vadd.f32 1.0, %v5869_v2  ;;  %v8474_v22 = vld [vmem:[#allocation126_spill] sm:$0xff]  ;;  %v8476_v2 = vld [vmem:[#allocation128_spill] sm:$0xff] }
 0x662   :  { %5874 = vrcp.f32 %v2175_v51  ;;  %v8480_v51 = vld [vmem:[#allocation132_spill] sm:$0xff] }
 0x669   :  { %v5871_v40 = vpop.eup %5870 }
 0x66a   :  { %v2184_v8 = vmul.f32 %v5871_v40, %v5867_v39  ;;  %v5873_v31 = vpop.eup %5872  ;;  %v8475_v39 = vld [vmem:[#allocation127_spill] sm:$0xff]  ;;  %v8477_v40 = vld [vmem:[#allocation129_spill] sm:$0xff] }
 0x66b   :  { %v2183_v25 = vmul.f32 %v5873_v31, %v7085_v50  ;;  %v8467_v50 = vld [vmem:[#allocation119_spill] sm:$0xff] }
 0x66c   :  { %v5875_v45 = vpop.eup %5874  ;;  %v8479_v31 = vld [vmem:[#allocation131_spill] sm:$0xff] }
 0x66d   :  { %v7233_v56 = vadd.f32 %v2184_v8, %v2183_v25  ;;  %v8478_v8 = vld [vmem:[#allocation130_spill] sm:$0xff]  ;;  %v8481_v25 = vld [vmem:[#allocation133_spill] sm:$0xff] }
 0x66f   :  { %5876 = vtanh.f32 %v7233_v56 }
 0x679   :  { %v5877_v10 = vpop.eup %5876 }
 0x67a   :  { %v2187_v60 = vmul.f32 %v5877_v10, %v5875_v45  ;;  %v8482_v45 = vld [vmem:[#allocation134_spill] sm:$0xff]  ;;  %v8483_v10 = vld [vmem:[#allocation135_spill] sm:$0xff] }
 0x67c   :  { %2252 = vmatprep.mubr.f32.mxu0 %v2187_v60  ;;  %2323 = vmatprep.mubr.f32.mxu1 %v2187_v60 }
 0x67d   :  { %2253 = vmatmul.mubr.f32.vlgmr.msra.gmra.mrb[20].mxu0 %v7226_v21  ;;  %2324 = vmatmul.mubr.f32.vlgmr.msra.gmra.mrb[20].mxu1 %v7226_v21 }
 0x67e   :  { %4935 = vmatpush1.bf16.msra.mxu0 %v8200_v12  ;;  %4999 = vmatpush1.bf16.msra.mxu1 %v8201_v49 }
 0x67f   :  { %2394 = vmatprep.mubr.f32.mxu0 %v2187_v60  ;;  %2465 = vmatprep.mubr.f32.mxu1 %v2187_v60  ;;  %v8484_v60 = vld [vmem:[#allocation136_spill] sm:$0xff] }
 0x680   :  { %4937 = vmatprep.subr.bf16.mxu0 %v6508_v32  ;;  %5001 = vmatprep.subr.bf16.mxu1 %v8202_v34 }
 0x682   :  { %4939 = vmatpush1.bf16.msra.mxu0 %v8203_v59  ;;  %5003 = vmatpush1.bf16.msra.mxu1 %v8204_v47 }
 0x683   :  { %4941 = vmatprep.subr.bf16.mxu0 %v8287_v46  ;;  %5005 = vmatprep.subr.bf16.mxu1 %v8288_v33 }
 0x686   :  { %4943 = vmatpush1.bf16.msra.mxu0 %v8289_v41  ;;  %5007 = vmatpush1.bf16.msra.mxu1 %v8290_v3 }
 0x687   :  { %4945 = vmatprep.subr.bf16.mxu0 %v8291_v17  ;;  %5009 = vmatprep.subr.bf16.mxu1 %v8292_v52 }
 0x68a   :  { %4947 = vmatpush1.bf16.msra.mxu0 %v8293_v18  ;;  %5011 = vmatpush1.bf16.msra.mxu1 %v8376_v24 }
 0x68b   :  { %4949 = vmatprep.subr.bf16.mxu0 %v8377_v9  ;;  %5013 = vmatprep.subr.bf16.mxu1 %v8378_v1 }
 0x68e   :  { %4951 = vmatpush1.bf16.msra.mxu0 %v8379_v15  ;;  %5015 = vmatpush1.bf16.msra.mxu1 %v8380_v4 }
 0x68f   :  { %4953 = vmatprep.subr.bf16.mxu0 %v8381_v19  ;;  %5017 = vmatprep.subr.bf16.mxu1 %v8382_v57 }
 0x692   :  { %4955 = vmatpush1.bf16.msra.mxu0 %v8383_v14  ;;  %5019 = vmatpush1.bf16.msra.mxu1 %v8384_v0 }
 0x693   :  { %4957 = vmatprep.subr.bf16.mxu0 %v8385_v13  ;;  %5021 = vmatprep.subr.bf16.mxu1 %v8386_v16 }
 0x696   :  { %4959 = vmatpush1.bf16.msra.mxu0 %v8387_v7  ;;  %5023 = vmatpush1.bf16.msra.mxu1 %v8388_v26 }
 0x697   :  { %4961 = vmatprep.subr.bf16.mxu0 %v8389_v6  ;;  %5025 = vmatprep.subr.bf16.mxu1 %v8390_v43 }
 0x69a   :  { %4963 = vmatpush1.bf16.msra.mxu0 %v8309_v30  ;;  %5027 = vmatpush1.bf16.msra.mxu1 %v8310_v28 }
 0x69b   :  { %4965 = vmatprep.subr.bf16.mxu0 %v8311_v35  ;;  %5029 = vmatprep.subr.bf16.mxu1 %v8312_v63 }
 0x69e   :  { %4967 = vmatpush1.bf16.msra.mxu0 %v8313_v53  ;;  %5031 = vmatpush1.bf16.msra.mxu1 %v8314_v44 }
 0x69f   :  { %4969 = vmatprep.subr.bf16.mxu0 %v8315_v48  ;;  %5033 = vmatprep.subr.bf16.mxu1 %v8316_v29 }
 0x6a2   :  { %4971 = vmatpush1.bf16.msra.mxu0 %v8317_v37  ;;  %5035 = vmatpush1.bf16.msra.mxu1 %v8318_v38 }
 0x6a3   :  { %4973 = vmatprep.subr.bf16.mxu0 %v8319_v62  ;;  %5037 = vmatprep.subr.bf16.mxu1 %v8467_v50 }
 0x6a6   :  { %4975 = vmatpush1.bf16.msra.mxu0 %v8468_v61  ;;  %5039 = vmatpush1.bf16.msra.mxu1 %v8469_v55  ;;  %v2475_v61 = vld [vmem:[#allocation2 + $0x38] sm:$0xc] }
 0x6a7   :  { %4977 = vmatprep.subr.bf16.mxu0 %v8470_v20  ;;  %5041 = vmatprep.subr.bf16.mxu1 %v8471_v11  ;;  %v2473_v11 = vld [vmem:[#allocation2 + $0x28] sm:$0xc] }
 0x6aa   :  { %4979 = vmatpush1.bf16.msra.mxu0 %v8472_v36  ;;  %5043 = vmatpush1.bf16.msra.mxu1 %v8473_v54 }
 0x6ab   :  { %4981 = vmatprep.subr.bf16.mxu0 %v8474_v22  ;;  %5045 = vmatprep.subr.bf16.mxu1 %v8475_v39  ;;  %v8485_v22 = vld [vmem:[#allocation137_spill] sm:$0xff]  ;;  %v8486_v39 = vld [vmem:[#allocation138_spill] sm:$0xff] }
 0x6ae   :  { %4983 = vmatpush1.bf16.msra.mxu0 %v8476_v2  ;;  %5047 = vmatpush1.bf16.msra.mxu1 %v8477_v40  ;;  %v8487_v2 = vld [vmem:[#allocation139_spill] sm:$0xff]  ;;  %v8488_v40 = vld [vmem:[#allocation140_spill] sm:$0xff] }
 0x6af   :  { %4985 = vmatprep.subr.bf16.mxu0 %v8478_v8  ;;  %5049 = vmatprep.subr.bf16.mxu1 %v8479_v31  ;;  %v8489_v8 = vld [vmem:[#allocation141_spill] sm:$0xff] }
 0x6b0   :  { %v8490_v31 = vld [vmem:[#allocation13_spill] sm:$0xff] }
 0x6b2   :  { %4987 = vmatpush1.bf16.msra.mxu0 %v8480_v51  ;;  %5051 = vmatpush1.bf16.msra.mxu1 %v8481_v25  ;;  %v8491_v51 = vld [vmem:[#allocation16_spill] sm:$0xff] }
 0x6b3   :  { %4989 = vmatprep.subr.bf16.mxu0 %v8482_v45  ;;  %5053 = vmatprep.subr.bf16.mxu1 %v8483_v10  ;;  %v8492_v10 = vld [vmem:[#allocation14_spill] sm:$0xff]  ;;  %v8501_v45 = vld [vmem:[#allocation24_spill] sm:$0xff] }
 0x6b6   :  { %4991 = vmatpush1.bf16.msra.mxu0 %v8484_v60  ;;  %5055 = vmatpush1.bf16.msra.mxu1 %v8485_v22  ;;  %v8493_v60 = vld [vmem:[#allocation18_spill] sm:$0xff]  ;;  %v8494_v22 = vld [vmem:[#allocation15_spill] sm:$0xff] }
 0x6b7   :  { %4993 = vmatprep.subr.bf16.mxu0 %v8486_v39  ;;  %5057 = vmatprep.subr.bf16.mxu1 %v8487_v2  ;;  %v8495_v39 = vld [vmem:[#allocation20_spill] sm:$0xff]  ;;  %v8496_v2 = vld [vmem:[#allocation17_spill] sm:$0xff] }
 0x6ba   :  { %4995 = vmatpush1.bf16.msra.mxu0 %v8488_v40  ;;  %5059 = vmatpush1.bf16.msra.mxu1 %v8489_v8  ;;  %v8497_v40 = vld [vmem:[#allocation22_spill] sm:$0xff]  ;;  %v8498_v8 = vld [vmem:[#allocation19_spill] sm:$0xff] }
 0x6bb   :  { %5061 = vmatprep.subr.bf16.mxu0 %v8490_v31  ;;  %5125 = vmatprep.subr.bf16.mxu1 %v8491_v51  ;;  %v8499_v31 = vld [vmem:[#allocation23_spill] sm:$0xff]  ;;  %v8500_v51 = vld [vmem:[#allocation21_spill] sm:$0xff] }
 0x6bd   :  { %2395 = vmatmul.mubr.f32.vlgmr.msra.gmra.mrb[22].mxu0 %v7226_v21  ;;  %2466 = vmatmul.mubr.f32.vlgmr.msra.gmra.mrb[22].mxu1 %v7226_v21  ;;  %v8502_v21 = vld [vmem:[#allocation25_spill] sm:$0xff] }
 0x6be   :  { %5063 = vmatpush1.bf16.msra.mxu0 %v8492_v10  ;;  %5127 = vmatpush1.bf16.msra.mxu1 %v8493_v60  ;;  %v8503_v10 = vld [vmem:[#allocation26_spill] sm:$0xff]  ;;  %v8504_v60 = vld [vmem:[#allocation27_spill] sm:$0xff] }
 0x6bf   :  { %5065 = vmatprep.subr.bf16.mxu0 %v8494_v22  ;;  %5129 = vmatprep.subr.bf16.mxu1 %v8495_v39  ;;  %v8505_v22 = vld [vmem:[#allocation28_spill] sm:$0xff]  ;;  %v8506_v39 = vld [vmem:[#allocation29_spill] sm:$0xff] }
 0x6c2   :  { %5067 = vmatpush1.bf16.msra.mxu0 %v8496_v2  ;;  %5131 = vmatpush1.bf16.msra.mxu1 %v8497_v40  ;;  %v8507_v2 = vld [vmem:[#allocation30_spill] sm:$0xff]  ;;  %v8508_v40 = vld [vmem:[#allocation31_spill] sm:$0xff] }
 0x6c3   :  { %5069 = vmatprep.subr.bf16.mxu0 %v8498_v8  ;;  %5133 = vmatprep.subr.bf16.mxu1 %v8499_v31  ;;  %v8509_v8 = vld [vmem:[#allocation32_spill] sm:$0xff]  ;;  %v8510_v31 = vld [vmem:[#allocation33_spill] sm:$0xff] }
 0x6c6   :  { %5071 = vmatpush1.bf16.msra.mxu0 %v8500_v51  ;;  %5135 = vmatpush1.bf16.msra.mxu1 %v8501_v45  ;;  %v8511_v51 = vld [vmem:[#allocation34_spill] sm:$0xff]  ;;  %v8512_v45 = vld [vmem:[#allocation35_spill] sm:$0xff] }
 0x6c7   :  { %5073 = vmatprep.subr.bf16.mxu0 %v8502_v21  ;;  %5137 = vmatprep.subr.bf16.mxu1 %v8503_v10  ;;  %v8513_v21 = vld [vmem:[#allocation36_spill] sm:$0xff]  ;;  %v8514_v10 = vld [vmem:[#allocation37_spill] sm:$0xff] }
 0x6ca   :  { %5075 = vmatpush1.bf16.msra.mxu0 %v8504_v60  ;;  %5139 = vmatpush1.bf16.msra.mxu1 %v8505_v22  ;;  %v8515_v60 = vld [vmem:[#allocation38_spill] sm:$0xff]  ;;  %v8516_v22 = vld [vmem:[#allocation39_spill] sm:$0xff] }
 0x6cb   :  { %5077 = vmatprep.subr.bf16.mxu0 %v8506_v39  ;;  %5141 = vmatprep.subr.bf16.mxu1 %v8507_v2  ;;  %v8517_v39 = vld [vmem:[#allocation40_spill] sm:$0xff]  ;;  %v8518_v2 = vld [vmem:[#allocation41_spill] sm:$0xff] }
 0x6ce   :  { %5079 = vmatpush1.bf16.msra.mxu0 %v8508_v40  ;;  %5143 = vmatpush1.bf16.msra.mxu1 %v8509_v8  ;;  %v8519_v40 = vld [vmem:[#allocation42_spill] sm:$0xff]  ;;  %v8520_v8 = vld [vmem:[#allocation43_spill] sm:$0xff] }
 0x6cf   :  { %5081 = vmatprep.subr.bf16.mxu0 %v8510_v31  ;;  %5145 = vmatprep.subr.bf16.mxu1 %v8511_v51  ;;  %v8521_v31 = vld [vmem:[#allocation44_spill] sm:$0xff]  ;;  %v8522_v51 = vld [vmem:[#allocation45_spill] sm:$0xff] }
 0x6d2   :  { %5083 = vmatpush1.bf16.msra.mxu0 %v8512_v45  ;;  %5147 = vmatpush1.bf16.msra.mxu1 %v8513_v21  ;;  %v8523_v45 = vld [vmem:[#allocation46_spill] sm:$0xff]  ;;  %v8524_v21 = vld [vmem:[#allocation47_spill] sm:$0xff] }
 0x6d3   :  { %5085 = vmatprep.subr.bf16.mxu0 %v8514_v10  ;;  %5149 = vmatprep.subr.bf16.mxu1 %v8515_v60  ;;  %v8525_v10 = vld [vmem:[#allocation48_spill] sm:$0xff]  ;;  %v8526_v60 = vld [vmem:[#allocation49_spill] sm:$0xff] }
 0x6d6   :  { %5087 = vmatpush1.bf16.msra.mxu0 %v8516_v22  ;;  %5151 = vmatpush1.bf16.msra.mxu1 %v8517_v39  ;;  %v8527_v22 = vld [vmem:[#allocation50_spill] sm:$0xff]  ;;  %v8528_v39 = vld [vmem:[#allocation51_spill] sm:$0xff] }
 0x6d7   :  { %5089 = vmatprep.subr.bf16.mxu0 %v8518_v2  ;;  %5153 = vmatprep.subr.bf16.mxu1 %v8519_v40  ;;  %v8529_v2 = vld [vmem:[#allocation52_spill] sm:$0xff]  ;;  %v8530_v40 = vld [vmem:[#allocation53_spill] sm:$0xff] }
 0x6da   :  { %5091 = vmatpush1.bf16.msra.mxu0 %v8520_v8  ;;  %5155 = vmatpush1.bf16.msra.mxu1 %v8521_v31  ;;  %v8531_v8 = vld [vmem:[#allocation54_spill] sm:$0xff]  ;;  %v8532_v31 = vld [vmem:[#allocation55_spill] sm:$0xff] }
 0x6db   :  { %5093 = vmatprep.subr.bf16.mxu0 %v8522_v51  ;;  %5157 = vmatprep.subr.bf16.mxu1 %v8523_v45  ;;  %v8533_v51 = vld [vmem:[#allocation56_spill] sm:$0xff]  ;;  %v8534_v45 = vld [vmem:[#allocation57_spill] sm:$0xff] }
 0x6de   :  { %5095 = vmatpush1.bf16.msra.mxu0 %v8524_v21  ;;  %5159 = vmatpush1.bf16.msra.mxu1 %v8525_v10  ;;  %v8535_v21 = vld [vmem:[#allocation58_spill] sm:$0xff]  ;;  %v8536_v10 = vld [vmem:[#allocation59_spill] sm:$0xff] }
 0x6df   :  { %5097 = vmatprep.subr.bf16.mxu0 %v8526_v60  ;;  %5161 = vmatprep.subr.bf16.mxu1 %v8527_v22  ;;  %v8537_v60 = vld [vmem:[#allocation60_spill] sm:$0xff]  ;;  %v8538_v22 = vld [vmem:[#allocation61_spill] sm:$0xff] }
 0x6e2   :  { %5099 = vmatpush1.bf16.msra.mxu0 %v8528_v39  ;;  %5163 = vmatpush1.bf16.msra.mxu1 %v8529_v2  ;;  %v8539_v39 = vld [vmem:[#allocation62_spill] sm:$0xff]  ;;  %v8540_v2 = vld [vmem:[#allocation63_spill] sm:$0xff] }
 0x6e3   :  { %5101 = vmatprep.subr.bf16.mxu0 %v8530_v40  ;;  %5165 = vmatprep.subr.bf16.mxu1 %v8531_v8  ;;  %v8541_v40 = vld [vmem:[#allocation64_spill] sm:$0xff]  ;;  %v8542_v8 = vld [vmem:[#allocation65_spill] sm:$0xff] }
 0x6e6   :  { %5103 = vmatpush1.bf16.msra.mxu0 %v8532_v31  ;;  %5167 = vmatpush1.bf16.msra.mxu1 %v8533_v51  ;;  %v8543_v31 = vld [vmem:[#allocation66_spill] sm:$0xff]  ;;  %v8544_v51 = vld [vmem:[#allocation67_spill] sm:$0xff] }
 0x6e7   :  { %5105 = vmatprep.subr.bf16.mxu0 %v8534_v45  ;;  %5169 = vmatprep.subr.bf16.mxu1 %v8535_v21  ;;  %v8545_v45 = vld [vmem:[#allocation68_spill] sm:$0xff]  ;;  %v8546_v21 = vld [vmem:[#allocation69_spill] sm:$0xff] }
 0x6ea   :  { %5107 = vmatpush1.bf16.msra.mxu0 %v8536_v10  ;;  %5171 = vmatpush1.bf16.msra.mxu1 %v8537_v60  ;;  %v8547_v10 = vld [vmem:[#allocation70_spill] sm:$0xff]  ;;  %v8548_v60 = vld [vmem:[#allocation71_spill] sm:$0xff] }
 0x6eb   :  { %5109 = vmatprep.subr.bf16.mxu0 %v8538_v22  ;;  %5173 = vmatprep.subr.bf16.mxu1 %v8539_v39  ;;  %v8549_v22 = vld [vmem:[#allocation72_spill] sm:$0xff]  ;;  %v8550_v39 = vld [vmem:[#allocation73_spill] sm:$0xff] }
 0x6ee   :  { %5111 = vmatpush1.bf16.msra.mxu0 %v8540_v2  ;;  %5175 = vmatpush1.bf16.msra.mxu1 %v8541_v40  ;;  %v8551_v2 = vld [vmem:[#allocation74_spill] sm:$0xff]  ;;  %v8552_v40 = vld [vmem:[#allocation75_spill] sm:$0xff] }
 0x6ef   :  { %5113 = vmatprep.subr.bf16.mxu0 %v8542_v8  ;;  %5177 = vmatprep.subr.bf16.mxu1 %v8543_v31  ;;  %v8553_v8 = vld [vmem:[#allocation76_spill] sm:$0xff]  ;;  %v8554_v31 = vld [vmem:[#allocation77_spill] sm:$0xff] }
 0x6f2   :  { %5115 = vmatpush1.bf16.msra.mxu0 %v8544_v51  ;;  %5179 = vmatpush1.bf16.msra.mxu1 %v8545_v45  ;;  %v8555_v51 = vld [vmem:[#allocation78_spill] sm:$0xff] }
 0x6f3   :  { %5117 = vmatprep.subr.bf16.mxu0 %v8546_v21  ;;  %5181 = vmatprep.subr.bf16.mxu1 %v8547_v10 }
 0x6f6   :  { %5119 = vmatpush1.bf16.msra.mxu0 %v8548_v60  ;;  %5183 = vmatpush1.bf16.msra.mxu1 %v8549_v22  ;;  %v2472_v60 = vld [vmem:[#allocation2 + $0x20] sm:$0xc] }
 0x6f7   :  { %5121 = vmatprep.subr.bf16.mxu0 %v8550_v39  ;;  %5185 = vmatprep.subr.bf16.mxu1 %v8551_v2 }
 0x6fa   :  { %5123 = vmatpush1.bf16.msra.mxu0 %v8552_v40  ;;  %5187 = vmatpush1.bf16.msra.mxu1 %v8553_v8  ;;  %v2474_v8 = vld [vmem:[#allocation2 + $0x30] sm:$0xc] }
 0x6fb   :  { %5189 = vmatprep.subr.bf16.mxu0 %v8554_v31  ;;  %5253 = vmatprep.subr.bf16.mxu1 %v8555_v51 }
 0x750   :  { %v2254_v45 = vpop.f32.mrb[20].mxu0  ;;  %v2325_v21 = vpop.f32.mrb[20].mxu1 }
 0x751   :  { %v2480_v25 = vrot.slane %v2254_v45, 6  ;;  %v2256_v10 = vpop.f32.mrb[21].mxu0  ;;  %v2327_v54 = vpop.f32.mrb[21].mxu1  ;;  %v2482_v40 = vrot.slane %v2325_v21, 6 }
 0x752   :  { %v2481_v36 = vrot.slane %v2256_v10, 6  ;;  %v2483_v55 = vrot.slane %v2327_v54, 6 }
 0x753   :  { %v2488_v22 = vadd.f32 %v2480_v25, %v2472_v60  ;;  %v2490_v31 = vadd.f32 %v2482_v40, %v2474_v8 }
 0x754   :  { %v2489_v39 = vadd.f32 %v2481_v36, %v2473_v11  ;;  %v2491_v51 = vadd.f32 %v2483_v55, %v2475_v61 }
 0x755   :  { %v3639_v20 = vmul.f32 -1.442695, %v2488_v22  ;;  %v3641_v50 = vmul.f32 -1.442695, %v2490_v31 }
 0x756   :  { %v3640_v2 = vmul.f32 -1.442695, %v2489_v39 }
 0x757   :  { %5878 = vpow2.f32 %v3639_v20  ;;  %v2516_v20 = vrot.slane %v7223_v23, 6 }
 0x758   :  { %5880 = vpow2.f32 %v3640_v2 }
 0x759   :  { %5882 = vtanh.f32 %v2491_v51 }
 0x75a   :  { %5884 = vpow2.f32 %v3641_v50 }
 0x761   :  { %v5879_v62 = vpop.eup %5878 }
 0x762   :  { %v2505_v45 = vadd.f32 1.0, %v5879_v62  ;;  %v5881_v38 = vpop.eup %5880 }
 0x763   :  { %v2506_v25 = vadd.f32 1.0, %v5881_v38  ;;  %v5883_v11 = vpop.eup %5882 }
 0x764   :  { %5886 = vrcp.f32 %v2505_v45  ;;  %v5885_v36 = vpop.eup %5884 }
 0x765   :  { %5888 = vrcp.f32 %v2506_v25  ;;  %v2507_v54 = vadd.f32 1.0, %v5885_v36 }
 0x767   :  { %5890 = vrcp.f32 %v2507_v54 }
 0x76e   :  { %v5887_v22 = vpop.eup %5886 }
 0x76f   :  { %v2519_v39 = vmul.f32 %v5887_v22, %v5883_v11  ;;  %v5889_v2 = vpop.eup %5888 }
 0x770   :  { %v2518_v40 = vmul.f32 %v5889_v2, %v2516_v20 }
 0x771   :  { %v5891_v62 = vpop.eup %5890 }
 0x772   :  { %v7369_v8 = vadd.f32 %v2519_v39, %v2518_v40 }
 0x774   :  { %5892 = vtanh.f32 %v7369_v8 }
 0x77e   :  { %v5893_v61 = vpop.eup %5892 }
 0x77f   :  { %v2522_v50 = vmul.f32 %v5893_v61, %v5891_v62 }
 0x790   :  { %v2396_v55 = vpop.f32.mrb[22].mxu0  ;;  %v2467_v38 = vpop.f32.mrb[22].mxu1 }
 0x791   :  { %v2492_v31 = vadd.f32 %v2396_v55, %v8285_v58  ;;  %v2398_v51 = vpop.f32.mrb[23].mxu0  ;;  %v2469_v10 = vpop.f32.mrb[23].mxu1  ;;  %v2494_v45 = vadd.f32 %v2467_v38, %v6785_v27 }
 0x792   :  { %v2493_v23 = vadd.f32 %v2398_v51, %v8286_v5  ;;  %v2495_v25 = vadd.f32 %v2469_v10, %v6789_v42 }
 0x793   :  { %v3642_v60 = vmul.f32 -1.442695, %v2492_v31  ;;  %v3644_v11 = vmul.f32 -1.442695, %v2494_v45  ;;  %v7380_v45 = vrot.slane %v2522_v50, 2  ;;  %v8557_v50 = vld [vmem:[#allocation118_spill] sm:$0xff] }
 0x794   :  { %v3643_v21 = vmul.f32 -1.442695, %v2493_v23 }
 0x795   :  { %5894 = vpow2.f32 %v3642_v60 }
 0x796   :  { %5896 = vpow2.f32 %v3643_v21 }
 0x797   :  { %5898 = vtanh.f32 %v2495_v25  ;;  %v8558_v25 = vld [vmem:[#allocation119_spill] sm:$0xff] }
 0x798   :  { %5900 = vpow2.f32 %v3644_v11  ;;  %v8559_v11 = vld [vmem:[#allocation120_spill] sm:$0xff] }
 0x79f   :  { %v5895_v36 = vpop.eup %5894 }
 0x7a0   :  { %v2532_v22 = vadd.f32 1.0, %v5895_v36  ;;  %v5897_v20 = vpop.eup %5896  ;;  %v8560_v36 = vld [vmem:[#allocation121_spill] sm:$0xff] }
 0x7a1   :  { %v2533_v39 = vadd.f32 1.0, %v5897_v20  ;;  %v5899_v2 = vpop.eup %5898  ;;  %v8562_v20 = vld [vmem:[#allocation123_spill] sm:$0xff] }
 0x7a2   :  { %5902 = vrcp.f32 %v2532_v22  ;;  %v5901_v54 = vpop.eup %5900  ;;  %v8561_v22 = vld [vmem:[#allocation122_spill] sm:$0xff] }
 0x7a3   :  { %5904 = vrcp.f32 %v2533_v39  ;;  %v2534_v55 = vadd.f32 1.0, %v5901_v54  ;;  %v8563_v39 = vld [vmem:[#allocation124_spill] sm:$0xff]  ;;  %v8565_v54 = vld [vmem:[#allocation126_spill] sm:$0xff] }
 0x7a5   :  { %5906 = vrcp.f32 %v2534_v55  ;;  %v8569_v55 = vld [vmem:[#allocation130_spill] sm:$0xff] }
 0x7ac   :  { %v5903_v40 = vpop.eup %5902 }
 0x7ad   :  { %v2543_v62 = vmul.f32 %v5903_v40, %v5899_v2  ;;  %v5905_v61 = vpop.eup %5904  ;;  %v8564_v2 = vld [vmem:[#allocation125_spill] sm:$0xff]  ;;  %v8566_v40 = vld [vmem:[#allocation127_spill] sm:$0xff] }
 0x7ae   :  { %v2542_v31 = vmul.f32 %v5905_v61, %v7233_v56  ;;  %v8556_v56 = vld [vmem:[#allocation117_spill] sm:$0xff] }
 0x7af   :  { %v5907_v51 = vpop.eup %5906  ;;  %v8568_v61 = vld [vmem:[#allocation129_spill] sm:$0xff] }
 0x7b0   :  { %v7377_v38 = vadd.f32 %v2543_v62, %v2542_v31  ;;  %v8567_v62 = vld [vmem:[#allocation128_spill] sm:$0xff]  ;;  %v8570_v31 = vld [vmem:[#allocation131_spill] sm:$0xff] }
 0x7b2   :  { %5908 = vtanh.f32 %v7377_v38 }
 0x7bc   :  { %v5909_v10 = vpop.eup %5908 }
 0x7bd   :  { %v2546_v23 = vmul.f32 %v5909_v10, %v5907_v51  ;;  %v8571_v51 = vld [vmem:[#allocation132_spill] sm:$0xff]  ;;  %v8572_v10 = vld [vmem:[#allocation133_spill] sm:$0xff] }
 0x7bf   :  { %v2548_v60 = vrot.slane %v2546_v23, 6  ;;  %v8573_v23 = vld [vmem:[#allocation134_spill] sm:$0xff] }
 0x7c1   :  { %v2551_v21 = vrot.slane %v2548_v60, 2  ;;  %v8574_v60 = vld [vmem:[#allocation135_spill] sm:$0xff] }
 0x7c3   :  { %2618 = vmatprep.mubr.f32.mxu0 %v2551_v21  ;;  %2689 = vmatprep.mubr.f32.mxu1 %v2551_v21 }
 0x7c4   :  { %2619 = vmatmul.mubr.f32.vlgmr.msra.gmra.mrb[24].mxu0 %v7380_v45  ;;  %2690 = vmatmul.mubr.f32.vlgmr.msra.gmra.mrb[24].mxu1 %v7380_v45 }
 0x7c5   :  { %5191 = vmatpush1.bf16.msra.mxu0 %v8200_v12  ;;  %5255 = vmatpush1.bf16.msra.mxu1 %v8201_v49 }
 0x7c6   :  { %2760 = vmatprep.mubr.f32.mxu0 %v2551_v21  ;;  %2831 = vmatprep.mubr.f32.mxu1 %v2551_v21  ;;  %v8575_v21 = vld [vmem:[#allocation136_spill] sm:$0xff] }
 0x7c7   :  { %5193 = vmatprep.subr.bf16.mxu0 %v6508_v32  ;;  %5257 = vmatprep.subr.bf16.mxu1 %v8202_v34 }
 0x7c9   :  { %5195 = vmatpush1.bf16.msra.mxu0 %v8203_v59  ;;  %5259 = vmatpush1.bf16.msra.mxu1 %v8204_v47 }
 0x7ca   :  { %5197 = vmatprep.subr.bf16.mxu0 %v8287_v46  ;;  %5261 = vmatprep.subr.bf16.mxu1 %v8288_v33 }
 0x7cd   :  { %5199 = vmatpush1.bf16.msra.mxu0 %v8289_v41  ;;  %5263 = vmatpush1.bf16.msra.mxu1 %v8290_v3 }
 0x7ce   :  { %5201 = vmatprep.subr.bf16.mxu0 %v8291_v17  ;;  %5265 = vmatprep.subr.bf16.mxu1 %v8292_v52 }
 0x7d1   :  { %5203 = vmatpush1.bf16.msra.mxu0 %v8293_v18  ;;  %5267 = vmatpush1.bf16.msra.mxu1 %v8376_v24 }
 0x7d2   :  { %5205 = vmatprep.subr.bf16.mxu0 %v8377_v9  ;;  %5269 = vmatprep.subr.bf16.mxu1 %v8378_v1 }
 0x7d5   :  { %5207 = vmatpush1.bf16.msra.mxu0 %v8379_v15  ;;  %5271 = vmatpush1.bf16.msra.mxu1 %v8380_v4 }
 0x7d6   :  { %5209 = vmatprep.subr.bf16.mxu0 %v8381_v19  ;;  %5273 = vmatprep.subr.bf16.mxu1 %v8382_v57 }
 0x7d9   :  { %5211 = vmatpush1.bf16.msra.mxu0 %v8383_v14  ;;  %5275 = vmatpush1.bf16.msra.mxu1 %v8384_v0 }
 0x7da   :  { %5213 = vmatprep.subr.bf16.mxu0 %v8385_v13  ;;  %5277 = vmatprep.subr.bf16.mxu1 %v8386_v16 }
 0x7dd   :  { %5215 = vmatpush1.bf16.msra.mxu0 %v8387_v7  ;;  %5279 = vmatpush1.bf16.msra.mxu1 %v8388_v26 }
 0x7de   :  { %5217 = vmatprep.subr.bf16.mxu0 %v8389_v6  ;;  %5281 = vmatprep.subr.bf16.mxu1 %v8390_v43 }
 0x7e1   :  { %5219 = vmatpush1.bf16.msra.mxu0 %v8309_v30  ;;  %5283 = vmatpush1.bf16.msra.mxu1 %v8310_v28 }
 0x7e2   :  { %5221 = vmatprep.subr.bf16.mxu0 %v8311_v35  ;;  %5285 = vmatprep.subr.bf16.mxu1 %v8312_v63 }
 0x7e5   :  { %5223 = vmatpush1.bf16.msra.mxu0 %v8313_v53  ;;  %5287 = vmatpush1.bf16.msra.mxu1 %v8314_v44 }
 0x7e6   :  { %5225 = vmatprep.subr.bf16.mxu0 %v8315_v48  ;;  %5289 = vmatprep.subr.bf16.mxu1 %v8316_v29 }
 0x7e9   :  { %5227 = vmatpush1.bf16.msra.mxu0 %v8317_v37  ;;  %5291 = vmatpush1.bf16.msra.mxu1 %v8556_v56 }
 0x7ea   :  { %5229 = vmatprep.subr.bf16.mxu0 %v8557_v50  ;;  %5293 = vmatprep.subr.bf16.mxu1 %v8558_v25 }
 0x7ed   :  { %5231 = vmatpush1.bf16.msra.mxu0 %v8559_v11  ;;  %5295 = vmatpush1.bf16.msra.mxu1 %v8560_v36  ;;  %v2841_v11 = vld [vmem:[#allocation2 + $0x38] sm:$0x30] }
 0x7ee   :  { %5233 = vmatprep.subr.bf16.mxu0 %v8561_v22  ;;  %5297 = vmatprep.subr.bf16.mxu1 %v8562_v20  ;;  %v2839_v20 = vld [vmem:[#allocation2 + $0x28] sm:$0x30] }
 0x7f1   :  { %5235 = vmatpush1.bf16.msra.mxu0 %v8563_v39  ;;  %5299 = vmatpush1.bf16.msra.mxu1 %v8564_v2 }
 0x7f2   :  { %5237 = vmatprep.subr.bf16.mxu0 %v8565_v54  ;;  %5301 = vmatprep.subr.bf16.mxu1 %v8566_v40  ;;  %v8576_v54 = vld [vmem:[#allocation137_spill] sm:$0xff]  ;;  %v8577_v40 = vld [vmem:[#allocation138_spill] sm:$0xff] }
 0x7f5   :  { %5239 = vmatpush1.bf16.msra.mxu0 %v8567_v62  ;;  %5303 = vmatpush1.bf16.msra.mxu1 %v8568_v61  ;;  %v8578_v62 = vld [vmem:[#allocation139_spill] sm:$0xff]  ;;  %v8579_v61 = vld [vmem:[#allocation140_spill] sm:$0xff] }
 0x7f6   :  { %5241 = vmatprep.subr.bf16.mxu0 %v8569_v55  ;;  %5305 = vmatprep.subr.bf16.mxu1 %v8570_v31  ;;  %v8580_v55 = vld [vmem:[#allocation141_spill] sm:$0xff] }
 0x7f7   :  { %v8581_v31 = vld [vmem:[#allocation13_spill] sm:$0xff] }
 0x7f9   :  { %5243 = vmatpush1.bf16.msra.mxu0 %v8571_v51  ;;  %5307 = vmatpush1.bf16.msra.mxu1 %v8572_v10  ;;  %v8582_v51 = vld [vmem:[#allocation16_spill] sm:$0xff] }
 0x7fa   :  { %5245 = vmatprep.subr.bf16.mxu0 %v8573_v23  ;;  %5309 = vmatprep.subr.bf16.mxu1 %v8574_v60  ;;  %v8583_v60 = vld [vmem:[#allocation14_spill] sm:$0xff]  ;;  %v8592_v23 = vld [vmem:[#allocation24_spill] sm:$0xff] }
 0x7fd   :  { %5247 = vmatpush1.bf16.msra.mxu0 %v8575_v21  ;;  %5311 = vmatpush1.bf16.msra.mxu1 %v8576_v54  ;;  %v8584_v21 = vld [vmem:[#allocation18_spill] sm:$0xff]  ;;  %v8585_v54 = vld [vmem:[#allocation15_spill] sm:$0xff] }
 0x7fe   :  { %5249 = vmatprep.subr.bf16.mxu0 %v8577_v40  ;;  %5313 = vmatprep.subr.bf16.mxu1 %v8578_v62  ;;  %v8586_v40 = vld [vmem:[#allocation20_spill] sm:$0xff]  ;;  %v8587_v62 = vld [vmem:[#allocation17_spill] sm:$0xff] }
 0x801   :  { %5251 = vmatpush1.bf16.msra.mxu0 %v8579_v61  ;;  %5315 = vmatpush1.bf16.msra.mxu1 %v8580_v55  ;;  %v8588_v61 = vld [vmem:[#allocation22_spill] sm:$0xff]  ;;  %v8589_v55 = vld [vmem:[#allocation19_spill] sm:$0xff] }
 0x802   :  { %5317 = vmatprep.subr.bf16.mxu0 %v8581_v31  ;;  %5381 = vmatprep.subr.bf16.mxu1 %v8582_v51  ;;  %v8590_v31 = vld [vmem:[#allocation23_spill] sm:$0xff]  ;;  %v8591_v51 = vld [vmem:[#allocation21_spill] sm:$0xff] }
 0x804   :  { %2761 = vmatmul.mubr.f32.vlgmr.msra.gmra.mrb[26].mxu0 %v7380_v45  ;;  %2832 = vmatmul.mubr.f32.vlgmr.msra.gmra.mrb[26].mxu1 %v7380_v45  ;;  %v8593_v45 = vld [vmem:[#allocation25_spill] sm:$0xff] }
 0x805   :  { %5319 = vmatpush1.bf16.msra.mxu0 %v8583_v60  ;;  %5383 = vmatpush1.bf16.msra.mxu1 %v8584_v21  ;;  %v8594_v60 = vld [vmem:[#allocation26_spill] sm:$0xff]  ;;  %v8595_v21 = vld [vmem:[#allocation27_spill] sm:$0xff] }
 0x806   :  { %5321 = vmatprep.subr.bf16.mxu0 %v8585_v54  ;;  %5385 = vmatprep.subr.bf16.mxu1 %v8586_v40  ;;  %v8596_v54 = vld [vmem:[#allocation28_spill] sm:$0xff]  ;;  %v8597_v40 = vld [vmem:[#allocation29_spill] sm:$0xff] }
 0x809   :  { %5323 = vmatpush1.bf16.msra.mxu0 %v8587_v62  ;;  %5387 = vmatpush1.bf16.msra.mxu1 %v8588_v61  ;;  %v8598_v62 = vld [vmem:[#allocation30_spill] sm:$0xff]  ;;  %v8599_v61 = vld [vmem:[#allocation31_spill] sm:$0xff] }
 0x80a   :  { %5325 = vmatprep.subr.bf16.mxu0 %v8589_v55  ;;  %5389 = vmatprep.subr.bf16.mxu1 %v8590_v31  ;;  %v8600_v55 = vld [vmem:[#allocation32_spill] sm:$0xff]  ;;  %v8601_v31 = vld [vmem:[#allocation33_spill] sm:$0xff] }
 0x80d   :  { %5327 = vmatpush1.bf16.msra.mxu0 %v8591_v51  ;;  %5391 = vmatpush1.bf16.msra.mxu1 %v8592_v23  ;;  %v8602_v51 = vld [vmem:[#allocation34_spill] sm:$0xff]  ;;  %v8603_v23 = vld [vmem:[#allocation35_spill] sm:$0xff] }
 0x80e   :  { %5329 = vmatprep.subr.bf16.mxu0 %v8593_v45  ;;  %5393 = vmatprep.subr.bf16.mxu1 %v8594_v60  ;;  %v8604_v45 = vld [vmem:[#allocation36_spill] sm:$0xff]  ;;  %v8605_v60 = vld [vmem:[#allocation37_spill] sm:$0xff] }
 0x811   :  { %5331 = vmatpush1.bf16.msra.mxu0 %v8595_v21  ;;  %5395 = vmatpush1.bf16.msra.mxu1 %v8596_v54  ;;  %v8606_v21 = vld [vmem:[#allocation38_spill] sm:$0xff]  ;;  %v8607_v54 = vld [vmem:[#allocation39_spill] sm:$0xff] }
 0x812   :  { %5333 = vmatprep.subr.bf16.mxu0 %v8597_v40  ;;  %5397 = vmatprep.subr.bf16.mxu1 %v8598_v62  ;;  %v8608_v40 = vld [vmem:[#allocation40_spill] sm:$0xff]  ;;  %v8609_v62 = vld [vmem:[#allocation41_spill] sm:$0xff] }
 0x815   :  { %5335 = vmatpush1.bf16.msra.mxu0 %v8599_v61  ;;  %5399 = vmatpush1.bf16.msra.mxu1 %v8600_v55  ;;  %v8610_v61 = vld [vmem:[#allocation42_spill] sm:$0xff]  ;;  %v8611_v55 = vld [vmem:[#allocation43_spill] sm:$0xff] }
 0x816   :  { %5337 = vmatprep.subr.bf16.mxu0 %v8601_v31  ;;  %5401 = vmatprep.subr.bf16.mxu1 %v8602_v51  ;;  %v8612_v31 = vld [vmem:[#allocation44_spill] sm:$0xff]  ;;  %v8613_v51 = vld [vmem:[#allocation45_spill] sm:$0xff] }
 0x819   :  { %5339 = vmatpush1.bf16.msra.mxu0 %v8603_v23  ;;  %5403 = vmatpush1.bf16.msra.mxu1 %v8604_v45  ;;  %v8614_v23 = vld [vmem:[#allocation46_spill] sm:$0xff]  ;;  %v8615_v45 = vld [vmem:[#allocation47_spill] sm:$0xff] }
 0x81a   :  { %5341 = vmatprep.subr.bf16.mxu0 %v8605_v60  ;;  %5405 = vmatprep.subr.bf16.mxu1 %v8606_v21  ;;  %v8616_v60 = vld [vmem:[#allocation48_spill] sm:$0xff]  ;;  %v8617_v21 = vld [vmem:[#allocation49_spill] sm:$0xff] }
 0x81d   :  { %5343 = vmatpush1.bf16.msra.mxu0 %v8607_v54  ;;  %5407 = vmatpush1.bf16.msra.mxu1 %v8608_v40  ;;  %v8618_v54 = vld [vmem:[#allocation50_spill] sm:$0xff]  ;;  %v8619_v40 = vld [vmem:[#allocation51_spill] sm:$0xff] }
 0x81e   :  { %5345 = vmatprep.subr.bf16.mxu0 %v8609_v62  ;;  %5409 = vmatprep.subr.bf16.mxu1 %v8610_v61  ;;  %v8620_v62 = vld [vmem:[#allocation52_spill] sm:$0xff]  ;;  %v8621_v61 = vld [vmem:[#allocation53_spill] sm:$0xff] }
 0x821   :  { %5347 = vmatpush1.bf16.msra.mxu0 %v8611_v55  ;;  %5411 = vmatpush1.bf16.msra.mxu1 %v8612_v31  ;;  %v8622_v55 = vld [vmem:[#allocation54_spill] sm:$0xff]  ;;  %v8623_v31 = vld [vmem:[#allocation55_spill] sm:$0xff] }
 0x822   :  { %5349 = vmatprep.subr.bf16.mxu0 %v8613_v51  ;;  %5413 = vmatprep.subr.bf16.mxu1 %v8614_v23  ;;  %v8624_v51 = vld [vmem:[#allocation56_spill] sm:$0xff]  ;;  %v8625_v23 = vld [vmem:[#allocation57_spill] sm:$0xff] }
 0x825   :  { %5351 = vmatpush1.bf16.msra.mxu0 %v8615_v45  ;;  %5415 = vmatpush1.bf16.msra.mxu1 %v8616_v60  ;;  %v8626_v45 = vld [vmem:[#allocation58_spill] sm:$0xff]  ;;  %v8627_v60 = vld [vmem:[#allocation59_spill] sm:$0xff] }
 0x826   :  { %5353 = vmatprep.subr.bf16.mxu0 %v8617_v21  ;;  %5417 = vmatprep.subr.bf16.mxu1 %v8618_v54  ;;  %v8628_v21 = vld [vmem:[#allocation60_spill] sm:$0xff]  ;;  %v8629_v54 = vld [vmem:[#allocation61_spill] sm:$0xff] }
 0x829   :  { %5355 = vmatpush1.bf16.msra.mxu0 %v8619_v40  ;;  %5419 = vmatpush1.bf16.msra.mxu1 %v8620_v62  ;;  %v8630_v40 = vld [vmem:[#allocation62_spill] sm:$0xff]  ;;  %v8631_v62 = vld [vmem:[#allocation63_spill] sm:$0xff] }
 0x82a   :  { %5357 = vmatprep.subr.bf16.mxu0 %v8621_v61  ;;  %5421 = vmatprep.subr.bf16.mxu1 %v8622_v55  ;;  %v8632_v61 = vld [vmem:[#allocation64_spill] sm:$0xff]  ;;  %v8633_v55 = vld [vmem:[#allocation65_spill] sm:$0xff] }
 0x82d   :  { %5359 = vmatpush1.bf16.msra.mxu0 %v8623_v31  ;;  %5423 = vmatpush1.bf16.msra.mxu1 %v8624_v51  ;;  %v8634_v31 = vld [vmem:[#allocation66_spill] sm:$0xff]  ;;  %v8635_v51 = vld [vmem:[#allocation67_spill] sm:$0xff] }
 0x82e   :  { %5361 = vmatprep.subr.bf16.mxu0 %v8625_v23  ;;  %5425 = vmatprep.subr.bf16.mxu1 %v8626_v45  ;;  %v8636_v23 = vld [vmem:[#allocation68_spill] sm:$0xff]  ;;  %v8637_v45 = vld [vmem:[#allocation69_spill] sm:$0xff] }
 0x831   :  { %5363 = vmatpush1.bf16.msra.mxu0 %v8627_v60  ;;  %5427 = vmatpush1.bf16.msra.mxu1 %v8628_v21  ;;  %v8638_v60 = vld [vmem:[#allocation70_spill] sm:$0xff]  ;;  %v8639_v21 = vld [vmem:[#allocation71_spill] sm:$0xff] }
 0x832   :  { %5365 = vmatprep.subr.bf16.mxu0 %v8629_v54  ;;  %5429 = vmatprep.subr.bf16.mxu1 %v8630_v40  ;;  %v8640_v54 = vld [vmem:[#allocation72_spill] sm:$0xff]  ;;  %v8641_v40 = vld [vmem:[#allocation73_spill] sm:$0xff] }
 0x835   :  { %5367 = vmatpush1.bf16.msra.mxu0 %v8631_v62  ;;  %5431 = vmatpush1.bf16.msra.mxu1 %v8632_v61  ;;  %v8642_v62 = vld [vmem:[#allocation74_spill] sm:$0xff]  ;;  %v8643_v61 = vld [vmem:[#allocation75_spill] sm:$0xff] }
 0x836   :  { %5369 = vmatprep.subr.bf16.mxu0 %v8633_v55  ;;  %5433 = vmatprep.subr.bf16.mxu1 %v8634_v31  ;;  %v8644_v55 = vld [vmem:[#allocation76_spill] sm:$0xff]  ;;  %v8645_v31 = vld [vmem:[#allocation77_spill] sm:$0xff] }
 0x839   :  { %5371 = vmatpush1.bf16.msra.mxu0 %v8635_v51  ;;  %5435 = vmatpush1.bf16.msra.mxu1 %v8636_v23  ;;  %v8646_v51 = vld [vmem:[#allocation78_spill] sm:$0xff] }
 0x83a   :  { %5373 = vmatprep.subr.bf16.mxu0 %v8637_v45  ;;  %5437 = vmatprep.subr.bf16.mxu1 %v8638_v60 }
 0x83d   :  { %5375 = vmatpush1.bf16.msra.mxu0 %v8639_v21  ;;  %5439 = vmatpush1.bf16.msra.mxu1 %v8640_v54  ;;  %v2838_v21 = vld [vmem:[#allocation2 + $0x20] sm:$0x30] }
 0x83e   :  { %5377 = vmatprep.subr.bf16.mxu0 %v8641_v40  ;;  %5441 = vmatprep.subr.bf16.mxu1 %v8642_v62 }
 0x841   :  { %5379 = vmatpush1.bf16.msra.mxu0 %v8643_v61  ;;  %5443 = vmatpush1.bf16.msra.mxu1 %v8644_v55  ;;  %v2840_v55 = vld [vmem:[#allocation2 + $0x30] sm:$0x30] }
 0x842   :  { %5445 = vmatprep.subr.bf16.mxu0 %v8645_v31  ;;  %5509 = vmatprep.subr.bf16.mxu1 %v8646_v51 }
 0x897   :  { %v2620_v23 = vpop.f32.mrb[24].mxu0  ;;  %v2691_v45 = vpop.f32.mrb[24].mxu1 }
 0x898   :  { %v2846_v10 = vrot.slane %v2620_v23, 4  ;;  %v2622_v60 = vpop.f32.mrb[25].mxu0  ;;  %v2693_v2 = vpop.f32.mrb[25].mxu1  ;;  %v2848_v61 = vrot.slane %v2691_v45, 4 }
 0x899   :  { %v2847_v39 = vrot.slane %v2622_v60, 4  ;;  %v2849_v36 = vrot.slane %v2693_v2, 4 }
 0x89a   :  { %v2854_v54 = vadd.f32 %v2846_v10, %v2838_v21  ;;  %v2856_v31 = vadd.f32 %v2848_v61, %v2840_v55 }
 0x89b   :  { %v2855_v40 = vadd.f32 %v2847_v39, %v2839_v20  ;;  %v2857_v51 = vadd.f32 %v2849_v36, %v2841_v11 }
 0x89c   :  { %v3645_v22 = vmul.f32 -1.442695, %v2854_v54  ;;  %v3647_v25 = vmul.f32 -1.442695, %v2856_v31 }
 0x89d   :  { %v3646_v62 = vmul.f32 -1.442695, %v2855_v40 }
 0x89e   :  { %5910 = vpow2.f32 %v3645_v22  ;;  %v2882_v22 = vrot.slane %v7369_v8, 6 }
 0x89f   :  { %5912 = vpow2.f32 %v3646_v62 }
 0x8a0   :  { %5914 = vtanh.f32 %v2857_v51 }
 0x8a1   :  { %5916 = vpow2.f32 %v3647_v25 }
 0x8a8   :  { %v5911_v50 = vpop.eup %5910 }
 0x8a9   :  { %v2871_v23 = vadd.f32 1.0, %v5911_v50  ;;  %v5913_v56 = vpop.eup %5912 }
 0x8aa   :  { %v2872_v10 = vadd.f32 1.0, %v5913_v56  ;;  %v5915_v20 = vpop.eup %5914 }
 0x8ab   :  { %5918 = vrcp.f32 %v2871_v23  ;;  %v5917_v39 = vpop.eup %5916 }
 0x8ac   :  { %5920 = vrcp.f32 %v2872_v10  ;;  %v2873_v2 = vadd.f32 1.0, %v5917_v39 }
 0x8ae   :  { %5922 = vrcp.f32 %v2873_v2 }
 0x8b5   :  { %v5919_v60 = vpop.eup %5918 }
 0x8b6   :  { %v2885_v45 = vmul.f32 %v5919_v60, %v5915_v20  ;;  %v5921_v21 = vpop.eup %5920 }
 0x8b7   :  { %v2884_v54 = vmul.f32 %v5921_v21, %v2882_v22 }
 0x8b8   :  { %v5923_v50 = vpop.eup %5922 }
 0x8b9   :  { %v7515_v40 = vadd.f32 %v2885_v45, %v2884_v54 }
 0x8bb   :  { %8647 = vst [vmem:[#allocation81_spill] sm:$0xff] %v7515_v40  ;;  %5924 = vtanh.f32 %v7515_v40  ;;  %v8674_v40 = vld [vmem:[#allocation77_spill] sm:$0xff] }
 0x8c5   :  { %v5925_v11 = vpop.eup %5924 }
 0x8c6   :  { %v2888_v25 = vmul.f32 %v5925_v11, %v5923_v50 }
 0x8d7   :  { %v2762_v36 = vpop.f32.mrb[26].mxu0  ;;  %v2833_v56 = vpop.f32.mrb[26].mxu1 }
 0x8d8   :  { %v2858_v31 = vadd.f32 %v2762_v36, %v8285_v58  ;;  %v2764_v51 = vpop.f32.mrb[27].mxu0  ;;  %v2835_v62 = vpop.f32.mrb[27].mxu1  ;;  %v2860_v23 = vadd.f32 %v2833_v56, %v6785_v27  ;;  %v8671_v27 = vld [vmem:[#allocation139_spill] sm:$0xff]  ;;  %v8673_v58 = vld [vmem:[#allocation141_spill] sm:$0xff] }
 0x8d9   :  { %v2859_v8 = vadd.f32 %v2764_v51, %v8286_v5  ;;  %v2861_v10 = vadd.f32 %v2835_v62, %v6789_v42  ;;  %v8670_v42 = vld [vmem:[#allocation138_spill] sm:$0xff]  ;;  %v8672_v5 = vld [vmem:[#allocation140_spill] sm:$0xff] }
 0x8da   :  { %v3648_v61 = vmul.f32 -1.442695, %v2858_v31  ;;  %v3650_v20 = vmul.f32 -1.442695, %v2860_v23  ;;  %v7526_v23 = vrot.slane %v2888_v25, 4  ;;  %v8650_v25 = vld [vmem:[#allocation118_spill] sm:$0xff] }
 0x8db   :  { %v3649_v55 = vmul.f32 -1.442695, %v2859_v8 }
 0x8dc   :  { %5926 = vpow2.f32 %v3648_v61 }
 0x8dd   :  { %5928 = vpow2.f32 %v3649_v55 }
 0x8de   :  { %5930 = vtanh.f32 %v2861_v10  ;;  %v8651_v10 = vld [vmem:[#allocation119_spill] sm:$0xff] }
 0x8df   :  { %5932 = vpow2.f32 %v3650_v20  ;;  %v8652_v20 = vld [vmem:[#allocation120_spill] sm:$0xff] }
 0x8e6   :  { %v5927_v39 = vpop.eup %5926 }
 0x8e7   :  { %v2898_v60 = vadd.f32 1.0, %v5927_v39  ;;  %v5929_v22 = vpop.eup %5928  ;;  %v8653_v39 = vld [vmem:[#allocation121_spill] sm:$0xff] }
 0x8e8   :  { %v2899_v45 = vadd.f32 1.0, %v5929_v22  ;;  %v5931_v21 = vpop.eup %5930  ;;  %v8655_v22 = vld [vmem:[#allocation123_spill] sm:$0xff] }
 0x8e9   :  { %5934 = vrcp.f32 %v2898_v60  ;;  %v5933_v2 = vpop.eup %5932  ;;  %v8654_v60 = vld [vmem:[#allocation122_spill] sm:$0xff] }
 0x8ea   :  { %5936 = vrcp.f32 %v2899_v45  ;;  %v2900_v36 = vadd.f32 1.0, %v5933_v2  ;;  %v8656_v45 = vld [vmem:[#allocation124_spill] sm:$0xff]  ;;  %v8658_v2 = vld [vmem:[#allocation126_spill] sm:$0xff] }
 0x8ec   :  { %5938 = vrcp.f32 %v2900_v36  ;;  %v8662_v36 = vld [vmem:[#allocation130_spill] sm:$0xff] }
 0x8f3   :  { %v5935_v54 = vpop.eup %5934 }
 0x8f4   :  { %v2909_v50 = vmul.f32 %v5935_v54, %v5931_v21  ;;  %v5937_v11 = vpop.eup %5936  ;;  %v8657_v21 = vld [vmem:[#allocation125_spill] sm:$0xff]  ;;  %v8659_v54 = vld [vmem:[#allocation127_spill] sm:$0xff] }
 0x8f5   :  { %v2908_v31 = vmul.f32 %v5937_v11, %v7377_v38  ;;  %v8649_v38 = vld [vmem:[#allocation117_spill] sm:$0xff] }
 0x8f6   :  { %v5939_v51 = vpop.eup %5938  ;;  %v8661_v11 = vld [vmem:[#allocation129_spill] sm:$0xff] }
 0x8f7   :  { %v7523_v56 = vadd.f32 %v2909_v50, %v2908_v31  ;;  %v8660_v50 = vld [vmem:[#allocation128_spill] sm:$0xff]  ;;  %v8663_v31 = vld [vmem:[#allocation131_spill] sm:$0xff] }
 0x8f9   :  { %8648 = vst [vmem:[#allocation82_spill] sm:$0xff] %v7523_v56  ;;  %5940 = vtanh.f32 %v7523_v56  ;;  %v8669_v56 = vld [vmem:[#allocation137_spill] sm:$0xff] }
 0x903   :  { %v5941_v62 = vpop.eup %5940 }
 0x904   :  { %v2912_v8 = vmul.f32 %v5941_v62, %v5939_v51  ;;  %v8664_v51 = vld [vmem:[#allocation132_spill] sm:$0xff]  ;;  %v8665_v62 = vld [vmem:[#allocation133_spill] sm:$0xff] }
 0x906   :  { %v2914_v61 = vrot.slane %v2912_v8, 4  ;;  %v8666_v8 = vld [vmem:[#allocation134_spill] sm:$0xff] }
 0x908   :  { %v2917_v55 = vrot.slane %v2914_v61, 4  ;;  %v8667_v61 = vld [vmem:[#allocation135_spill] sm:$0xff] }
 0x90a   :  { %2984 = vmatprep.mubr.f32.mxu0 %v2917_v55  ;;  %3055 = vmatprep.mubr.f32.mxu1 %v2917_v55 }
 0x90b   :  { %2985 = vmatmul.mubr.f32.vlgmr.msra.gmra.mrb[28].mxu0 %v7526_v23  ;;  %3056 = vmatmul.mubr.f32.vlgmr.msra.gmra.mrb[28].mxu1 %v7526_v23 }
 0x90c   :  { %5447 = vmatpush1.bf16.msra.mxu0 %v8200_v12  ;;  %5511 = vmatpush1.bf16.msra.mxu1 %v8201_v49 }
 0x90d   :  { %3126 = vmatprep.mubr.f32.mxu0 %v2917_v55  ;;  %3197 = vmatprep.mubr.f32.mxu1 %v2917_v55  ;;  %v8668_v55 = vld [vmem:[#allocation136_spill] sm:$0xff] }
 0x90e   :  { %5449 = vmatprep.subr.bf16.mxu0 %v6508_v32  ;;  %5513 = vmatprep.subr.bf16.mxu1 %v8202_v34 }
 0x910   :  { %5451 = vmatpush1.bf16.msra.mxu0 %v8203_v59  ;;  %5515 = vmatpush1.bf16.msra.mxu1 %v8204_v47 }
 0x911   :  { %5453 = vmatprep.subr.bf16.mxu0 %v8287_v46  ;;  %5517 = vmatprep.subr.bf16.mxu1 %v8288_v33 }
 0x914   :  { %5455 = vmatpush1.bf16.msra.mxu0 %v8289_v41  ;;  %5519 = vmatpush1.bf16.msra.mxu1 %v8290_v3 }
 0x915   :  { %5457 = vmatprep.subr.bf16.mxu0 %v8291_v17  ;;  %5521 = vmatprep.subr.bf16.mxu1 %v8292_v52 }
 0x918   :  { %5459 = vmatpush1.bf16.msra.mxu0 %v8293_v18  ;;  %5523 = vmatpush1.bf16.msra.mxu1 %v8376_v24 }
 0x919   :  { %5461 = vmatprep.subr.bf16.mxu0 %v8377_v9  ;;  %5525 = vmatprep.subr.bf16.mxu1 %v8378_v1 }
 0x91c   :  { %5463 = vmatpush1.bf16.msra.mxu0 %v8379_v15  ;;  %5527 = vmatpush1.bf16.msra.mxu1 %v8380_v4 }
 0x91d   :  { %5465 = vmatprep.subr.bf16.mxu0 %v8381_v19  ;;  %5529 = vmatprep.subr.bf16.mxu1 %v8382_v57 }
 0x920   :  { %5467 = vmatpush1.bf16.msra.mxu0 %v8383_v14  ;;  %5531 = vmatpush1.bf16.msra.mxu1 %v8384_v0 }
 0x921   :  { %5469 = vmatprep.subr.bf16.mxu0 %v8385_v13  ;;  %5533 = vmatprep.subr.bf16.mxu1 %v8386_v16 }
 0x924   :  { %5471 = vmatpush1.bf16.msra.mxu0 %v8387_v7  ;;  %5535 = vmatpush1.bf16.msra.mxu1 %v8388_v26 }
 0x925   :  { %5473 = vmatprep.subr.bf16.mxu0 %v8389_v6  ;;  %5537 = vmatprep.subr.bf16.mxu1 %v8390_v43 }
 0x928   :  { %5475 = vmatpush1.bf16.msra.mxu0 %v8309_v30  ;;  %5539 = vmatpush1.bf16.msra.mxu1 %v8310_v28 }
 0x929   :  { %5477 = vmatprep.subr.bf16.mxu0 %v8311_v35  ;;  %5541 = vmatprep.subr.bf16.mxu1 %v8312_v63 }
 0x92c   :  { %5479 = vmatpush1.bf16.msra.mxu0 %v8313_v53  ;;  %5543 = vmatpush1.bf16.msra.mxu1 %v8314_v44 }
 0x92d   :  { %5481 = vmatprep.subr.bf16.mxu0 %v8315_v48  ;;  %5545 = vmatprep.subr.bf16.mxu1 %v8316_v29 }
 0x930   :  { %5483 = vmatpush1.bf16.msra.mxu0 %v8317_v37  ;;  %5547 = vmatpush1.bf16.msra.mxu1 %v8649_v38 }
 0x931   :  { %5485 = vmatprep.subr.bf16.mxu0 %v8650_v25  ;;  %5549 = vmatprep.subr.bf16.mxu1 %v8651_v10 }
 0x934   :  { %5487 = vmatpush1.bf16.msra.mxu0 %v8652_v20  ;;  %5551 = vmatpush1.bf16.msra.mxu1 %v8653_v39 }
 0x935   :  { %5489 = vmatprep.subr.bf16.mxu0 %v8654_v60  ;;  %5553 = vmatprep.subr.bf16.mxu1 %v8655_v22 }
 0x938   :  { %5491 = vmatpush1.bf16.msra.mxu0 %v8656_v45  ;;  %5555 = vmatpush1.bf16.msra.mxu1 %v8657_v21 }
 0x939   :  { %5493 = vmatprep.subr.bf16.mxu0 %v8658_v2  ;;  %5557 = vmatprep.subr.bf16.mxu1 %v8659_v54 }
 0x93c   :  { %5495 = vmatpush1.bf16.msra.mxu0 %v8660_v50  ;;  %5559 = vmatpush1.bf16.msra.mxu1 %v8661_v11 }
 0x93d   :  { %5497 = vmatprep.subr.bf16.mxu0 %v8662_v36  ;;  %5561 = vmatprep.subr.bf16.mxu1 %v8663_v31 }
 0x940   :  { %5499 = vmatpush1.bf16.msra.mxu0 %v8664_v51  ;;  %5563 = vmatpush1.bf16.msra.mxu1 %v8665_v62  ;;  %v8675_v51 = vld [vmem:[#allocation78_spill] sm:$0xff] }
 0x941   :  { %5501 = vmatprep.subr.bf16.mxu0 %v8666_v8  ;;  %5565 = vmatprep.subr.bf16.mxu1 %v8667_v61 }
 0x944   :  { %5503 = vmatpush1.bf16.msra.mxu0 %v8668_v55  ;;  %5567 = vmatpush1.bf16.msra.mxu1 %v8669_v56 }
 0x945   :  { %5505 = vmatprep.subr.bf16.mxu0 %v8670_v42  ;;  %5569 = vmatprep.subr.bf16.mxu1 %v8671_v27 }
 0x948   :  { %5507 = vmatpush1.bf16.msra.mxu0 %v8672_v5  ;;  %5571 = vmatpush1.bf16.msra.mxu1 %v8673_v58 }
 0x949   :  { %5573 = vmatprep.subr.bf16.mxu0 %v8674_v40  ;;  %5637 = vmatprep.subr.bf16.mxu1 %v8675_v51 }
 0x94b   :  { %3127 = vmatmul.mubr.f32.vlgmr.msra.gmra.mrb[30].mxu0 %v7526_v23  ;;  %3198 = vmatmul.mubr.f32.vlgmr.msra.gmra.mrb[30].mxu1 %v7526_v23  ;;  %v8679_v23 = vld [vmem:[#allocation79_spill] sm:$0xff] }
 0x94c   :  { %5575 = vmatpush1.bf16.msra.mxu0 %v8200_v12  ;;  %5639 = vmatpush1.bf16.msra.mxu1 %v8201_v49 }
 0x94d   :  { %5577 = vmatprep.subr.bf16.mxu0 %v6508_v32  ;;  %5641 = vmatprep.subr.bf16.mxu1 %v8202_v34  ;;  %v8676_v32 = vld [vmem:[#allocation132_spill] sm:$0xff] }
 0x950   :  { %5579 = vmatpush1.bf16.msra.mxu0 %v8203_v59  ;;  %5643 = vmatpush1.bf16.msra.mxu1 %v8204_v47 }
 0x951   :  { %5581 = vmatprep.subr.bf16.mxu0 %v8287_v46  ;;  %5645 = vmatprep.subr.bf16.mxu1 %v8288_v33  ;;  %v3204_v46 = vld [vmem:[#allocation2 + $0x20] sm:$0xc0] }
 0x954   :  { %5583 = vmatpush1.bf16.msra.mxu0 %v8289_v41  ;;  %5647 = vmatpush1.bf16.msra.mxu1 %v8290_v3  ;;  %v3205_v3 = vld [vmem:[#allocation2 + $0x28] sm:$0xc0] }
 0x955   :  { %5585 = vmatprep.subr.bf16.mxu0 %v8291_v17  ;;  %5649 = vmatprep.subr.bf16.mxu1 %v8292_v52 }
 0x958   :  { %5587 = vmatpush1.bf16.msra.mxu0 %v8293_v18  ;;  %5651 = vmatpush1.bf16.msra.mxu1 %v8376_v24 }
 0x959   :  { %5589 = vmatprep.subr.bf16.mxu0 %v8377_v9  ;;  %5653 = vmatprep.subr.bf16.mxu1 %v8378_v1  ;;  %v8677_v9 = vld [vmem:[#allocation81_spill] sm:$0xff] }
 0x95a   :  { %v3248_v1 = vrot.slane %v8677_v9, 6  ;;  %v3465_v9 = vld [vmem:[%s7736_s6 + $0x68] sm:$0xff] }
 0x95c   :  { %5591 = vmatpush1.bf16.msra.mxu0 %v8379_v15  ;;  %5655 = vmatpush1.bf16.msra.mxu1 %v8380_v4 }
 0x95d   :  { %5593 = vmatprep.subr.bf16.mxu0 %v8381_v19  ;;  %5657 = vmatprep.subr.bf16.mxu1 %v8382_v57 }
 0x960   :  { %5595 = vmatpush1.bf16.msra.mxu0 %v8383_v14  ;;  %5659 = vmatpush1.bf16.msra.mxu1 %v8384_v0 }
 0x961   :  { %5597 = vmatprep.subr.bf16.mxu0 %v8385_v13  ;;  %5661 = vmatprep.subr.bf16.mxu1 %v8386_v16 }
 0x964   :  { %5599 = vmatpush1.bf16.msra.mxu0 %v8387_v7  ;;  %5663 = vmatpush1.bf16.msra.mxu1 %v8388_v26 }
 0x965   :  { %5601 = vmatprep.subr.bf16.mxu0 %v8389_v6  ;;  %5665 = vmatprep.subr.bf16.mxu1 %v8390_v43  ;;  %v8678_v6 = vld [vmem:[#allocation80_spill] sm:$0xff] }
 0x968   :  { %5603 = vmatpush1.bf16.msra.mxu0 %v8309_v30  ;;  %5667 = vmatpush1.bf16.msra.mxu1 %v8310_v28 }
 0x969   :  { %5605 = vmatprep.subr.bf16.mxu0 %v8311_v35  ;;  %5669 = vmatprep.subr.bf16.mxu1 %v8312_v63 }
 0x96c   :  { %5607 = vmatpush1.bf16.msra.mxu0 %v8313_v53  ;;  %5671 = vmatpush1.bf16.msra.mxu1 %v8314_v44 }
 0x96d   :  { %5609 = vmatprep.subr.bf16.mxu0 %v8315_v48  ;;  %5673 = vmatprep.subr.bf16.mxu1 %v8316_v29 }
 0x970   :  { %5611 = vmatpush1.bf16.msra.mxu0 %v8317_v37  ;;  %5675 = vmatpush1.bf16.msra.mxu1 %v8649_v38  ;;  %v3207_v37 = vld [vmem:[#allocation2 + $0x38] sm:$0xc0] }
 0x971   :  { %5613 = vmatprep.subr.bf16.mxu0 %v8650_v25  ;;  %5677 = vmatprep.subr.bf16.mxu1 %v8651_v10 }
 0x974   :  { %5615 = vmatpush1.bf16.msra.mxu0 %v8652_v20  ;;  %5679 = vmatpush1.bf16.msra.mxu1 %v8653_v39  ;;  %v8680_v20 = vld [vmem:[#allocation142_spill] sm:$0xff] }
 0x975   :  { %5617 = vmatprep.subr.bf16.mxu0 %v8654_v60  ;;  %5681 = vmatprep.subr.bf16.mxu1 %v8655_v22  ;;  %v8681_v60 = vld [vmem:[#allocation143_spill] sm:$0xff] }
 0x978   :  { %5619 = vmatpush1.bf16.msra.mxu0 %v8656_v45  ;;  %5683 = vmatpush1.bf16.msra.mxu1 %v8657_v21 }
 0x979   :  { %5621 = vmatprep.subr.bf16.mxu0 %v8658_v2  ;;  %5685 = vmatprep.subr.bf16.mxu1 %v8659_v54 }
 0x97c   :  { %5623 = vmatpush1.bf16.msra.mxu0 %v8660_v50  ;;  %5687 = vmatpush1.bf16.msra.mxu1 %v8661_v11 }
 0x97d   :  { %5625 = vmatprep.subr.bf16.mxu0 %v8662_v36  ;;  %5689 = vmatprep.subr.bf16.mxu1 %v8663_v31 }
 0x980   :  { %5627 = vmatpush1.bf16.msra.mxu0 %v8676_v32  ;;  %5691 = vmatpush1.bf16.msra.mxu1 %v8665_v62 }
 0x981   :  { %5629 = vmatprep.subr.bf16.mxu0 %v8666_v8  ;;  %5693 = vmatprep.subr.bf16.mxu1 %v8667_v61  ;;  %v8682_v61 = vld [vmem:[#allocation82_spill] sm:$0xff] }
 0x984   :  { %5631 = vmatpush1.bf16.msra.mxu0 %v8668_v55  ;;  %5695 = vmatpush1.bf16.msra.mxu1 %v8669_v56 }
 0x985   :  { %5633 = vmatprep.subr.bf16.mxu0 %v8670_v42  ;;  %5697 = vmatprep.subr.bf16.mxu1 %v8671_v27  ;;  %v3206_v27 = vld [vmem:[#allocation2 + $0x30] sm:$0xc0] }
 0x988   :  { %5635 = vmatpush1.bf16.msra.mxu0 %v8672_v5  ;;  %5699 = vmatpush1.bf16.msra.mxu1 %v8673_v58 }
 0x9de   :  { %v2986_v12 = vpop.f32.mrb[28].mxu0  ;;  %v3057_v49 = vpop.f32.mrb[28].mxu1 }
 0x9df   :  { %v3212_v34 = vrot.slane %v2986_v12, 2  ;;  %v2988_v59 = vpop.f32.mrb[29].mxu0  ;;  %v3059_v47 = vpop.f32.mrb[29].mxu1  ;;  %v3214_v42 = vrot.slane %v3057_v49, 2 }
 0x9e0   :  { %v3213_v33 = vrot.slane %v2988_v59, 2  ;;  %v3215_v29 = vrot.slane %v3059_v47, 2 }
 0x9e1   :  { %v3220_v41 = vadd.f32 %v3212_v34, %v3204_v46  ;;  %v3222_v5 = vadd.f32 %v3214_v42, %v3206_v27  ;;  %v3456_v27 = vld [vmem:[%s7736_s6 + $0x20] sm:$0xff] }
 0x9e2   :  { %v3221_v17 = vadd.f32 %v3213_v33, %v3205_v3  ;;  %v3223_v58 = vadd.f32 %v3215_v29, %v3207_v37  ;;  %v3452_v33 = vld [vmem:[%s7736_s6] sm:$0xff]  ;;  %v3457_v29 = vld [vmem:[%s7736_s6 + $0x28] sm:$0xff]  ;;  %v3458_v37 = vld [vmem:[%s7736_s6 + $0x30] sm:$0xff] }
 0x9e3   :  { %v3651_v52 = vmul.f32 -1.442695, %v3220_v41  ;;  %v3653_v30 = vmul.f32 -1.442695, %v3222_v5  ;;  %v3453_v41 = vld [vmem:[%s7736_s6 + $0x8] sm:$0xff]  ;;  %v5707_v5 = vpack.c.bf16 %v3457_v29, %v3456_v27 }
 0x9e4   :  { %v3652_v18 = vmul.f32 -1.442695, %v3221_v17  ;;  %v5701_v3 = vpack.c.bf16 %v3453_v41, %v3452_v33  ;;  %v6064_v17 = vmov 0.0|0.0  }
 0x9e5   :  { %5942 = vpow2.f32 %v3651_v52  ;;  %5700 = vmatprep.subr.bf16.mxu0 %v6064_v17  ;;  %v3454_v52 = vld [vmem:[%s7736_s6 + $0x10] sm:$0xff] }
 0x9e6   :  { %5944 = vpow2.f32 %v3652_v18  ;;  %v3455_v18 = vld [vmem:[%s7736_s6 + $0x18] sm:$0xff] }
 0x9e7   :  { %5946 = vtanh.f32 %v3223_v58  ;;  %v5704_v42 = vpack.c.bf16 %v3455_v18, %v3454_v52  ;;  %v3459_v58 = vld [vmem:[%s7736_s6 + $0x38] sm:$0xff] }
 0x9e8   :  { %5948 = vpow2.f32 %v3653_v30  ;;  %v5710_v30 = vpack.c.bf16 %v3459_v58, %v3458_v37 }
 0x9ef   :  { %v5943_v28 = vpop.eup %5942 }
 0x9f0   :  { %v3237_v35 = vadd.f32 1.0, %v5943_v28  ;;  %v5945_v63 = vpop.eup %5944  ;;  %v3460_v28 = vld [vmem:[%s7736_s6 + $0x40] sm:$0xff] }
 0x9f1   :  { %v3238_v53 = vadd.f32 1.0, %v5945_v63  ;;  %v5947_v44 = vpop.eup %5946 }
 0x9f2   :  { %5950 = vrcp.f32 %v3237_v35  ;;  %v5949_v48 = vpop.eup %5948  ;;  %v3461_v35 = vld [vmem:[%s7736_s6 + $0x48] sm:$0xff] }
 0x9f3   :  { %5952 = vrcp.f32 %v3238_v53  ;;  %v3239_v19 = vadd.f32 1.0, %v5949_v48  ;;  %v5713_v63 = vpack.c.bf16 %v3461_v35, %v3460_v28  ;;  %v3462_v53 = vld [vmem:[%s7736_s6 + $0x50] sm:$0xff] }
 0x9f5   :  { %5954 = vrcp.f32 %v3239_v19  ;;  %v3467_v19 = vld [vmem:[%s7736_s6 + $0x78] sm:$0xff] }
 0x9fc   :  { %v5951_v24 = vpop.eup %5950 }
 0x9fd   :  { %v3251_v15 = vmul.f32 %v5951_v24, %v5947_v44  ;;  %v5953_v4 = vpop.eup %5952  ;;  %v3463_v44 = vld [vmem:[%s7736_s6 + $0x58] sm:$0xff]  ;;  %v3464_v24 = vld [vmem:[%s7736_s6 + $0x60] sm:$0xff] }
 0x9fe   :  { %v3250_v57 = vmul.f32 %v5953_v4, %v3248_v1  ;;  %v5716_v48 = vpack.c.bf16 %v3463_v44, %v3462_v53  ;;  %v8683_v1 = vmov 0.0   ;;  %v3466_v4 = vld [vmem:[%s7736_s6 + $0x70] sm:$0xff] }
 0x9ff   :  { %v5955_v0 = vpop.eup %5954 }
 0xa00   :  { %v3252_v14 = vadd.f32 %v3251_v15, %v3250_v57  ;;  %v5719_v15 = vpack.c.bf16 %v3465_v9, %v3464_v24  ;;  %v5722_v57 = vpack.c.bf16 %v3467_v19, %v3466_v4 }
 0xa02   :  { %5956 = vtanh.f32 %v3252_v14 }
 0xa0c   :  { %v5957_v13 = vpop.eup %5956 }
 0xa0d   :  { %v3254_v16 = vmul.f32 %v5957_v13, %v5955_v0 }
 0xa0f   :  { %v3282_v46 = vrot.slane %v3254_v16, 6 }
 0xa1e   :  { %v3128_v7 = vpop.f32.mrb[30].mxu0  ;;  %v3199_v26 = vpop.f32.mrb[30].mxu1 }
 0xa1f   :  { %v3224_v43 = vadd.f32 %v3128_v7, %v8678_v6  ;;  %v3130_v40 = vpop.f32.mrb[31].mxu0  ;;  %v3201_v56 = vpop.f32.mrb[31].mxu1  ;;  %v3226_v39 = vadd.f32 %v3199_v26, %v8680_v20 }
 0xa20   :  { %v3225_v38 = vadd.f32 %v3130_v40, %v8679_v23  ;;  %v3227_v22 = vadd.f32 %v3201_v56, %v8681_v60 }
 0xa21   :  { %v3654_v25 = vmul.f32 -1.442695, %v3224_v43  ;;  %v3656_v45 = vmul.f32 -1.442695, %v3226_v39 }
 0xa22   :  { %v3655_v10 = vmul.f32 -1.442695, %v3225_v38 }
 0xa23   :  { %5958 = vpow2.f32 %v3654_v25 }
 0xa24   :  { %5960 = vpow2.f32 %v3655_v10 }
 0xa25   :  { %5962 = vtanh.f32 %v3227_v22 }
 0xa26   :  { %5964 = vpow2.f32 %v3656_v45 }
 0xa2d   :  { %v5959_v21 = vpop.eup %5958 }
 0xa2e   :  { %v3264_v2 = vadd.f32 1.0, %v5959_v21  ;;  %v5961_v54 = vpop.eup %5960 }
 0xa2f   :  { %v3265_v50 = vadd.f32 1.0, %v5961_v54  ;;  %v5963_v11 = vpop.eup %5962 }
 0xa30   :  { %5966 = vrcp.f32 %v3264_v2  ;;  %v5965_v36 = vpop.eup %5964 }
 0xa31   :  { %5968 = vrcp.f32 %v3265_v50  ;;  %v3266_v8 = vadd.f32 1.0, %v5965_v36 }
 0xa33   :  { %5970 = vrcp.f32 %v3266_v8 }
 0xa3a   :  { %v5967_v31 = vpop.eup %5966 }
 0xa3b   :  { %v3275_v51 = vmul.f32 %v5967_v31, %v5963_v11  ;;  %v5969_v62 = vpop.eup %5968 }
 0xa3c   :  { %v3274_v55 = vmul.f32 %v5969_v62, %v8682_v61 }
 0xa3d   :  { %v5971_v12 = vpop.eup %5970 }
 0xa3e   :  { %v7664_v32 = vadd.f32 %v3275_v51, %v3274_v55  ;;  %v3660_v51 = vld [vmem:[%s7737_s7] ss:$0 sm:$0xff] }
 0xa3f   :  { %v3661_v55 = vld [vmem:[%s7738_s8] ss:$0 sm:$0xff] }
 0xa40   :  { %5972 = vtanh.f32 %v7664_v32 }
 0xa4a   :  { %v5973_v49 = vpop.eup %5972 }
 0xa4b   :  { %v3278_v34 = vmul.f32 %v5973_v49, %v5971_v12 }
 0xa4d   :  { %v3280_v59 = vrot.slane %v3278_v34, 2  ;;  %v3662_v34 = vld [vmem:[#allocation3] ss:$0 sm:$0xff] }
 0xa4f   :  { %v3283_v47 = vrot.slane %v3280_v59, 6 }
 0xa51   :  { %3350 = vmatprep.mubr.f32.mxu0 %v3283_v47  ;;  %3421 = vmatprep.mubr.f32.mxu1 %v3283_v47 }
 0xa52   :  { %3351 = vmatmul.mubr.f32.vlgmr.msra.gmra.mrb[32].mxu0 %v3282_v46  ;;  %3422 = vmatmul.mubr.f32.vlgmr.msra.gmra.mrb[32].mxu1 %v3282_v46 }
 0xa53   :  { %5702 = vmatpush3.bf16.msra.mxu0 %v5701_v3  ;;  %3713 = vmatprep.mubr.msk.f32.mxu0 %vm6065_vm7, %v8683_v1 }
 0xa54   :  { %5703 = vmatprep.subr.bf16.mxu0 %v6064_v17 }
 0xa57   :  { %5705 = vmatpush3.bf16.msra.mxu0 %v5704_v42 }
 0xa58   :  { %5706 = vmatprep.subr.bf16.mxu0 %v6064_v17 }
 0xa5b   :  { %5708 = vmatpush3.bf16.msra.mxu0 %v5707_v5 }
 0xa5c   :  { %5709 = vmatprep.subr.bf16.mxu0 %v6064_v17 }
 0xa5f   :  { %5711 = vmatpush3.bf16.msra.mxu0 %v5710_v30 }
 0xa60   :  { %5712 = vmatprep.subr.bf16.mxu0 %v6064_v17 }
 0xa63   :  { %5714 = vmatpush3.bf16.msra.mxu0 %v5713_v63 }
 0xa64   :  { %5715 = vmatprep.subr.bf16.mxu0 %v6064_v17 }
 0xa67   :  { %5717 = vmatpush3.bf16.msra.mxu0 %v5716_v48 }
 0xa68   :  { %5718 = vmatprep.subr.bf16.mxu0 %v6064_v17 }
 0xa6b   :  { %5720 = vmatpush3.bf16.msra.mxu0 %v5719_v15 }
 0xa6c   :  { %5721 = vmatprep.subr.bf16.mxu0 %v6064_v17 }
 0xa6f   :  { %5723 = vmatpush3.bf16.msra.mxu0 %v5722_v57 }
 0xb25   :  { %v3352_v14 = vpop.f32.mrb[32].mxu0  ;;  %v3423_v0 = vpop.f32.mrb[32].mxu1 }
 0xb26   :  { %v3353_v13 = vadd.f32 %v3352_v14, %v8678_v6  ;;  %v3354_v16 = vpop.f32.mrb[33].mxu0  ;;  %v3425_v7 = vpop.f32.mrb[33].mxu1  ;;  %v3424_v56 = vadd.f32 %v3423_v0, %v8680_v20 }
 0xb27   :  { %v3355_v26 = vadd.f32 %v3354_v16, %v8679_v23  ;;  %v3426_v38 = vadd.f32 %v3425_v7, %v8681_v60 }
 0xb28   :  { %v3657_v43 = vmul.f32 -1.442695, %v3353_v13  ;;  %v3659_v25 = vmul.f32 -1.442695, %v3424_v56 }
 0xb29   :  { %v3658_v40 = vmul.f32 -1.442695, %v3355_v26 }
 0xb2a   :  { %5974 = vpow2.f32 %v3657_v43 }
 0xb2b   :  { %5976 = vpow2.f32 %v3658_v40 }
 0xb2c   :  { %5978 = vtanh.f32 %v3426_v38 }
 0xb2d   :  { %5980 = vpow2.f32 %v3659_v25 }
 0xb34   :  { %v5975_v10 = vpop.eup %5974 }
 0xb35   :  { %v3437_v39 = vadd.f32 1.0, %v5975_v10  ;;  %v5977_v22 = vpop.eup %5976 }
 0xb36   :  { %v3438_v6 = vadd.f32 1.0, %v5977_v22  ;;  %v5979_v45 = vpop.eup %5978 }
 0xb37   :  { %5982 = vrcp.f32 %v3437_v39  ;;  %v5981_v21 = vpop.eup %5980 }
 0xb38   :  { %5984 = vrcp.f32 %v3438_v6  ;;  %v3439_v50 = vadd.f32 1.0, %v5981_v21 }
 0xb3a   :  { %5986 = vrcp.f32 %v3439_v50 }
 0xb41   :  { %v5983_v23 = vpop.eup %5982 }
 0xb42   :  { %v3448_v2 = vmul.f32 %v5983_v23, %v5979_v45  ;;  %v5985_v54 = vpop.eup %5984 }
 0xb43   :  { %v3447_v11 = vmul.f32 %v5985_v54, %v7664_v32 }
 0xb44   :  { %v5987_v60 = vpop.eup %5986 }
 0xb45   :  { %v3449_v20 = vadd.f32 %v3448_v2, %v3447_v11 }
 0xb47   :  { %5988 = vtanh.f32 %v3449_v20 }
 0xb51   :  { %v5989_v36 = vpop.eup %5988 }
 0xb52   :  { %v3451_v31 = vmul.f32 %v5989_v36, %v5987_v60 }
 0xb54   :  { %3714 = vmatmul.mubr.f32.vlgmr.msra.gmra.mrb[34].mxu0 %v3451_v31 }
 0xc27   :  { %v3541_v62 = vpop.f32.mrb[34].mxu0 }
 0xc28   :  { %v3542_v8 = vadd.f32 %v3660_v51, %v3541_v62  ;;  %v3715_v61 = vpop.f32.mrb[35].mxu0 }
 0xc2a   :  { %v3545_v12 = vmax.f32 %v3542_v8, 0.0 }
 0xc2c   :  { %v3553_v32 = vmul.f32 %v3661_v55, %v3545_v12 }
 0xc2e   :  { %v3555_v49 = vsel %vm3554_vm8, %v3553_v32, 0.0 }
 0xc2f   :  { %3556 = vadd.xlane.f32.xlu0 %v3555_v49 }
 0xcbc   :  { %v3557_v59 = vpop.xlane.xlu0 %3556 }
 0xcbd   :  { %v3565_v47 = vadd.f32 %v3662_v34, %v3557_v59 }
 0xcbf   :  { %v3663_v46 = vmul.f32 -1.442695, %v3565_v47 }
 0xcc1   :  { %5990 = vpow2.f32 %v3663_v46 }
 0xccb   :  { %v5991_v33 = vpop.eup %5990 }
 0xccc   :  { %v3569_v41 = vadd.f32 1.0, %v5991_v33 }
 0xcce   :  { %5992 = vrcp.f32 %v3569_v41 }
 0xcd8   :  { %v5993_v3 = vpop.eup %5992 }
 0xcd9   :  { %3573 = vst.msk [vmem:[%s7740_s10] sm:$0x3] %vm3572_vm9, %v5993_v3 }
 0xcda   :  { %3578 = vsyncpa [#allocation5], 1 }
 0xcdb   :  { %3579 = vsyncpa [#allocation9], 1 }
 0xcdc   :  { %3580 = vsyncpa [#allocation6], 1 }

</bundles_post_ra>
